<compile_context>
chip_gen: v5e
topology: v5e:2x2
jax: 0.10.0
libtpu: 0.0.40
codegen_flags: <defaults>
</compile_context>

<pallas_src>
import jax
import jax.numpy as jnp
from jax.experimental import pallas as pl
from jax.experimental.pallas import tpu as pltpu


def _lovasz_kernel(gts_ref, err_ref, gt_ref, out_ref, off_ref, pjac_ref, acc_ref):
    """Process one (8-class-group, BLK-pixel) block of the sorted per-class streams.

    gts_ref : (8, 1)   f32  total positives per class (global).
    err_ref : (8, BLK) f32  errors, sorted descending per class (padded lanes = -1e30).
    gt_ref  : (8, BLK) bf16 0/1 ground truth, permuted by the same sort.
    out_ref : (8, 1)   f32  per-class loss (written only on the last pixel block).
    off_ref : (8, 1)   f32  carried cumulative positive count from previous blocks.
    pjac_ref: (8, 1)   f32  carried jaccard of the previous block's last element.
    acc_ref : (8, 128) f32  per-lane partial-sum accumulator (reduced once at the end).
    """
    k = pl.program_id(1)
    nk = pl.num_programs(1)
    cb, blk = err_ref.shape

    @pl.when(k == 0)
    def _():
        off_ref[...] = jnp.zeros_like(off_ref)
        pjac_ref[...] = jnp.zeros_like(pjac_ref)
        acc_ref[...] = jnp.zeros_like(acc_ref)
        out_ref[...] = jnp.zeros_like(out_ref)

    err = err_ref[...]
    gt = gt_ref[...].astype(jnp.float32)          # bf16 0/1 -> exact f32
    gts = gts_ref[...]
    off = off_ref[...]
    pjac = pjac_ref[...]

    lane = jax.lax.broadcasted_iota(jnp.int32, (cb, blk), 1)

    # Block-local inclusive prefix sum of gt along lanes: Hillis-Steele scan with
    # log2(BLK) roll (XLU) + mask + add (VPU) steps.  Exact for 0/1 values in f32.
    cum = gt
    d = 1
    while d < blk:
        rolled = pltpu.roll(cum, shift=d, axis=1)
        cum = cum + jnp.where(lane >= d, rolled, 0.0)
        d *= 2

    cum_gt = cum + off                                   # global inclusive cumsum

    # cumsum(1 - gt)[i] == (i + 1) - cumsum(gt)[i], with i the global position.
    # TODO(synk): pos/cum_gt are exact in f32 only while N*H*W < 2^24 pixels.
    pos = (lane + (k * blk + 1)).astype(jnp.float32)
    intersection = gts - cum_gt
    union = gts + (pos - cum_gt)                         # always >= 1, no div-by-zero
    jaccard = 1.0 - intersection * pl.reciprocal(union, approx=False)

    # grad[i] = jaccard[i] - jaccard[i-1]; lane 0 uses the carried previous-block value
    # (zero for the very first block -> grad[0] = jaccard[0], matching the reference).
    shifted = pltpu.roll(jaccard, shift=1, axis=1)
    grad = jaccard - jnp.where(lane == 0, pjac, shifted)

    # Padded lanes / padded classes have err = -1e30 -> relu = 0 -> contribute exactly 0.
    contrib = jnp.maximum(err, 0.0) * grad

    # Fold BLK lanes into 128-wide partial sums: pure VPU adds, no per-step XLU
    # reduction and no per-step masked sub-128-lane store.
    part = acc_ref[...]
    for j in range(blk // 128):
        part = part + contrib[:, j * 128:(j + 1) * 128]
    acc_ref[...] = part

    # Carry into the next pixel block of this class group.
    off_ref[...] = cum_gt[:, blk - 1:blk]
    pjac_ref[...] = jaccard[:, blk - 1:blk]

    @pl.when(k == nk - 1)
    def _():
        out_ref[...] = jnp.sum(acc_ref[...], axis=-1, keepdims=True)


def lovasz_loss(probas, targets, *, block_p=4096):
    """probas: (N, C, H, W) float, targets: (N, H, W) int -> scalar f32 loss.

    block_p: pixel-block size (multiple of 128).  Use 4096-8192 on all generations
    (v5e/v6e/v7x): the double-buffered working set (err f32 + gt bf16) is < 1.5 MB
    even at 8192, well under every scoped-VMEM default, and small blocks are
    dominated by the ~0.35 us per-grid-step overhead.
    """
    probas = probas.astype(jnp.float32)
    N, C, H, W = probas.shape
    P = N * H * W

    # Per-class binary ground truth and hinge errors (elementwise glue).
    # TODO(synk): this one-hot + transpose + pad pre-sort glue could be fused into a
    # small Pallas pre-kernel writing lane-dense (Cpad, Ppad) slabs directly to cut
    # ~two extra full C*P*4-byte HBM passes; left in XLA here for simplicity.
    tgt = targets.reshape(N, 1, H, W)
    cls = jnp.arange(C, dtype=targets.dtype).reshape(1, C, 1, 1)
    target_c = (tgt == cls).astype(jnp.float32)                     # (N, C, H, W)
    errors = 1.0 - probas * (2.0 * target_c - 1.0)                  # (N, C, H, W)

    # Flatten per class in torch .view(-1) order: (C, N*H*W).
    errors = jnp.transpose(errors, (1, 0, 2, 3)).reshape(C, P)
    target_c = jnp.transpose(target_c, (1, 0, 2, 3)).reshape(C, P)

    CG = 8                                    # class sublane-group size
    BLK = max(128, block_p)
    assert BLK % 128 == 0, "block_p must be a multiple of 128"
    Cpad = ((C + CG - 1) // CG) * CG
    Ppad = ((P + BLK - 1) // BLK) * BLK

    # Total positives per class (exact in f32 while positives < 2^24).
    gts = jnp.sum(target_c, axis=-1, keepdims=True)                 # (C, 1)
    gts = jnp.pad(gts, ((0, Cpad - C), (0, 0)), constant_values=0.0)

    # Pad once, BEFORE the sort: padded errors (-1e30) sort to the tail and relu() to 0;
    # padded classes have gt == 0 so their loss is exactly 0.
    err_p = jnp.pad(errors, ((0, Cpad - C), (0, Ppad - P)), constant_values=-1e30)
    gt_p = jnp.pad(target_c, ((0, Cpad - C), (0, Ppad - P)), constant_values=0.0)
    gt_p = gt_p.astype(jnp.bfloat16)          # 0/1 exact in bf16; halves DMA + sort payload

    # TODO(synk): torch.sort (descending, global per class) has no Pallas TPU primitive;
    # done in XLA as ONE fused key/value sort (ascending on -err == descending on err).
    neg_sorted, gt_sorted = jax.lax.sort_key_val(-err_p, gt_p, dimension=-1)
    err_sorted = -neg_sorted

    n_class_groups = Cpad // CG
    # Only shard the class-group axis across TensorCores when it has real extent
    # (v7x megacore); an extent-1 "parallel" axis just leaves one core idle.
    class_sem = "parallel" if n_class_groups >= 2 else "arbitrary"

    out = pl.pallas_call(
        _lovasz_kernel,
        out_shape=jax.ShapeDtypeStruct((Cpad, 1), jnp.float32),
        grid_spec=pltpu.PrefetchScalarGridSpec(
            num_scalar_prefetch=0,
            grid=(n_class_groups, Ppad // BLK),
            in_specs=[
                pl.BlockSpec((CG, 1), lambda g, k: (g, 0)),         # gts
                pl.BlockSpec((CG, BLK), lambda g, k: (g, k)),       # err (sorted, f32)
                pl.BlockSpec((CG, BLK), lambda g, k: (g, k)),       # gt  (sorted, bf16)
            ],
            out_specs=pl.BlockSpec((CG, 1), lambda g, k: (g, 0)),
            scratch_shapes=[
                pltpu.VMEM((CG, 1), jnp.float32),    # running cumsum offset per class
                pltpu.VMEM((CG, 1), jnp.float32),    # previous-element jaccard per class
                pltpu.VMEM((CG, 128), jnp.float32),  # per-lane partial-sum accumulator
            ],
        ),
        compiler_params=pltpu.CompilerParams(
            dimension_semantics=(class_sem, "arbitrary")),
    )(gts, err_sorted, gt_sorted)

    # Padded class rows are exactly 0; mean over the real number of classes.
    return jnp.sum(out) / float(C)


def _lovasz_loss_ref(probas, targets):
    """Pure-JAX reference reproducing the PyTorch module semantics."""
    probas = probas.astype(jnp.float32)
    N, C, H, W = probas.shape
    P = N * H * W
    tgt = targets.reshape(N, 1, H, W)
    cls = jnp.arange(C, dtype=targets.dtype).reshape(1, C, 1, 1)
    target_c = (tgt == cls).astype(jnp.float32)
    signs = 2.0 * target_c - 1.0
    errors = 1.0 - probas * signs
    errors = jnp.transpose(errors, (1, 0, 2, 3)).reshape(C, P)
    target_c = jnp.transpose(target_c, (1, 0, 2, 3)).reshape(C, P)

    def per_class(errs, gts_row):
        order = jnp.argsort(-errs)
        es = errs[order]
        gs = gts_row[order]
        gsum = gs.sum()
        inter = gsum - jnp.cumsum(gs)
        uni = gsum + jnp.cumsum(1.0 - gs)
        jac = 1.0 - inter / uni
        jac = jac.at[1:].set(jac[1:] - jac[:-1])
        return jnp.dot(jax.nn.relu(es), jac)

    losses = jax.vmap(per_class)(errors, target_c)
    return jnp.mean(losses)


if __name__ == "__main__":
    key = jax.random.PRNGKey(0)
    k1, k2 = jax.random.split(key)
    N, C, H, W = 2, 4, 16, 16
    probas = jax.random.normal(k1, (N, C, H, W), dtype=jnp.float32)
    targets = jax.random.randint(k2, (N, H, W), 0, C, dtype=jnp.int32)

    ref = _lovasz_loss_ref(probas, targets)

    # Default large block (P = 512 -> single pixel block, padded to 4096).
    loss_big = lovasz_loss(probas, targets)
    jax.block_until_ready(loss_big)
    assert jnp.allclose(loss_big, ref, rtol=1e-4, atol=1e-5), (loss_big, ref)

    # Small block (P = 512 -> 4 blocks of 128): exercises the carried-scan path
    # (off / pjac carry across the "arbitrary" pixel-block axis).
    loss_small = lovasz_loss(probas, targets, block_p=128)
    jax.block_until_ready(loss_small)
    assert jnp.allclose(loss_small, ref, rtol=1e-4, atol=1e-5), (loss_small, ref)

    print("KERNEL_OK")
</pallas_src>

<mosaic_0001>
module attributes {stable_mosaic.version = 11 : i64} {
  func.func @_lovasz_kernel(%arg0: i32, %arg1: i32, %arg2: memref<8x1xf32, #tpu.memory_space<vmem>>, %arg3: memref<8x4096xf32, #tpu.memory_space<vmem>>, %arg4: memref<8x4096xbf16, #tpu.memory_space<vmem>>, %arg5: memref<8x1xf32, #tpu.memory_space<vmem>>, %arg6: memref<8x1xf32, #tpu.memory_space<vmem>>, %arg7: memref<8x1xf32, #tpu.memory_space<vmem>>, %arg8: memref<8x128xf32, #tpu.memory_space<vmem>>) attributes {dimension_semantics = [#tpu.dimension_semantics<arbitrary>, #tpu.dimension_semantics<arbitrary>], iteration_bounds = array<i64: 1, 1>, scalar_prefetch = 0 : i64, scratch_operands = 3 : i64, tpu.core_type = #tpu.core_type<tc>, window_params = [{transform_indices = @transform_0, window_bounds = array<i64: 8, 1>}, {transform_indices = @transform_1, window_bounds = array<i64: 8, 4096>}, {transform_indices = @transform_2, window_bounds = array<i64: 8, 4096>}, {transform_indices = @transform_3, window_bounds = array<i64: 8, 1>}]} {
    %c0_i32 = arith.constant 0 : i32
    %0 = arith.cmpi eq, %arg1, %c0_i32 : i32
    %1 = arith.extui %0 : i1 to i32
    %c0_i32_0 = arith.constant 0 : i32
    %2 = arith.cmpi ne, %1, %c0_i32_0 : i32
    scf.if %2 {
      %cst_48 = arith.constant 0.000000e+00 : f32
      %181 = vector.broadcast %cst_48 : f32 to vector<8x1xf32>
      %c0_49 = arith.constant 0 : index
      %c0_50 = arith.constant 0 : index
      %182 = vector.load %arg6[%c0_49, %c0_50] : memref<8x1xf32, #tpu.memory_space<vmem>>, vector<8x1xf32>
      tpu.vector_store %arg6[%c0_49, %c0_50], %181 {strides = array<i32>} : memref<8x1xf32, #tpu.memory_space<vmem>>, vector<8x1xf32>,
      %cst_51 = arith.constant 0.000000e+00 : f32
      %183 = vector.broadcast %cst_51 : f32 to vector<8x1xf32>
      %c0_52 = arith.constant 0 : index
      %c0_53 = arith.constant 0 : index
      %184 = vector.load %arg7[%c0_52, %c0_53] : memref<8x1xf32, #tpu.memory_space<vmem>>, vector<8x1xf32>
      tpu.vector_store %arg7[%c0_52, %c0_53], %183 {strides = array<i32>} : memref<8x1xf32, #tpu.memory_space<vmem>>, vector<8x1xf32>,
      %cst_54 = arith.constant 0.000000e+00 : f32
      %185 = vector.broadcast %cst_54 : f32 to vector<8x128xf32>
      %c0_55 = arith.constant 0 : index
      %c0_56 = arith.constant 0 : index
      %186 = vector.load %arg8[%c0_55, %c0_56] : memref<8x128xf32, #tpu.memory_space<vmem>>, vector<8x128xf32>
      tpu.vector_store %arg8[%c0_55, %c0_56], %185 {strides = array<i32>} : memref<8x128xf32, #tpu.memory_space<vmem>>, vector<8x128xf32>,
      %cst_57 = arith.constant 0.000000e+00 : f32
      %187 = vector.broadcast %cst_57 : f32 to vector<8x1xf32>
      %c0_58 = arith.constant 0 : index
      %c0_59 = arith.constant 0 : index
      %188 = vector.load %arg5[%c0_58, %c0_59] : memref<8x1xf32, #tpu.memory_space<vmem>>, vector<8x1xf32>
      tpu.vector_store %arg5[%c0_58, %c0_59], %187 {strides = array<i32>} : memref<8x1xf32, #tpu.memory_space<vmem>>, vector<8x1xf32>,
    } else {
    }
    %c0 = arith.constant 0 : index
    %c0_1 = arith.constant 0 : index
    %3 = vector.load %arg3[%c0, %c0_1] : memref<8x4096xf32, #tpu.memory_space<vmem>>, vector<8x4096xf32>
    %c0_2 = arith.constant 0 : index
    %c0_3 = arith.constant 0 : index
    %4 = vector.load %arg4[%c0_2, %c0_3] : memref<8x4096xbf16, #tpu.memory_space<vmem>>, vector<8x4096xbf16>
    %5 = arith.extf %4 : vector<8x4096xbf16> to vector<8x4096xf32>
    %c0_4 = arith.constant 0 : index
    %c0_5 = arith.constant 0 : index
    %6 = vector.load %arg2[%c0_4, %c0_5] : memref<8x1xf32, #tpu.memory_space<vmem>>, vector<8x1xf32>
    %c0_6 = arith.constant 0 : index
    %c0_7 = arith.constant 0 : index
    %7 = vector.load %arg6[%c0_6, %c0_7] : memref<8x1xf32, #tpu.memory_space<vmem>>, vector<8x1xf32>
    %c0_8 = arith.constant 0 : index
    %c0_9 = arith.constant 0 : index
    %8 = vector.load %arg7[%c0_8, %c0_9] : memref<8x1xf32, #tpu.memory_space<vmem>>, vector<8x1xf32>
    %9 = tpu.iota {dimensions = array<i32: 1>} : vector<8x4096xi32>
    %c1_i32 = arith.constant 1 : i32
    %10 = tpu.dynamic_rotate %5 by %c1_i32 dim 1 : vector<8x4096xf32>, i32 -> vector<8x4096xf32>
    %c1_i32_10 = arith.constant 1 : i32
    %11 = vector.broadcast %c1_i32_10 : i32 to vector<8x4096xi32>
    %12 = arith.cmpi sge, %9, %11 : vector<8x4096xi32>
    %cst = arith.constant 0.000000e+00 : f32
    %13 = vector.broadcast %cst : f32 to vector<8x4096xf32>
    %14 = arith.select %12, %10, %13 : vector<8x4096xi1>, vector<8x4096xf32>
    %15 = arith.addf %5, %14 : vector<8x4096xf32>
    %c2_i32 = arith.constant 2 : i32
    %16 = tpu.dynamic_rotate %15 by %c2_i32 dim 1 : vector<8x4096xf32>, i32 -> vector<8x4096xf32>
    %c2_i32_11 = arith.constant 2 : i32
    %17 = vector.broadcast %c2_i32_11 : i32 to vector<8x4096xi32>
    %18 = arith.cmpi sge, %9, %17 : vector<8x4096xi32>
    %cst_12 = arith.constant 0.000000e+00 : f32
    %19 = vector.broadcast %cst_12 : f32 to vector<8x4096xf32>
    %20 = arith.select %18, %16, %19 : vector<8x4096xi1>, vector<8x4096xf32>
    %21 = arith.addf %15, %20 : vector<8x4096xf32>
    %c4_i32 = arith.constant 4 : i32
    %22 = tpu.dynamic_rotate %21 by %c4_i32 dim 1 : vector<8x4096xf32>, i32 -> vector<8x4096xf32>
    %c4_i32_13 = arith.constant 4 : i32
    %23 = vector.broadcast %c4_i32_13 : i32 to vector<8x4096xi32>
    %24 = arith.cmpi sge, %9, %23 : vector<8x4096xi32>
    %cst_14 = arith.constant 0.000000e+00 : f32
    %25 = vector.broadcast %cst_14 : f32 to vector<8x4096xf32>
    %26 = arith.select %24, %22, %25 : vector<8x4096xi1>, vector<8x4096xf32>
    %27 = arith.addf %21, %26 : vector<8x4096xf32>
    %c8_i32 = arith.constant 8 : i32
    %28 = tpu.dynamic_rotate %27 by %c8_i32 dim 1 : vector<8x4096xf32>, i32 -> vector<8x4096xf32>
    %c8_i32_15 = arith.constant 8 : i32
    %29 = vector.broadcast %c8_i32_15 : i32 to vector<8x4096xi32>
    %30 = arith.cmpi sge, %9, %29 : vector<8x4096xi32>
    %cst_16 = arith.constant 0.000000e+00 : f32
    %31 = vector.broadcast %cst_16 : f32 to vector<8x4096xf32>
    %32 = arith.select %30, %28, %31 : vector<8x4096xi1>, vector<8x4096xf32>
    %33 = arith.addf %27, %32 : vector<8x4096xf32>
    %c16_i32 = arith.constant 16 : i32
    %34 = tpu.dynamic_rotate %33 by %c16_i32 dim 1 : vector<8x4096xf32>, i32 -> vector<8x4096xf32>
    %c16_i32_17 = arith.constant 16 : i32
    %35 = vector.broadcast %c16_i32_17 : i32 to vector<8x4096xi32>
    %36 = arith.cmpi sge, %9, %35 : vector<8x4096xi32>
    %cst_18 = arith.constant 0.000000e+00 : f32
    %37 = vector.broadcast %cst_18 : f32 to vector<8x4096xf32>
    %38 = arith.select %36, %34, %37 : vector<8x4096xi1>, vector<8x4096xf32>
    %39 = arith.addf %33, %38 : vector<8x4096xf32>
    %c32_i32 = arith.constant 32 : i32
    %40 = tpu.dynamic_rotate %39 by %c32_i32 dim 1 : vector<8x4096xf32>, i32 -> vector<8x4096xf32>
    %c32_i32_19 = arith.constant 32 : i32
    %41 = vector.broadcast %c32_i32_19 : i32 to vector<8x4096xi32>
    %42 = arith.cmpi sge, %9, %41 : vector<8x4096xi32>
    %cst_20 = arith.constant 0.000000e+00 : f32
    %43 = vector.broadcast %cst_20 : f32 to vector<8x4096xf32>
    %44 = arith.select %42, %40, %43 : vector<8x4096xi1>, vector<8x4096xf32>
    %45 = arith.addf %39, %44 : vector<8x4096xf32>
    %c64_i32 = arith.constant 64 : i32
    %46 = tpu.dynamic_rotate %45 by %c64_i32 dim 1 : vector<8x4096xf32>, i32 -> vector<8x4096xf32>
    %c64_i32_21 = arith.constant 64 : i32
    %47 = vector.broadcast %c64_i32_21 : i32 to vector<8x4096xi32>
    %48 = arith.cmpi sge, %9, %47 : vector<8x4096xi32>
    %cst_22 = arith.constant 0.000000e+00 : f32
    %49 = vector.broadcast %cst_22 : f32 to vector<8x4096xf32>
    %50 = arith.select %48, %46, %49 : vector<8x4096xi1>, vector<8x4096xf32>
    %51 = arith.addf %45, %50 : vector<8x4096xf32>
    %c128_i32 = arith.constant 128 : i32
    %52 = tpu.dynamic_rotate %51 by %c128_i32 dim 1 : vector<8x4096xf32>, i32 -> vector<8x4096xf32>
    %c128_i32_23 = arith.constant 128 : i32
    %53 = vector.broadcast %c128_i32_23 : i32 to vector<8x4096xi32>
    %54 = arith.cmpi sge, %9, %53 : vector<8x4096xi32>
    %cst_24 = arith.constant 0.000000e+00 : f32
    %55 = vector.broadcast %cst_24 : f32 to vector<8x4096xf32>
    %56 = arith.select %54, %52, %55 : vector<8x4096xi1>, vector<8x4096xf32>
    %57 = arith.addf %51, %56 : vector<8x4096xf32>
    %c256_i32 = arith.constant 256 : i32
    %58 = tpu.dynamic_rotate %57 by %c256_i32 dim 1 : vector<8x4096xf32>, i32 -> vector<8x4096xf32>
    %c256_i32_25 = arith.constant 256 : i32
    %59 = vector.broadcast %c256_i32_25 : i32 to vector<8x4096xi32>
    %60 = arith.cmpi sge, %9, %59 : vector<8x4096xi32>
    %cst_26 = arith.constant 0.000000e+00 : f32
    %61 = vector.broadcast %cst_26 : f32 to vector<8x4096xf32>
    %62 = arith.select %60, %58, %61 : vector<8x4096xi1>, vector<8x4096xf32>
    %63 = arith.addf %57, %62 : vector<8x4096xf32>
    %c512_i32 = arith.constant 512 : i32
    %64 = tpu.dynamic_rotate %63 by %c512_i32 dim 1 : vector<8x4096xf32>, i32 -> vector<8x4096xf32>
    %c512_i32_27 = arith.constant 512 : i32
    %65 = vector.broadcast %c512_i32_27 : i32 to vector<8x4096xi32>
    %66 = arith.cmpi sge, %9, %65 : vector<8x4096xi32>
    %cst_28 = arith.constant 0.000000e+00 : f32
    %67 = vector.broadcast %cst_28 : f32 to vector<8x4096xf32>
    %68 = arith.select %66, %64, %67 : vector<8x4096xi1>, vector<8x4096xf32>
    %69 = arith.addf %63, %68 : vector<8x4096xf32>
    %c1024_i32 = arith.constant 1024 : i32
    %70 = tpu.dynamic_rotate %69 by %c1024_i32 dim 1 : vector<8x4096xf32>, i32 -> vector<8x4096xf32>
    %c1024_i32_29 = arith.constant 1024 : i32
    %71 = vector.broadcast %c1024_i32_29 : i32 to vector<8x4096xi32>
    %72 = arith.cmpi sge, %9, %71 : vector<8x4096xi32>
    %cst_30 = arith.constant 0.000000e+00 : f32
    %73 = vector.broadcast %cst_30 : f32 to vector<8x4096xf32>
    %74 = arith.select %72, %70, %73 : vector<8x4096xi1>, vector<8x4096xf32>
    %75 = arith.addf %69, %74 : vector<8x4096xf32>
    %c2048_i32 = arith.constant 2048 : i32
    %76 = tpu.dynamic_rotate %75 by %c2048_i32 dim 1 : vector<8x4096xf32>, i32 -> vector<8x4096xf32>
    %c2048_i32_31 = arith.constant 2048 : i32
    %77 = vector.broadcast %c2048_i32_31 : i32 to vector<8x4096xi32>
    %78 = arith.cmpi sge, %9, %77 : vector<8x4096xi32>
    %cst_32 = arith.constant 0.000000e+00 : f32
    %79 = vector.broadcast %cst_32 : f32 to vector<8x4096xf32>
    %80 = arith.select %78, %76, %79 : vector<8x4096xi1>, vector<8x4096xf32>
    %81 = arith.addf %75, %80 : vector<8x4096xf32>
    %82 = vector.broadcast %7 : vector<8x1xf32> to vector<8x4096xf32>
    %83 = arith.addf %81, %82 : vector<8x4096xf32>
    %c4096_i32 = arith.constant 4096 : i32
    %84 = arith.muli %arg1, %c4096_i32 : i32
    %c1_i32_33 = arith.constant 1 : i32
    %85 = arith.addi %84, %c1_i32_33 : i32
    %86 = vector.broadcast %85 : i32 to vector<8x4096xi32>
    %87 = arith.addi %9, %86 : vector<8x4096xi32>
    %88 = arith.sitofp %87 : vector<8x4096xi32> to vector<8x4096xf32>
    %89 = vector.broadcast %6 : vector<8x1xf32> to vector<8x4096xf32>
    %90 = arith.subf %89, %83 : vector<8x4096xf32>
    %91 = arith.subf %88, %83 : vector<8x4096xf32>
    %92 = vector.broadcast %6 : vector<8x1xf32> to vector<8x4096xf32>
    %93 = arith.addf %92, %91 : vector<8x4096xf32>
    %94 = tpu.reciprocal %93 : vector<8x4096xf32> -> vector<8x4096xf32>
    %95 = arith.mulf %90, %94 : vector<8x4096xf32>
    %cst_34 = arith.constant 1.000000e+00 : f32
    %96 = vector.broadcast %cst_34 : f32 to vector<8x4096xf32>
    %97 = arith.subf %96, %95 : vector<8x4096xf32>
    %c1_i32_35 = arith.constant 1 : i32
    %98 = tpu.dynamic_rotate %97 by %c1_i32_35 dim 1 : vector<8x4096xf32>, i32 -> vector<8x4096xf32>
    %c0_i32_36 = arith.constant 0 : i32
    %99 = vector.broadcast %c0_i32_36 : i32 to vector<8x4096xi32>
    %100 = arith.cmpi eq, %9, %99 : vector<8x4096xi32>
    %101 = vector.shape_cast %8 : vector<8x1xf32> to vector<8x1xf32>
    %102 = vector.broadcast %101 : vector<8x1xf32> to vector<8x4096xf32>
    %103 = arith.select %100, %102, %98 : vector<8x4096xi1>, vector<8x4096xf32>
    %104 = arith.subf %97, %103 : vector<8x4096xf32>
    %cst_37 = arith.constant 0.000000e+00 : f32
    %105 = vector.broadcast %cst_37 : f32 to vector<8x4096xf32>
    %106 = arith.maximumf %3, %105 : vector<8x4096xf32>
    %107 = arith.mulf %106, %104 : vector<8x4096xf32>
    %c0_38 = arith.constant 0 : index
    %c0_39 = arith.constant 0 : index
    %108 = vector.load %arg8[%c0_38, %c0_39] : memref<8x128xf32, #tpu.memory_space<vmem>>, vector<8x128xf32>
    %109 = vector.extract_strided_slice %107 {offsets = [0, 0], sizes = [8, 128], strides = [1, 1]} : vector<8x4096xf32> to vector<8x128xf32>
    %110 = arith.addf %108, %109 : vector<8x128xf32>
    %111 = vector.extract_strided_slice %107 {offsets = [0, 128], sizes = [8, 128], strides = [1, 1]} : vector<8x4096xf32> to vector<8x128xf32>
    %112 = arith.addf %110, %111 : vector<8x128xf32>
    %113 = vector.extract_strided_slice %107 {offsets = [0, 256], sizes = [8, 128], strides = [1, 1]} : vector<8x4096xf32> to vector<8x128xf32>
    %114 = arith.addf %112, %113 : vector<8x128xf32>
    %115 = vector.extract_strided_slice %107 {offsets = [0, 384], sizes = [8, 128], strides = [1, 1]} : vector<8x4096xf32> to vector<8x128xf32>
    %116 = arith.addf %114, %115 : vector<8x128xf32>
    %117 = vector.extract_strided_slice %107 {offsets = [0, 512], sizes = [8, 128], strides = [1, 1]} : vector<8x4096xf32> to vector<8x128xf32>
    %118 = arith.addf %116, %117 : vector<8x128xf32>
    %119 = vector.extract_strided_slice %107 {offsets = [0, 640], sizes = [8, 128], strides = [1, 1]} : vector<8x4096xf32> to vector<8x128xf32>
    %120 = arith.addf %118, %119 : vector<8x128xf32>
    %121 = vector.extract_strided_slice %107 {offsets = [0, 768], sizes = [8, 128], strides = [1, 1]} : vector<8x4096xf32> to vector<8x128xf32>
    %122 = arith.addf %120, %121 : vector<8x128xf32>
    %123 = vector.extract_strided_slice %107 {offsets = [0, 896], sizes = [8, 128], strides = [1, 1]} : vector<8x4096xf32> to vector<8x128xf32>
    %124 = arith.addf %122, %123 : vector<8x128xf32>
    %125 = vector.extract_strided_slice %107 {offsets = [0, 1024], sizes = [8, 128], strides = [1, 1]} : vector<8x4096xf32> to vector<8x128xf32>
    %126 = arith.addf %124, %125 : vector<8x128xf32>
    %127 = vector.extract_strided_slice %107 {offsets = [0, 1152], sizes = [8, 128], strides = [1, 1]} : vector<8x4096xf32> to vector<8x128xf32>
    %128 = arith.addf %126, %127 : vector<8x128xf32>
    %129 = vector.extract_strided_slice %107 {offsets = [0, 1280], sizes = [8, 128], strides = [1, 1]} : vector<8x4096xf32> to vector<8x128xf32>
    %130 = arith.addf %128, %129 : vector<8x128xf32>
    %131 = vector.extract_strided_slice %107 {offsets = [0, 1408], sizes = [8, 128], strides = [1, 1]} : vector<8x4096xf32> to vector<8x128xf32>
    %132 = arith.addf %130, %131 : vector<8x128xf32>
    %133 = vector.extract_strided_slice %107 {offsets = [0, 1536], sizes = [8, 128], strides = [1, 1]} : vector<8x4096xf32> to vector<8x128xf32>
    %134 = arith.addf %132, %133 : vector<8x128xf32>
    %135 = vector.extract_strided_slice %107 {offsets = [0, 1664], sizes = [8, 128], strides = [1, 1]} : vector<8x4096xf32> to vector<8x128xf32>
    %136 = arith.addf %134, %135 : vector<8x128xf32>
    %137 = vector.extract_strided_slice %107 {offsets = [0, 1792], sizes = [8, 128], strides = [1, 1]} : vector<8x4096xf32> to vector<8x128xf32>
    %138 = arith.addf %136, %137 : vector<8x128xf32>
    %139 = vector.extract_strided_slice %107 {offsets = [0, 1920], sizes = [8, 128], strides = [1, 1]} : vector<8x4096xf32> to vector<8x128xf32>
    %140 = arith.addf %138, %139 : vector<8x128xf32>
    %141 = vector.extract_strided_slice %107 {offsets = [0, 2048], sizes = [8, 128], strides = [1, 1]} : vector<8x4096xf32> to vector<8x128xf32>
    %142 = arith.addf %140, %141 : vector<8x128xf32>
    %143 = vector.extract_strided_slice %107 {offsets = [0, 2176], sizes = [8, 128], strides = [1, 1]} : vector<8x4096xf32> to vector<8x128xf32>
    %144 = arith.addf %142, %143 : vector<8x128xf32>
    %145 = vector.extract_strided_slice %107 {offsets = [0, 2304], sizes = [8, 128], strides = [1, 1]} : vector<8x4096xf32> to vector<8x128xf32>
    %146 = arith.addf %144, %145 : vector<8x128xf32>
    %147 = vector.extract_strided_slice %107 {offsets = [0, 2432], sizes = [8, 128], strides = [1, 1]} : vector<8x4096xf32> to vector<8x128xf32>
    %148 = arith.addf %146, %147 : vector<8x128xf32>
    %149 = vector.extract_strided_slice %107 {offsets = [0, 2560], sizes = [8, 128], strides = [1, 1]} : vector<8x4096xf32> to vector<8x128xf32>
    %150 = arith.addf %148, %149 : vector<8x128xf32>
    %151 = vector.extract_strided_slice %107 {offsets = [0, 2688], sizes = [8, 128], strides = [1, 1]} : vector<8x4096xf32> to vector<8x128xf32>
    %152 = arith.addf %150, %151 : vector<8x128xf32>
    %153 = vector.extract_strided_slice %107 {offsets = [0, 2816], sizes = [8, 128], strides = [1, 1]} : vector<8x4096xf32> to vector<8x128xf32>
    %154 = arith.addf %152, %153 : vector<8x128xf32>
    %155 = vector.extract_strided_slice %107 {offsets = [0, 2944], sizes = [8, 128], strides = [1, 1]} : vector<8x4096xf32> to vector<8x128xf32>
    %156 = arith.addf %154, %155 : vector<8x128xf32>
    %157 = vector.extract_strided_slice %107 {offsets = [0, 3072], sizes = [8, 128], strides = [1, 1]} : vector<8x4096xf32> to vector<8x128xf32>
    %158 = arith.addf %156, %157 : vector<8x128xf32>
    %159 = vector.extract_strided_slice %107 {offsets = [0, 3200], sizes = [8, 128], strides = [1, 1]} : vector<8x4096xf32> to vector<8x128xf32>
    %160 = arith.addf %158, %159 : vector<8x128xf32>
    %161 = vector.extract_strided_slice %107 {offsets = [0, 3328], sizes = [8, 128], strides = [1, 1]} : vector<8x4096xf32> to vector<8x128xf32>
    %162 = arith.addf %160, %161 : vector<8x128xf32>
    %163 = vector.extract_strided_slice %107 {offsets = [0, 3456], sizes = [8, 128], strides = [1, 1]} : vector<8x4096xf32> to vector<8x128xf32>
    %164 = arith.addf %162, %163 : vector<8x128xf32>
    %165 = vector.extract_strided_slice %107 {offsets = [0, 3584], sizes = [8, 128], strides = [1, 1]} : vector<8x4096xf32> to vector<8x128xf32>
    %166 = arith.addf %164, %165 : vector<8x128xf32>
    %167 = vector.extract_strided_slice %107 {offsets = [0, 3712], sizes = [8, 128], strides = [1, 1]} : vector<8x4096xf32> to vector<8x128xf32>
    %168 = arith.addf %166, %167 : vector<8x128xf32>
    %169 = vector.extract_strided_slice %107 {offsets = [0, 3840], sizes = [8, 128], strides = [1, 1]} : vector<8x4096xf32> to vector<8x128xf32>
    %170 = arith.addf %168, %169 : vector<8x128xf32>
    %171 = vector.extract_strided_slice %107 {offsets = [0, 3968], sizes = [8, 128], strides = [1, 1]} : vector<8x4096xf32> to vector<8x128xf32>
    %172 = arith.addf %170, %171 : vector<8x128xf32>
    %c0_40 = arith.constant 0 : index
    %c0_41 = arith.constant 0 : index
    %173 = vector.load %arg8[%c0_40, %c0_41] : memref<8x128xf32, #tpu.memory_space<vmem>>, vector<8x128xf32>
    tpu.vector_store %arg8[%c0_40, %c0_41], %172 {strides = array<i32>} : memref<8x128xf32, #tpu.memory_space<vmem>>, vector<8x128xf32>,
    %174 = vector.extract_strided_slice %83 {offsets = [0, 4095], sizes = [8, 1], strides = [1, 1]} : vector<8x4096xf32> to vector<8x1xf32>
    %c0_42 = arith.constant 0 : index
    %c0_43 = arith.constant 0 : index
    %175 = vector.load %arg6[%c0_42, %c0_43] : memref<8x1xf32, #tpu.memory_space<vmem>>, vector<8x1xf32>
    tpu.vector_store %arg6[%c0_42, %c0_43], %174 {strides = array<i32>} : memref<8x1xf32, #tpu.memory_space<vmem>>, vector<8x1xf32>,
    %176 = vector.extract_strided_slice %97 {offsets = [0, 4095], sizes = [8, 1], strides = [1, 1]} : vector<8x4096xf32> to vector<8x1xf32>
    %c0_44 = arith.constant 0 : index
    %c0_45 = arith.constant 0 : index
    %177 = vector.load %arg7[%c0_44, %c0_45] : memref<8x1xf32, #tpu.memory_space<vmem>>, vector<8x1xf32>
    tpu.vector_store %arg7[%c0_44, %c0_45], %176 {strides = array<i32>} : memref<8x1xf32, #tpu.memory_space<vmem>>, vector<8x1xf32>,
    %c0_i32_46 = arith.constant 0 : i32
    %178 = arith.cmpi eq, %arg1, %c0_i32_46 : i32
    %179 = arith.extui %178 : i1 to i32
    %c0_i32_47 = arith.constant 0 : i32
    %180 = arith.cmpi ne, %179, %c0_i32_47 : i32
    scf.if %180 {
      %c0_48 = arith.constant 0 : index
      %c0_49 = arith.constant 0 : index
      %181 = vector.load %arg8[%c0_48, %c0_49] : memref<8x128xf32, #tpu.memory_space<vmem>>, vector<8x128xf32>
      %cst_50 = arith.constant dense<0.000000e+00> : vector<8xf32>
      %182 = vector.multi_reduction <add>, %181, %cst_50 [1] : vector<8x128xf32> to vector<8xf32>
      %183 = vector.shape_cast %182 : vector<8xf32> to vector<8x1xf32>
      %c0_51 = arith.constant 0 : index
      %c0_52 = arith.constant 0 : index
      %184 = vector.load %arg5[%c0_51, %c0_52] : memref<8x1xf32, #tpu.memory_space<vmem>>, vector<8x1xf32>
      tpu.vector_store %arg5[%c0_51, %c0_52], %183 {strides = array<i32>} : memref<8x1xf32, #tpu.memory_space<vmem>>, vector<8x1xf32>,
    } else {
    }
    return
  }
  func.func @transform_0(%arg0: i32, %arg1: i32) -> (i32, i32) {
    %c0_i32 = arith.constant 0 : i32
    %c0_i32_0 = arith.constant 0 : i32
    return %arg0, %c0_i32 : i32, i32
  }
  func.func @transform_1(%arg0: i32, %arg1: i32) -> (i32, i32) {
    %c0_i32 = arith.constant 0 : i32
    return %arg0, %arg1 : i32, i32
  }
  func.func @transform_2(%arg0: i32, %arg1: i32) -> (i32, i32) {
    %c0_i32 = arith.constant 0 : i32
    return %arg0, %arg1 : i32, i32
  }
  func.func @transform_3(%arg0: i32, %arg1: i32) -> (i32, i32) {
    %c0_i32 = arith.constant 0 : i32
    %c0_i32_0 = arith.constant 0 : i32
    return %arg0, %c0_i32 : i32, i32
  }
}

</mosaic_0001>

<bundles_post_ra>
// kernel: tpu_custom_call.1
= control target key start
LH: loop header
LB: loop body
LE: loop exit
PB: predicated region body
PF: predicated region fallthrough
CT: control target
= control target key end

     0   :  { %8 = vsyncpa [#allocation6], 0  ;;  %s6338_s0 = inlined_call_operand.vmem [shape: f32[8,1], index: 0, kind: input, shape index: {}]   ;;  %s6339_s1 = inlined_call_operand.hbm [shape: f32[8,4096], index: 1, kind: input, shape index: {}]   ;;  %s6340_s2 = inlined_call_operand.hbm [shape: bf16[8,4096], index: 2, kind: input, shape index: {}]   ;;  %s6341_s3 = inlined_call_operand.vmem [shape: f32[8,1], index: 3, kind: output, shape index: {}]  }
   0x1   :  { %s17_s14 = sshll.u32 %s6339_s1, 4  ;;  %s18_s14 = int_to_ptr.hbm [resolvable:$true] %s17_s14 }
   0x2   :  { %9 = vsyncpa [#allocation8], 0  ;;  %s3244_s15 = smov [#allocation5]   ;;  %s28_s19 = sshll.u32 %s6340_s2, 4  ;;  %s29_s19 = int_to_ptr.hbm [resolvable:$true] %s28_s19 }
   0x3   :  { %s19_s16 = sshll.u32 %s3244_s15, 4  ;;  %s3245_s20 = smov [#allocation7]   ;;  %s20_s16 = int_to_ptr.vmem [resolvable:$true] %s19_s16 }
   0x4   :  { %22 = dma.hbm_to_vmem [thread:$0]  %s18_s14, 4096, %s20_s16, [#allocation6]  }
   0x5   :  { %s30_s21 = sshll.u32 %s3245_s20, 4  ;;  %s31_s21 = int_to_ptr.vmem [resolvable:$true] %s30_s21 }
   0x6   :  { %33 = dma.hbm_to_vmem [thread:$0]  %s29_s19, 2048, %s31_s21, [#allocation8]  }
   0x7   :  { %3240 = dma.done.wait [#allocation6], 4096  }
   0x8   :  { %3241 = vsyncadd [#allocation6], 4294963200 }
   0x9   :  { %3242 = dma.done.wait [#allocation8], 2048  }
   0xa   :  { %3243 = vsyncadd [#allocation8], 4294965248  ;;  %v3281_v0 = vld [vmem:[#allocation7 + $0x10] sm:$0xff]  ;;  %v3283_v1 = vld [vmem:[#allocation7] sm:$0xff]  ;;  %s3246_s1 = smov 1   ;;  %s3247_s2 = smov 2  }
   0xb   :  { %v103_v2 = vunpack.c.l.bf16 %v3281_v0  ;;  %v104_v3 = vunpack.c.h.bf16 %v3281_v0  ;;  %v6342_v4 = vunpack.c.l.bf16 %v3283_v1  ;;  %v100_v5 = vunpack.c.h.bf16 %v3283_v1  ;;  %v3289_v6 = vld [vmem:[#allocation7 + $0x18] sm:$0xff]  ;;  %v3291_v7 = vld [vmem:[#allocation7 + $0x8] sm:$0xff]  ;;  %v3307_v14 = vld [vmem:[#allocation7 + $0x20] sm:$0xff]  ;;  %s3248_s22 = smov 4   ;;  %s3249_s23 = smov 8  }
   0xc   :  { %v105_v10 = vunpack.c.l.bf16 %v3289_v6  ;;  %v106_v11 = vunpack.c.h.bf16 %v3289_v6  ;;  %v101_v12 = vunpack.c.l.bf16 %v3291_v7  ;;  %v102_v13 = vunpack.c.h.bf16 %v3291_v7  ;;  %v3323_v20 = vld [vmem:[#allocation7 + $0x30] sm:$0xff]  ;;  %v3325_v21 = vld [vmem:[#allocation7 + $0x38] sm:$0xff]  ;;  %v3334_v26 = vld [vmem:[#allocation7 + $0x28] sm:$0xff]  ;;  %s3250_s24 = smov 16   ;;  %s3251_s25 = smov 32  }
   0xd   :  { %v3055_v8 = vpack.i.bf16 %v104_v3, %v103_v2  ;;  %v3045_v9 = vpack.i.bf16 %v100_v5, %v6342_v4  ;;  %v107_v15 = vunpack.c.l.bf16 %v3307_v14  ;;  %v108_v16 = vunpack.c.h.bf16 %v3307_v14  ;;  %v3338_v29 = vld [vmem:[#allocation7 + $0x40] sm:$0xff]  ;;  %v3352_v33 = vld [vmem:[#allocation7 + $0x48] sm:$0xff]  ;;  %v3355_v34 = vld [vmem:[#allocation7 + $0x50] sm:$0xff]  ;;  %s3252_s26 = smov 64  }
   0xe   :  { %v3060_v18 = vpack.i.bf16 %v106_v11, %v105_v10  ;;  %v3050_v19 = vpack.i.bf16 %v102_v13, %v101_v12  ;;  %v111_v22 = vunpack.c.l.bf16 %v3323_v20  ;;  %v112_v23 = vunpack.c.h.bf16 %v3323_v20  ;;  %v3369_v42 = vld [vmem:[#allocation7 + $0x58] sm:$0xff]  ;;  %v3379_v45 = vld [vmem:[#allocation7 + $0x60] sm:$0xff]  ;;  %v3382_v46 = vld [vmem:[#allocation7 + $0x68] sm:$0xff] }
   0xf   :  { %3056 = vrot.lane.b32.xlu1 %v3055_v8, %s3246_s1  ;;  %3046 = vrot.lane.b32.xlu0 %v3045_v9, %s3246_s1  ;;  %v3065_v17 = vpack.i.bf16 %v108_v16, %v107_v15  ;;  %v113_v24 = vunpack.c.l.bf16 %v3325_v21  ;;  %v114_v25 = vunpack.c.h.bf16 %v3325_v21  ;;  %v109_v27 = vunpack.c.l.bf16 %v3334_v26  ;;  %v3396_v54 = vld [vmem:[#allocation7 + $0x70] sm:$0xff]  ;;  %v3406_v57 = vld [vmem:[#allocation7 + $0x78] sm:$0xff] }
  0x10   :  { %v110_v28 = vunpack.c.h.bf16 %v3334_v26  ;;  %v3075_v31 = vpack.i.bf16 %v112_v23, %v111_v22  ;;  %v115_v35 = vunpack.c.l.bf16 %v3338_v29  ;;  %v116_v36 = vunpack.c.h.bf16 %v3338_v29 }
  0x11   :  { %3066 = vrot.lane.b32.xlu2 %v3065_v17, %s3246_s1  ;;  %v3080_v32 = vpack.i.bf16 %v114_v25, %v113_v24  ;;  %v117_v37 = vunpack.c.l.bf16 %v3352_v33  ;;  %v118_v38 = vunpack.c.h.bf16 %v3352_v33  ;;  %v119_v39 = vunpack.c.l.bf16 %v3355_v34 }
  0x12   :  { %v3070_v30 = vpack.i.bf16 %v110_v28, %v109_v27  ;;  %v120_v40 = vunpack.c.h.bf16 %v3355_v34  ;;  %v3085_v41 = vpack.i.bf16 %v116_v36, %v115_v35  ;;  %v121_v47 = vunpack.c.l.bf16 %v3369_v42 }
  0x13   :  { %v3090_v43 = vpack.i.bf16 %v118_v38, %v117_v37  ;;  %v122_v48 = vunpack.c.h.bf16 %v3369_v42  ;;  %v123_v49 = vunpack.c.l.bf16 %v3379_v45  ;;  %v124_v50 = vunpack.c.h.bf16 %v3379_v45 }
  0x14   :  { %v3095_v44 = vpack.i.bf16 %v120_v40, %v119_v39  ;;  %v125_v51 = vunpack.c.l.bf16 %v3382_v46  ;;  %v126_v52 = vunpack.c.h.bf16 %v3382_v46  ;;  %v127_v58 = vunpack.c.l.bf16 %v3396_v54 }
  0x15   :  { %v3100_v53 = vpack.i.bf16 %v122_v48, %v121_v47  ;;  %v3105_v55 = vpack.i.bf16 %v124_v50, %v123_v49  ;;  %v128_v59 = vunpack.c.h.bf16 %v3396_v54  ;;  %v129_v60 = vunpack.c.l.bf16 %v3406_v57 }
  0x16   :  { %v3110_v56 = vpack.i.bf16 %v126_v52, %v125_v51  ;;  %v6344_v61 = vunpack.c.h.bf16 %v3406_v57  ;;  %v134_v8 = vlaneseq  ;;  %vm46_vm11 = vcmask 7168  }
  0x17   :  { %3061 = vrot.lane.b32.xlu1 %v3060_v18, %s3246_s1  ;;  %3051 = vrot.lane.b32.xlu0 %v3050_v19, %s3246_s1  ;;  %v3115_v62 = vpack.i.bf16 %v128_v59, %v127_v58 }
  0x18   :  { %v3120_v63 = vpack.i.bf16 %v6344_v61, %v129_v60  ;;  %v3425_v9 = vand.u32 127, %v134_v8 }
  0x19   :  { %3071 = vrot.lane.b32.xlu2 %v3070_v30, %s3246_s1 }
  0x1a   :  { %vm231_vm0 = vcmp.lt.s32.totalorder %v3425_v9, 1  ;;  %vm264_vm1 = vcmp.ge.s32.totalorder %v3425_v9, 1  ;;  %vm424_vm2 = vcmp.lt.s32.totalorder %v3425_v9, 2  ;;  %vm457_vm3 = vcmp.ge.s32.totalorder %v3425_v9, 2 }
  0x1b   :  { %vm617_vm4 = vcmp.lt.s32.totalorder %v3425_v9, 4  ;;  %vm650_vm5 = vcmp.ge.s32.totalorder %v3425_v9, 4  ;;  %vm810_vm6 = vcmp.lt.s32.totalorder %v3425_v9, 8  ;;  %vm843_vm7 = vcmp.ge.s32.totalorder %v3425_v9, 8 }
  0x1c   :  { %vm1003_vm8 = vcmp.lt.s32.totalorder %v3425_v9, 16  ;;  %vm1036_vm9 = vcmp.ge.s32.totalorder %v3425_v9, 16  ;;  %vm1196_vm10 = vcmp.lt.s32.totalorder %v3425_v9, 32  ;;  %vm1229_vm12 = vcmp.ge.s32.totalorder %v3425_v9, 32 }
  0x1d   :  { %vm1389_vm13 = vcmp.lt.s32.totalorder %v3425_v9, 64  ;;  %vm1422_vm14 = vcmp.ge.s32.totalorder %v3425_v9, 64 }
  0x1f   :  { %3076 = vrot.lane.b32.xlu0 %v3075_v31, %s3246_s1  ;;  %3081 = vrot.lane.b32.xlu1 %v3080_v32, %s3246_s1 }
  0x21   :  { %3086 = vrot.lane.b32.xlu2 %v3085_v41, %s3246_s1 }
  0x27   :  { %3091 = vrot.lane.b32.xlu0 %v3090_v43, %s3246_s1  ;;  %3096 = vrot.lane.b32.xlu1 %v3095_v44, %s3246_s1 }
  0x29   :  { %3101 = vrot.lane.b32.xlu2 %v3100_v53, %s3246_s1 }
  0x2f   :  { %3106 = vrot.lane.b32.xlu0 %v3105_v55, %s3246_s1  ;;  %3111 = vrot.lane.b32.xlu1 %v3110_v56, %s3246_s1 }
  0x31   :  { %3116 = vrot.lane.b32.xlu2 %v3115_v62, %s3246_s1 }
  0x37   :  { %3121 = vrot.lane.b32.xlu0 %v3120_v63, %s3246_s1 }
  0x6b   :  { %v3067_v43 = vpop.permute.xlu2 %3066 }
  0x81   :  { %v3057_v17 = vpop.permute.xlu1 %3056  ;;  %v3427_v18 = vpop.permute.xlu0 %3046 }
  0x82   :  { %v3049_v19 = vunpack.i.h.bf16 %v3427_v18  ;;  %v6343_v30 = vunpack.i.l.bf16 %v3427_v18  ;;  %v3058_v41 = vunpack.i.l.bf16 %v3057_v17 }
  0x84   :  { %v262_v31 = vsel %vm231_vm0, %v6343_v30, %v3049_v19  ;;  %v3059_v30 = vunpack.i.h.bf16 %v3057_v17  ;;  %v3069_v17 = vunpack.i.h.bf16 %v3067_v43 }
  0x85   :  { %v3438_v32 = vadd.f32 %v262_v31, %v100_v5 }
  0x87   :  { %362 = vrot.lane.b32.xlu2 %v3438_v32, %s3247_s2 }
  0x89   :  { %v3052_v44 = vpop.permute.xlu0 %3051  ;;  %v3062_v56 = vpop.permute.xlu1 %3061 }
  0x8a   :  { %v3054_v53 = vunpack.i.h.bf16 %v3052_v44  ;;  %v3053_v55 = vunpack.i.l.bf16 %v3052_v44  ;;  %v3064_v8 = vunpack.i.h.bf16 %v3062_v56  ;;  %v3063_v61 = vunpack.i.l.bf16 %v3062_v56 }
  0x8c   :  { %v260_v62 = vsel %vm231_vm0, %v3053_v55, %v3054_v53  ;;  %v261_v63 = vsel %vm231_vm0, %v3049_v19, %v3053_v55  ;;  %v259_v5 = vsel %vm231_vm0, %v3054_v53, %v3058_v41  ;;  %v256_v7 = vsel %vm231_vm0, %v3063_v61, %v3064_v8 }
  0x8d   :  { %v3450_v31 = vadd.f32 %v260_v62, %v102_v13  ;;  %v3454_v4 = vadd.f32 %v261_v63, %v101_v12  ;;  %v3458_v44 = vadd.f32 %v259_v5, %v103_v2  ;;  %v257_v12 = vsel %vm231_vm0, %v3059_v30, %v3063_v61  ;;  %v3072_v13 = vpop.permute.xlu2 %3071 }
  0x8e   :  { %v258_v2 = vsel %vm231_vm0, %v3058_v41, %v3059_v30  ;;  %v3474_v19 = vadd.f32 %v256_v7, %v106_v11  ;;  %v3478_v53 = vadd.f32 %v257_v12, %v105_v10  ;;  %v3073_v56 = vunpack.i.l.bf16 %v3072_v13 }
  0x8f   :  { %366 = vrot.lane.b32.xlu1 %v3450_v31, %s3247_s2  ;;  %364 = vrot.lane.b32.xlu0 %v3454_v4, %s3247_s2  ;;  %v3482_v55 = vadd.f32 %v258_v2, %v104_v3  ;;  %v3068_v62 = vunpack.i.l.bf16 %v3067_v43  ;;  %v3074_v30 = vunpack.i.h.bf16 %v3072_v13 }
  0x90   :  { %368 = vrot.lane.b32.xlu2 %v3458_v44, %s3247_s2  ;;  %v253_v10 = vsel %vm231_vm0, %v3069_v17, %v3073_v56 }
  0x91   :  { %v254_v6 = vsel %vm231_vm0, %v3068_v62, %v3069_v17  ;;  %v255_v0 = vsel %vm231_vm0, %v3064_v8, %v3068_v62  ;;  %v3077_v3 = vpop.permute.xlu0 %3076  ;;  %v3502_v41 = vadd.f32 %v253_v10, %v109_v27  ;;  %v252_v27 = vsel %vm231_vm0, %v3073_v56, %v3074_v30  ;;  %v3082_v5 = vpop.permute.xlu1 %3081 }
  0x92   :  { %v3498_v11 = vadd.f32 %v254_v6, %v108_v16  ;;  %v3078_v61 = vunpack.i.l.bf16 %v3077_v3  ;;  %v3079_v43 = vunpack.i.h.bf16 %v3077_v3  ;;  %v3506_v63 = vadd.f32 %v255_v0, %v107_v15 }
  0x93   :  { %v3526_v7 = vadd.f32 %v252_v27, %v110_v28  ;;  %v3084_v12 = vunpack.i.h.bf16 %v3082_v5  ;;  %v3083_v17 = vunpack.i.l.bf16 %v3082_v5 }
  0x94   :  { %v251_v16 = vsel %vm231_vm0, %v3074_v30, %v3078_v61  ;;  %v250_v14 = vsel %vm231_vm0, %v3078_v61, %v3079_v43 }
  0x95   :  { %v3087_v15 = vpop.permute.xlu2 %3086  ;;  %v3522_v8 = vadd.f32 %v251_v16, %v111_v22  ;;  %v3530_v2 = vadd.f32 %v250_v14, %v112_v23  ;;  %v248_v22 = vsel %vm231_vm0, %v3083_v17, %v3084_v12  ;;  %v249_v20 = vsel %vm231_vm0, %v3079_v43, %v3083_v17 }
  0x96   :  { %v3088_v13 = vunpack.i.l.bf16 %v3087_v15  ;;  %v3546_v28 = vadd.f32 %v248_v22, %v114_v25  ;;  %v3089_v62 = vunpack.i.h.bf16 %v3087_v15  ;;  %v3554_v0 = vadd.f32 %v249_v20, %v113_v24 }
  0x97   :  { %372 = vrot.lane.b32.xlu1 %v3478_v53, %s3247_s2  ;;  %370 = vrot.lane.b32.xlu0 %v3482_v55, %s3247_s2 }
  0x98   :  { %374 = vrot.lane.b32.xlu2 %v3474_v19, %s3247_s2  ;;  %v247_v26 = vsel %vm231_vm0, %v3084_v12, %v3088_v13 }
  0x99   :  { %v3092_v23 = vpop.permute.xlu0 %3091  ;;  %v3550_v6 = vadd.f32 %v247_v26, %v115_v35  ;;  %v246_v35 = vsel %vm231_vm0, %v3088_v13, %v3089_v62  ;;  %v3097_v3 = vpop.permute.xlu1 %3096 }
  0x9a   :  { %v3093_v56 = vunpack.i.l.bf16 %v3092_v23  ;;  %v3094_v10 = vunpack.i.h.bf16 %v3092_v23  ;;  %v3574_v30 = vadd.f32 %v246_v35, %v116_v36  ;;  %v3099_v43 = vunpack.i.h.bf16 %v3097_v3 }
  0x9b   :  { %v3098_v14 = vunpack.i.l.bf16 %v3097_v3 }
  0x9c   :  { %v245_v25 = vsel %vm231_vm0, %v3089_v62, %v3093_v56  ;;  %v244_v21 = vsel %vm231_vm0, %v3093_v56, %v3094_v10 }
  0x9d   :  { %v3102_v24 = vpop.permute.xlu2 %3101  ;;  %v3570_v61 = vadd.f32 %v245_v25, %v117_v37  ;;  %v3578_v16 = vadd.f32 %v244_v21, %v118_v38  ;;  %v242_v29 = vsel %vm231_vm0, %v3098_v14, %v3099_v43  ;;  %v243_v33 = vsel %vm231_vm0, %v3094_v10, %v3098_v14 }
  0x9e   :  { %v3103_v27 = vunpack.i.l.bf16 %v3102_v24  ;;  %v3594_v38 = vadd.f32 %v242_v29, %v120_v40  ;;  %v3104_v5 = vunpack.i.h.bf16 %v3102_v24  ;;  %v3602_v17 = vadd.f32 %v243_v33, %v119_v39 }
  0x9f   :  { %378 = vrot.lane.b32.xlu1 %v3498_v11, %s3247_s2  ;;  %376 = vrot.lane.b32.xlu0 %v3506_v63, %s3247_s2  ;;  %v6377_v29 = vunpack.i.l.bf16 %v3427_v18 }
  0xa0   :  { %380 = vrot.lane.b32.xlu2 %v3502_v41, %s3247_s2  ;;  %v241_v36 = vsel %vm231_vm0, %v3099_v43, %v3103_v27 }
  0xa1   :  { %v3107_v37 = vpop.permute.xlu0 %3106  ;;  %v3598_v12 = vadd.f32 %v241_v36, %v121_v47  ;;  %v240_v47 = vsel %vm231_vm0, %v3103_v27, %v3104_v5  ;;  %v3112_v22 = vpop.permute.xlu1 %3111  ;;  %v6376_v27 = vunpack.c.h.bf16 %v3406_v57  ;;  %v6378_v57 = vunpack.c.l.bf16 %v3283_v1 }
  0xa2   :  { %v3108_v15 = vunpack.i.l.bf16 %v3107_v37  ;;  %v3109_v13 = vunpack.i.h.bf16 %v3107_v37  ;;  %v3622_v20 = vadd.f32 %v240_v47, %v122_v48  ;;  %v3114_v23 = vunpack.i.h.bf16 %v3112_v22 }
  0xa3   :  { %v3113_v10 = vunpack.i.l.bf16 %v3112_v22 }
  0xa4   :  { %v239_v40 = vsel %vm231_vm0, %v3104_v5, %v3108_v15  ;;  %v238_v34 = vsel %vm231_vm0, %v3108_v15, %v3109_v13 }
  0xa5   :  { %v3117_v39 = vpop.permute.xlu2 %3116  ;;  %v3618_v26 = vadd.f32 %v239_v40, %v123_v49  ;;  %v3626_v56 = vadd.f32 %v238_v34, %v124_v50  ;;  %v236_v42 = vsel %vm231_vm0, %v3113_v10, %v3114_v23  ;;  %v237_v45 = vsel %vm231_vm0, %v3109_v13, %v3113_v10 }
  0xa6   :  { %v3118_v62 = vunpack.i.l.bf16 %v3117_v39  ;;  %v3642_v50 = vadd.f32 %v236_v42, %v126_v52  ;;  %v3119_v35 = vunpack.i.h.bf16 %v3117_v39  ;;  %v3650_v24 = vadd.f32 %v237_v45, %v125_v51 }
  0xa7   :  { %384 = vrot.lane.b32.xlu1 %v3522_v8, %s3247_s2  ;;  %382 = vrot.lane.b32.xlu0 %v3526_v7, %s3247_s2 }
  0xa8   :  { %386 = vrot.lane.b32.xlu2 %v3530_v2, %s3247_s2  ;;  %v235_v48 = vsel %vm231_vm0, %v3114_v23, %v3118_v62 }
  0xa9   :  { %v3122_v49 = vpop.permute.xlu0 %3121  ;;  %v3646_v21 = vadd.f32 %v235_v48, %v127_v58  ;;  %v234_v58 = vsel %vm231_vm0, %v3118_v62, %v3119_v35 }
  0xaa   :  { %v3123_v25 = vunpack.i.l.bf16 %v3122_v49  ;;  %v3124_v3 = vunpack.i.h.bf16 %v3122_v49  ;;  %v3670_v43 = vadd.f32 %v234_v58, %v128_v59 }
  0xac   :  { %v233_v52 = vsel %vm231_vm0, %v3119_v35, %v3123_v25  ;;  %v232_v46 = vsel %vm231_vm0, %v3123_v25, %v3124_v3 }
  0xad   :  { %v3666_v51 = vadd.f32 %v233_v52, %v129_v60  ;;  %v3674_v14 = vadd.f32 %v232_v46, %v6376_v27  ;;  %v263_v60 = vsel %vm231_vm0, %v3124_v3, %v6377_v29 }
  0xae   :  { %v296_v54 = vsel %vm264_vm1, %v263_v60, 0.0 }
  0xaf   :  { %390 = vrot.lane.b32.xlu1 %v3546_v28, %s3247_s2  ;;  %388 = vrot.lane.b32.xlu0 %v3554_v0, %s3247_s2  ;;  %v3689_v59 = vadd.f32 %v296_v54, %v6378_v57 }
  0xb0   :  { %392 = vrot.lane.b32.xlu2 %v3550_v6, %s3247_s2 }
  0xb7   :  { %396 = vrot.lane.b32.xlu1 %v3570_v61, %s3247_s2  ;;  %394 = vrot.lane.b32.xlu0 %v3574_v30, %s3247_s2 }
  0xb8   :  { %398 = vrot.lane.b32.xlu2 %v3578_v16, %s3247_s2 }
  0xbf   :  { %402 = vrot.lane.b32.xlu1 %v3594_v38, %s3247_s2  ;;  %400 = vrot.lane.b32.xlu0 %v3602_v17, %s3247_s2 }
  0xc0   :  { %404 = vrot.lane.b32.xlu2 %v3598_v12, %s3247_s2 }
  0xc7   :  { %408 = vrot.lane.b32.xlu1 %v3618_v26, %s3247_s2  ;;  %406 = vrot.lane.b32.xlu0 %v3622_v20, %s3247_s2 }
  0xc8   :  { %410 = vrot.lane.b32.xlu2 %v3626_v56, %s3247_s2 }
  0xcf   :  { %414 = vrot.lane.b32.xlu1 %v3642_v50, %s3247_s2  ;;  %412 = vrot.lane.b32.xlu0 %v3650_v24, %s3247_s2 }
  0xd0   :  { %416 = vrot.lane.b32.xlu2 %v3646_v21, %s3247_s2 }
  0xd7   :  { %420 = vrot.lane.b32.xlu1 %v3666_v51, %s3247_s2  ;;  %418 = vrot.lane.b32.xlu0 %v3670_v43, %s3247_s2 }
  0xd8   :  { %422 = vrot.lane.b32.xlu2 %v3674_v14, %s3247_s2 }
  0xdf   :  { %360 = vrot.lane.b32.xlu1 %v3689_v59, %s3247_s2 }
  0xe1   :  { %v3693_v36 = vpop.permute.xlu2 %362 }
  0xea   :  { %v369_v33 = vpop.permute.xlu2 %368 }
  0xf2   :  { %v375_v18 = vpop.permute.xlu2 %374 }
  0xfa   :  { %v381_v39 = vpop.permute.xlu2 %380 }
 0x101   :  { %v367_v37 = vpop.permute.xlu1 %366  ;;  %v365_v15 = vpop.permute.xlu0 %364 }
 0x102   :  { %v452_v5 = vsel %vm424_vm2, %v367_v37, %v369_v33  ;;  %v453_v13 = vsel %vm424_vm2, %v365_v15, %v367_v37  ;;  %v454_v1 = vsel %vm424_vm2, %v3693_v36, %v365_v15  ;;  %v387_v48 = vpop.permute.xlu2 %386 }
 0x103   :  { %v3704_v40 = vadd.f32 %v453_v13, %v3450_v31  ;;  %v3707_v47 = vadd.f32 %v454_v1, %v3454_v4  ;;  %v3710_v34 = vadd.f32 %v452_v5, %v3458_v44 }
 0x105   :  { %559 = vrot.lane.b32.xlu0 %v3704_v40, %s3248_s22  ;;  %557 = vrot.lane.b32.xlu2 %v3707_v47, %s3248_s22 }
 0x106   :  { %561 = vrot.lane.b32.xlu1 %v3710_v34, %s3248_s22 }
 0x109   :  { %v373_v22 = vpop.permute.xlu1 %372  ;;  %v371_v31 = vpop.permute.xlu0 %370 }
 0x10a   :  { %v449_v4 = vsel %vm424_vm2, %v373_v22, %v375_v18  ;;  %v450_v44 = vsel %vm424_vm2, %v371_v31, %v373_v22  ;;  %v451_v23 = vsel %vm424_vm2, %v369_v33, %v371_v31  ;;  %v393_v52 = vpop.permute.xlu2 %392 }
 0x10b   :  { %v3725_v62 = vadd.f32 %v450_v44, %v3478_v53  ;;  %v3728_v10 = vadd.f32 %v451_v23, %v3482_v55  ;;  %v3731_v42 = vadd.f32 %v449_v4, %v3474_v19 }
 0x10d   :  { %565 = vrot.lane.b32.xlu0 %v3725_v62, %s3248_s22  ;;  %563 = vrot.lane.b32.xlu2 %v3728_v10, %s3248_s22 }
 0x10e   :  { %567 = vrot.lane.b32.xlu1 %v3731_v42, %s3248_s22 }
 0x111   :  { %v379_v45 = vpop.permute.xlu1 %378  ;;  %v377_v49 = vpop.permute.xlu0 %376 }
 0x112   :  { %v446_v53 = vsel %vm424_vm2, %v379_v45, %v381_v39  ;;  %v447_v55 = vsel %vm424_vm2, %v377_v49, %v379_v45  ;;  %v448_v19 = vsel %vm424_vm2, %v375_v18, %v377_v49  ;;  %v399_v33 = vpop.permute.xlu2 %398 }
 0x113   :  { %v3746_v25 = vadd.f32 %v447_v55, %v3498_v11  ;;  %v3749_v35 = vadd.f32 %v448_v19, %v3506_v63  ;;  %v3752_v3 = vadd.f32 %v446_v53, %v3502_v41 }
 0x115   :  { %571 = vrot.lane.b32.xlu0 %v3746_v25, %s3248_s22  ;;  %569 = vrot.lane.b32.xlu2 %v3749_v35, %s3248_s22 }
 0x116   :  { %573 = vrot.lane.b32.xlu1 %v3752_v3, %s3248_s22 }
 0x119   :  { %v385_v58 = vpop.permute.xlu1 %384  ;;  %v383_v46 = vpop.permute.xlu0 %382 }
 0x11a   :  { %v443_v11 = vsel %vm424_vm2, %v385_v58, %v387_v48  ;;  %v444_v63 = vsel %vm424_vm2, %v383_v46, %v385_v58  ;;  %v445_v41 = vsel %vm424_vm2, %v381_v39, %v383_v46  ;;  %v405_v31 = vpop.permute.xlu2 %404 }
 0x11b   :  { %v3767_v27 = vadd.f32 %v444_v63, %v3522_v8  ;;  %v3770_v29 = vadd.f32 %v445_v41, %v3526_v7  ;;  %v3773_v60 = vadd.f32 %v443_v11, %v3530_v2 }
 0x11d   :  { %577 = vrot.lane.b32.xlu0 %v3767_v27, %s3248_s22  ;;  %575 = vrot.lane.b32.xlu2 %v3770_v29, %s3248_s22 }
 0x11e   :  { %579 = vrot.lane.b32.xlu1 %v3773_v60, %s3248_s22 }
 0x121   :  { %v391_v54 = vpop.permute.xlu1 %390  ;;  %v389_v57 = vpop.permute.xlu0 %388 }
 0x122   :  { %v440_v8 = vsel %vm424_vm2, %v391_v54, %v393_v52  ;;  %v441_v7 = vsel %vm424_vm2, %v389_v57, %v391_v54  ;;  %v442_v2 = vsel %vm424_vm2, %v387_v48, %v389_v57  ;;  %v411_v49 = vpop.permute.xlu2 %410 }
 0x123   :  { %v3788_v18 = vadd.f32 %v441_v7, %v3546_v28  ;;  %v3791_v37 = vadd.f32 %v442_v2, %v3554_v0  ;;  %v3794_v15 = vadd.f32 %v440_v8, %v3550_v6 }
 0x125   :  { %583 = vrot.lane.b32.xlu0 %v3788_v18, %s3248_s22  ;;  %581 = vrot.lane.b32.xlu2 %v3791_v37, %s3248_s22 }
 0x126   :  { %585 = vrot.lane.b32.xlu1 %v3794_v15, %s3248_s22 }
 0x129   :  { %v397_v5 = vpop.permute.xlu1 %396  ;;  %v395_v13 = vpop.permute.xlu0 %394 }
 0x12a   :  { %v437_v28 = vsel %vm424_vm2, %v397_v5, %v399_v33  ;;  %v438_v0 = vsel %vm424_vm2, %v395_v13, %v397_v5  ;;  %v439_v6 = vsel %vm424_vm2, %v393_v52, %v395_v13  ;;  %v417_v46 = vpop.permute.xlu2 %416 }
 0x12b   :  { %v3809_v1 = vadd.f32 %v438_v0, %v3570_v61  ;;  %v3812_v39 = vadd.f32 %v439_v6, %v3574_v30  ;;  %v3815_v22 = vadd.f32 %v437_v28, %v3578_v16 }
 0x12d   :  { %589 = vrot.lane.b32.xlu0 %v3809_v1, %s3248_s22  ;;  %587 = vrot.lane.b32.xlu2 %v3812_v39, %s3248_s22 }
 0x12e   :  { %591 = vrot.lane.b32.xlu1 %v3815_v22, %s3248_s22 }
 0x131   :  { %v403_v4 = vpop.permute.xlu1 %402  ;;  %v401_v44 = vpop.permute.xlu0 %400 }
 0x132   :  { %v434_v61 = vsel %vm424_vm2, %v403_v4, %v405_v31  ;;  %v435_v30 = vsel %vm424_vm2, %v401_v44, %v403_v4  ;;  %v436_v16 = vsel %vm424_vm2, %v399_v33, %v401_v44  ;;  %v423_v33 = vpop.permute.xlu2 %422 }
 0x133   :  { %v3830_v23 = vadd.f32 %v435_v30, %v3594_v38  ;;  %v3833_v48 = vadd.f32 %v436_v16, %v3602_v17  ;;  %v3836_v45 = vadd.f32 %v434_v61, %v3598_v12 }
 0x135   :  { %595 = vrot.lane.b32.xlu0 %v3830_v23, %s3248_s22  ;;  %593 = vrot.lane.b32.xlu2 %v3833_v48, %s3248_s22 }
 0x136   :  { %597 = vrot.lane.b32.xlu1 %v3836_v45, %s3248_s22 }
 0x139   :  { %v409_v53 = vpop.permute.xlu1 %408  ;;  %v407_v55 = vpop.permute.xlu0 %406 }
 0x13a   :  { %v431_v38 = vsel %vm424_vm2, %v409_v53, %v411_v49  ;;  %v432_v17 = vsel %vm424_vm2, %v407_v55, %v409_v53  ;;  %v433_v12 = vsel %vm424_vm2, %v405_v31, %v407_v55 }
 0x13b   :  { %v3851_v19 = vadd.f32 %v432_v17, %v3618_v26  ;;  %v3854_v52 = vadd.f32 %v433_v12, %v3622_v20  ;;  %v3857_v58 = vadd.f32 %v431_v38, %v3626_v56 }
 0x13d   :  { %601 = vrot.lane.b32.xlu0 %v3851_v19, %s3248_s22  ;;  %599 = vrot.lane.b32.xlu2 %v3854_v52, %s3248_s22 }
 0x13e   :  { %603 = vrot.lane.b32.xlu1 %v3857_v58, %s3248_s22 }
 0x141   :  { %v415_v11 = vpop.permute.xlu1 %414  ;;  %v413_v63 = vpop.permute.xlu0 %412 }
 0x142   :  { %v428_v26 = vsel %vm424_vm2, %v415_v11, %v417_v46  ;;  %v429_v20 = vsel %vm424_vm2, %v413_v63, %v415_v11  ;;  %v430_v56 = vsel %vm424_vm2, %v411_v49, %v413_v63 }
 0x143   :  { %v3872_v41 = vadd.f32 %v429_v20, %v3642_v50  ;;  %v3875_v54 = vadd.f32 %v430_v56, %v3650_v24  ;;  %v3878_v57 = vadd.f32 %v428_v26, %v3646_v21 }
 0x145   :  { %607 = vrot.lane.b32.xlu0 %v3872_v41, %s3248_s22  ;;  %605 = vrot.lane.b32.xlu2 %v3875_v54, %s3248_s22 }
 0x146   :  { %609 = vrot.lane.b32.xlu1 %v3878_v57, %s3248_s22 }
 0x149   :  { %v421_v8 = vpop.permute.xlu1 %420  ;;  %v419_v7 = vpop.permute.xlu0 %418 }
 0x14a   :  { %v425_v50 = vsel %vm424_vm2, %v421_v8, %v423_v33  ;;  %v426_v24 = vsel %vm424_vm2, %v419_v7, %v421_v8  ;;  %v427_v21 = vsel %vm424_vm2, %v417_v46, %v419_v7 }
 0x14b   :  { %v3893_v2 = vadd.f32 %v426_v24, %v3666_v51  ;;  %v3896_v5 = vadd.f32 %v427_v21, %v3670_v43  ;;  %v3899_v13 = vadd.f32 %v425_v50, %v3674_v14 }
 0x14d   :  { %613 = vrot.lane.b32.xlu0 %v3893_v2, %s3248_s22  ;;  %611 = vrot.lane.b32.xlu2 %v3896_v5, %s3248_s22 }
 0x14e   :  { %615 = vrot.lane.b32.xlu1 %v3899_v13, %s3248_s22 }
 0x151   :  { %v361_v28 = vpop.permute.xlu1 %360 }
 0x152   :  { %v455_v51 = vsel %vm424_vm2, %v361_v28, %v3693_v36  ;;  %v456_v43 = vsel %vm424_vm2, %v423_v33, %v361_v28 }
 0x153   :  { %v489_v14 = vsel %vm457_vm3, %v456_v43, 0.0  ;;  %v3914_v0 = vadd.f32 %v455_v51, %v3438_v32 }
 0x154   :  { %v3917_v6 = vadd.f32 %v489_v14, %v3689_v59 }
 0x156   :  { %555 = vrot.lane.b32.xlu1 %v3914_v0, %s3248_s22  ;;  %553 = vrot.lane.b32.xlu0 %v3917_v6, %s3248_s22 }
 0x15f   :  { %v3923_v31 = vpop.permute.xlu2 %557 }
 0x167   :  { %v564_v4 = vpop.permute.xlu2 %563 }
 0x16f   :  { %v570_v36 = vpop.permute.xlu2 %569 }
 0x177   :  { %v560_v44 = vpop.permute.xlu0 %559  ;;  %v576_v55 = vpop.permute.xlu2 %575 }
 0x178   :  { %v646_v32 = vsel %vm617_vm4, %v3923_v31, %v560_v44  ;;  %v562_v61 = vpop.permute.xlu1 %561 }
 0x179   :  { %v644_v59 = vsel %vm617_vm4, %v562_v61, %v564_v4  ;;  %v645_v30 = vsel %vm617_vm4, %v560_v44, %v562_v61  ;;  %v3934_v16 = vadd.f32 %v646_v32, %v3704_v40 }
 0x17a   :  { %v3937_v49 = vadd.f32 %v645_v30, %v3710_v34  ;;  %v3940_v53 = vadd.f32 %v644_v59, %v3728_v10 }
 0x17b   :  { %752 = vrot.lane.b32.xlu2 %v3934_v16, %s3249_s23 }
 0x17c   :  { %754 = vrot.lane.b32.xlu0 %v3937_v49, %s3249_s23  ;;  %756 = vrot.lane.b32.xlu1 %v3940_v53, %s3249_s23 }
 0x17f   :  { %v566_v38 = vpop.permute.xlu0 %565  ;;  %v582_v63 = vpop.permute.xlu2 %581 }
 0x180   :  { %v643_v40 = vsel %vm617_vm4, %v564_v4, %v566_v38  ;;  %v568_v34 = vpop.permute.xlu1 %567 }
 0x181   :  { %v641_v10 = vsel %vm617_vm4, %v568_v34, %v570_v36  ;;  %v642_v17 = vsel %vm617_vm4, %v566_v38, %v568_v34  ;;  %v3955_v12 = vadd.f32 %v643_v40, %v3725_v62 }
 0x182   :  { %v3958_v46 = vadd.f32 %v642_v17, %v3731_v42  ;;  %v3961_v11 = vadd.f32 %v641_v10, %v3749_v35 }
 0x183   :  { %758 = vrot.lane.b32.xlu2 %v3955_v12, %s3249_s23 }
 0x184   :  { %760 = vrot.lane.b32.xlu0 %v3958_v46, %s3249_s23  ;;  %762 = vrot.lane.b32.xlu1 %v3961_v11, %s3249_s23 }
 0x187   :  { %v572_v26 = vpop.permute.xlu0 %571  ;;  %v588_v50 = vpop.permute.xlu2 %587 }
 0x188   :  { %v640_v62 = vsel %vm617_vm4, %v570_v36, %v572_v26  ;;  %v574_v20 = vpop.permute.xlu1 %573 }
 0x189   :  { %v638_v42 = vsel %vm617_vm4, %v574_v20, %v576_v55  ;;  %v639_v35 = vsel %vm617_vm4, %v572_v26, %v574_v20  ;;  %v3976_v56 = vadd.f32 %v640_v62, %v3746_v25 }
 0x18a   :  { %v3979_v33 = vadd.f32 %v639_v35, %v3752_v3  ;;  %v3982_v8 = vadd.f32 %v638_v42, %v3770_v29 }
 0x18b   :  { %764 = vrot.lane.b32.xlu2 %v3976_v56, %s3249_s23 }
 0x18c   :  { %766 = vrot.lane.b32.xlu0 %v3979_v33, %s3249_s23  ;;  %768 = vrot.lane.b32.xlu1 %v3982_v8, %s3249_s23 }
 0x18f   :  { %v578_v7 = vpop.permute.xlu0 %577  ;;  %v594_v36 = vpop.permute.xlu2 %593 }
 0x190   :  { %v637_v25 = vsel %vm617_vm4, %v576_v55, %v578_v7  ;;  %v580_v24 = vpop.permute.xlu1 %579 }
 0x191   :  { %v635_v3 = vsel %vm617_vm4, %v580_v24, %v582_v63  ;;  %v636_v29 = vsel %vm617_vm4, %v578_v7, %v580_v24  ;;  %v3997_v21 = vadd.f32 %v637_v25, %v3767_v27 }
 0x192   :  { %v4000_v28 = vadd.f32 %v636_v29, %v3773_v60  ;;  %v4003_v51 = vadd.f32 %v635_v3, %v3791_v37 }
 0x193   :  { %770 = vrot.lane.b32.xlu2 %v3997_v21, %s3249_s23 }
 0x194   :  { %772 = vrot.lane.b32.xlu0 %v4000_v28, %s3249_s23  ;;  %774 = vrot.lane.b32.xlu1 %v4003_v51, %s3249_s23 }
 0x197   :  { %v584_v43 = vpop.permute.xlu0 %583  ;;  %v600_v40 = vpop.permute.xlu2 %599 }
 0x198   :  { %v634_v27 = vsel %vm617_vm4, %v582_v63, %v584_v43  ;;  %v586_v14 = vpop.permute.xlu1 %585 }
 0x199   :  { %v632_v60 = vsel %vm617_vm4, %v586_v14, %v588_v50  ;;  %v633_v37 = vsel %vm617_vm4, %v584_v43, %v586_v14  ;;  %v4018_v4 = vadd.f32 %v634_v27, %v3788_v18 }
 0x19a   :  { %v4021_v44 = vadd.f32 %v633_v37, %v3794_v15  ;;  %v4024_v32 = vadd.f32 %v632_v60, %v3812_v39 }
 0x19b   :  { %776 = vrot.lane.b32.xlu2 %v4018_v4, %s3249_s23 }
 0x19c   :  { %778 = vrot.lane.b32.xlu0 %v4021_v44, %s3249_s23  ;;  %780 = vrot.lane.b32.xlu1 %v4024_v32, %s3249_s23 }
 0x19f   :  { %v590_v61 = vpop.permute.xlu0 %589  ;;  %v606_v62 = vpop.permute.xlu2 %605 }
 0x1a0   :  { %v631_v18 = vsel %vm617_vm4, %v588_v50, %v590_v61  ;;  %v592_v59 = vpop.permute.xlu1 %591 }
 0x1a1   :  { %v629_v15 = vsel %vm617_vm4, %v592_v59, %v594_v36  ;;  %v630_v39 = vsel %vm617_vm4, %v590_v61, %v592_v59  ;;  %v4039_v30 = vadd.f32 %v631_v18, %v3809_v1 }
 0x1a2   :  { %v4042_v55 = vadd.f32 %v630_v39, %v3815_v22  ;;  %v4045_v38 = vadd.f32 %v629_v15, %v3833_v48 }
 0x1a3   :  { %782 = vrot.lane.b32.xlu2 %v4039_v30, %s3249_s23 }
 0x1a4   :  { %784 = vrot.lane.b32.xlu0 %v4042_v55, %s3249_s23  ;;  %786 = vrot.lane.b32.xlu1 %v4045_v38, %s3249_s23 }
 0x1a7   :  { %v596_v34 = vpop.permute.xlu0 %595  ;;  %v612_v24 = vpop.permute.xlu2 %611 }
 0x1a8   :  { %v628_v1 = vsel %vm617_vm4, %v594_v36, %v596_v34  ;;  %v598_v10 = vpop.permute.xlu1 %597 }
 0x1a9   :  { %v626_v22 = vsel %vm617_vm4, %v598_v10, %v600_v40  ;;  %v627_v48 = vsel %vm617_vm4, %v596_v34, %v598_v10  ;;  %v4060_v17 = vadd.f32 %v628_v1, %v3830_v23 }
 0x1aa   :  { %v4063_v63 = vadd.f32 %v627_v48, %v3836_v45  ;;  %v4066_v26 = vadd.f32 %v626_v22, %v3854_v52 }
 0x1ab   :  { %788 = vrot.lane.b32.xlu2 %v4060_v17, %s3249_s23 }
 0x1ac   :  { %790 = vrot.lane.b32.xlu0 %v4063_v63, %s3249_s23  ;;  %792 = vrot.lane.b32.xlu1 %v4066_v26, %s3249_s23 }
 0x1af   :  { %v602_v20 = vpop.permute.xlu0 %601 }
 0x1b0   :  { %v625_v23 = vsel %vm617_vm4, %v600_v40, %v602_v20  ;;  %v604_v42 = vpop.permute.xlu1 %603 }
 0x1b1   :  { %v623_v45 = vsel %vm617_vm4, %v604_v42, %v606_v62  ;;  %v624_v52 = vsel %vm617_vm4, %v602_v20, %v604_v42  ;;  %v4081_v35 = vadd.f32 %v625_v23, %v3851_v19 }
 0x1b2   :  { %v4084_v7 = vadd.f32 %v624_v52, %v3857_v58  ;;  %v4087_v50 = vadd.f32 %v623_v45, %v3875_v54 }
 0x1b3   :  { %794 = vrot.lane.b32.xlu2 %v4081_v35, %s3249_s23 }
 0x1b4   :  { %796 = vrot.lane.b32.xlu0 %v4084_v7, %s3249_s23  ;;  %798 = vrot.lane.b32.xlu1 %v4087_v50, %s3249_s23 }
 0x1b7   :  { %v608_v25 = vpop.permute.xlu0 %607 }
 0x1b8   :  { %v622_v19 = vsel %vm617_vm4, %v606_v62, %v608_v25  ;;  %v610_v3 = vpop.permute.xlu1 %609 }
 0x1b9   :  { %v620_v58 = vsel %vm617_vm4, %v610_v3, %v612_v24  ;;  %v621_v54 = vsel %vm617_vm4, %v608_v25, %v610_v3  ;;  %v4102_v29 = vadd.f32 %v622_v19, %v3872_v41 }
 0x1ba   :  { %v4105_v43 = vadd.f32 %v621_v54, %v3878_v57  ;;  %v4108_v27 = vadd.f32 %v620_v58, %v3896_v5 }
 0x1bb   :  { %800 = vrot.lane.b32.xlu2 %v4102_v29, %s3249_s23 }
 0x1bc   :  { %802 = vrot.lane.b32.xlu0 %v4105_v43, %s3249_s23  ;;  %804 = vrot.lane.b32.xlu1 %v4108_v27, %s3249_s23 }
 0x1bf   :  { %v614_v14 = vpop.permute.xlu0 %613 }
 0x1c0   :  { %v619_v41 = vsel %vm617_vm4, %v612_v24, %v614_v14  ;;  %v616_v60 = vpop.permute.xlu1 %615 }
 0x1c1   :  { %v618_v57 = vsel %vm617_vm4, %v614_v14, %v616_v60  ;;  %v4121_v5 = vadd.f32 %v619_v41, %v3893_v2 }
 0x1c2   :  { %v4124_v37 = vadd.f32 %v618_v57, %v3899_v13 }
 0x1c3   :  { %806 = vrot.lane.b32.xlu2 %v4121_v5, %s3249_s23 }
 0x1c4   :  { %808 = vrot.lane.b32.xlu0 %v4124_v37, %s3249_s23 }
 0x1c8   :  { %v556_v36 = vpop.permute.xlu1 %555  ;;  %v554_v61 = vpop.permute.xlu0 %553 }
 0x1c9   :  { %v647_v18 = vsel %vm617_vm4, %v556_v36, %v3923_v31  ;;  %v648_v2 = vsel %vm617_vm4, %v554_v61, %v556_v36  ;;  %v649_v13 = vsel %vm617_vm4, %v616_v60, %v554_v61 }
 0x1ca   :  { %v682_v59 = vsel %vm650_vm5, %v649_v13, 0.0  ;;  %v4139_v15 = vadd.f32 %v647_v18, %v3707_v47  ;;  %v4142_v39 = vadd.f32 %v648_v2, %v3914_v0 }
 0x1cb   :  { %v4145_v40 = vadd.f32 %v682_v59, %v3917_v6 }
 0x1cc   :  { %750 = vrot.lane.b32.xlu1 %v4139_v15, %s3249_s23  ;;  %748 = vrot.lane.b32.xlu0 %v4142_v39, %s3249_s23 }
 0x1cd   :  { %746 = vrot.lane.b32.xlu2 %v4145_v40, %s3249_s23 }
 0x1d5   :  { %v4153_v31 = vpop.permute.xlu2 %752 }
 0x1dd   :  { %v759_v34 = vpop.permute.xlu2 %758 }
 0x1e5   :  { %v765_v47 = vpop.permute.xlu2 %764 }
 0x1ed   :  { %v771_v23 = vpop.permute.xlu2 %770 }
 0x1ee   :  { %v755_v0 = vpop.permute.xlu0 %754  ;;  %v757_v1 = vpop.permute.xlu1 %756 }
 0x1ef   :  { %v838_v6 = vsel %vm810_vm6, %v4153_v31, %v755_v0  ;;  %v836_v10 = vsel %vm810_vm6, %v757_v1, %v759_v34  ;;  %v837_v22 = vsel %vm810_vm6, %v755_v0, %v757_v1 }
 0x1f0   :  { %v4164_v48 = vadd.f32 %v837_v22, %v3940_v53  ;;  %v4167_v62 = vadd.f32 %v838_v6, %v3937_v49  ;;  %v4170_v20 = vadd.f32 %v836_v10, %v3955_v12 }
 0x1f2   :  { %949 = vrot.lane.b32.xlu0 %v4164_v48, %s3250_s24  ;;  %947 = vrot.lane.b32.xlu2 %v4167_v62, %s3250_s24 }
 0x1f3   :  { %951 = vrot.lane.b32.xlu1 %v4170_v20, %s3250_s24 }
 0x1f5   :  { %v777_v19 = vpop.permute.xlu2 %776 }
 0x1f6   :  { %v761_v42 = vpop.permute.xlu0 %760  ;;  %v763_v53 = vpop.permute.xlu1 %762 }
 0x1f7   :  { %v835_v49 = vsel %vm810_vm6, %v759_v34, %v761_v42  ;;  %v833_v12 = vsel %vm810_vm6, %v763_v53, %v765_v47  ;;  %v834_v45 = vsel %vm810_vm6, %v761_v42, %v763_v53 }
 0x1f8   :  { %v4185_v52 = vadd.f32 %v834_v45, %v3961_v11  ;;  %v4188_v25 = vadd.f32 %v835_v49, %v3958_v46  ;;  %v4191_v24 = vadd.f32 %v833_v12, %v3976_v56 }
 0x1fa   :  { %955 = vrot.lane.b32.xlu0 %v4185_v52, %s3250_s24  ;;  %953 = vrot.lane.b32.xlu2 %v4188_v25, %s3250_s24 }
 0x1fb   :  { %957 = vrot.lane.b32.xlu1 %v4191_v24, %s3250_s24 }
 0x1fd   :  { %v783_v60 = vpop.permute.xlu2 %782 }
 0x1fe   :  { %v767_v3 = vpop.permute.xlu0 %766  ;;  %v769_v58 = vpop.permute.xlu1 %768 }
 0x1ff   :  { %v832_v11 = vsel %vm810_vm6, %v765_v47, %v767_v3  ;;  %v830_v46 = vsel %vm810_vm6, %v769_v58, %v771_v23  ;;  %v831_v56 = vsel %vm810_vm6, %v767_v3, %v769_v58 }
 0x200   :  { %v4206_v54 = vadd.f32 %v831_v56, %v3982_v8  ;;  %v4209_v14 = vadd.f32 %v832_v11, %v3979_v33  ;;  %v4212_v41 = vadd.f32 %v830_v46, %v3997_v21 }
 0x202   :  { %961 = vrot.lane.b32.xlu0 %v4206_v54, %s3250_s24  ;;  %959 = vrot.lane.b32.xlu2 %v4209_v14, %s3250_s24 }
 0x203   :  { %963 = vrot.lane.b32.xlu1 %v4212_v41, %s3250_s24 }
 0x205   :  { %v789_v34 = vpop.permute.xlu2 %788 }
 0x206   :  { %v773_v57 = vpop.permute.xlu0 %772  ;;  %v775_v36 = vpop.permute.xlu1 %774 }
 0x207   :  { %v829_v8 = vsel %vm810_vm6, %v771_v23, %v773_v57  ;;  %v827_v33 = vsel %vm810_vm6, %v775_v36, %v777_v19  ;;  %v828_v21 = vsel %vm810_vm6, %v773_v57, %v775_v36 }
 0x208   :  { %v4227_v61 = vadd.f32 %v828_v21, %v4003_v51  ;;  %v4230_v18 = vadd.f32 %v829_v8, %v4000_v28  ;;  %v4233_v2 = vadd.f32 %v827_v33, %v4018_v4 }
 0x20a   :  { %967 = vrot.lane.b32.xlu0 %v4227_v61, %s3250_s24  ;;  %965 = vrot.lane.b32.xlu2 %v4230_v18, %s3250_s24 }
 0x20b   :  { %969 = vrot.lane.b32.xlu1 %v4233_v2, %s3250_s24 }
 0x20d   :  { %v795_v53 = vpop.permute.xlu2 %794 }
 0x20e   :  { %v779_v13 = vpop.permute.xlu0 %778  ;;  %v781_v59 = vpop.permute.xlu1 %780 }
 0x20f   :  { %v826_v51 = vsel %vm810_vm6, %v777_v19, %v779_v13  ;;  %v824_v28 = vsel %vm810_vm6, %v781_v59, %v783_v60  ;;  %v825_v4 = vsel %vm810_vm6, %v779_v13, %v781_v59 }
 0x210   :  { %v4248_v47 = vadd.f32 %v825_v4, %v4024_v32  ;;  %v4251_v0 = vadd.f32 %v826_v51, %v4021_v44  ;;  %v4254_v1 = vadd.f32 %v824_v28, %v4039_v30 }
 0x212   :  { %973 = vrot.lane.b32.xlu0 %v4248_v47, %s3250_s24  ;;  %971 = vrot.lane.b32.xlu2 %v4251_v0, %s3250_s24 }
 0x213   :  { %975 = vrot.lane.b32.xlu1 %v4254_v1, %s3250_s24 }
 0x215   :  { %v801_v58 = vpop.permute.xlu2 %800 }
 0x216   :  { %v785_v6 = vpop.permute.xlu0 %784  ;;  %v787_v10 = vpop.permute.xlu1 %786 }
 0x217   :  { %v823_v32 = vsel %vm810_vm6, %v783_v60, %v785_v6  ;;  %v821_v44 = vsel %vm810_vm6, %v787_v10, %v789_v34  ;;  %v822_v30 = vsel %vm810_vm6, %v785_v6, %v787_v10 }
 0x218   :  { %v4269_v22 = vadd.f32 %v822_v30, %v4045_v38  ;;  %v4272_v23 = vadd.f32 %v823_v32, %v4042_v55  ;;  %v4275_v42 = vadd.f32 %v821_v44, %v4060_v17 }
 0x21a   :  { %979 = vrot.lane.b32.xlu0 %v4269_v22, %s3250_s24  ;;  %977 = vrot.lane.b32.xlu2 %v4272_v23, %s3250_s24 }
 0x21b   :  { %981 = vrot.lane.b32.xlu1 %v4275_v42, %s3250_s24 }
 0x21d   :  { %v807_v36 = vpop.permute.xlu2 %806 }
 0x21e   :  { %v791_v49 = vpop.permute.xlu0 %790  ;;  %v793_v12 = vpop.permute.xlu1 %792 }
 0x21f   :  { %v820_v38 = vsel %vm810_vm6, %v789_v34, %v791_v49  ;;  %v818_v55 = vsel %vm810_vm6, %v793_v12, %v795_v53  ;;  %v819_v17 = vsel %vm810_vm6, %v791_v49, %v793_v12 }
 0x220   :  { %v4290_v45 = vadd.f32 %v820_v38, %v4063_v63  ;;  %v4293_v19 = vadd.f32 %v819_v17, %v4066_v26  ;;  %v4296_v3 = vadd.f32 %v818_v55, %v4081_v35 }
 0x222   :  { %985 = vrot.lane.b32.xlu0 %v4293_v19, %s3250_s24  ;;  %983 = vrot.lane.b32.xlu2 %v4290_v45, %s3250_s24 }
 0x223   :  { %987 = vrot.lane.b32.xlu1 %v4296_v3, %s3250_s24 }
 0x226   :  { %v797_v11 = vpop.permute.xlu0 %796  ;;  %v799_v46 = vpop.permute.xlu1 %798 }
 0x227   :  { %v817_v63 = vsel %vm810_vm6, %v795_v53, %v797_v11  ;;  %v815_v26 = vsel %vm810_vm6, %v799_v46, %v801_v58  ;;  %v816_v35 = vsel %vm810_vm6, %v797_v11, %v799_v46 }
 0x228   :  { %v4311_v56 = vadd.f32 %v817_v63, %v4084_v7  ;;  %v4314_v60 = vadd.f32 %v816_v35, %v4087_v50  ;;  %v4317_v57 = vadd.f32 %v815_v26, %v4102_v29 }
 0x22a   :  { %991 = vrot.lane.b32.xlu0 %v4314_v60, %s3250_s24  ;;  %989 = vrot.lane.b32.xlu2 %v4311_v56, %s3250_s24 }
 0x22b   :  { %993 = vrot.lane.b32.xlu1 %v4317_v57, %s3250_s24 }
 0x22e   :  { %v803_v8 = vpop.permute.xlu0 %802  ;;  %v805_v33 = vpop.permute.xlu1 %804 }
 0x22f   :  { %v814_v7 = vsel %vm810_vm6, %v801_v58, %v803_v8  ;;  %v812_v50 = vsel %vm810_vm6, %v805_v33, %v807_v36  ;;  %v813_v29 = vsel %vm810_vm6, %v803_v8, %v805_v33 }
 0x230   :  { %v4332_v21 = vadd.f32 %v814_v7, %v4105_v43  ;;  %v4335_v13 = vadd.f32 %v813_v29, %v4108_v27  ;;  %v4338_v59 = vadd.f32 %v812_v50, %v4121_v5  ;;  %v747_v27 = vpop.permute.xlu2 %746 }
 0x232   :  { %997 = vrot.lane.b32.xlu0 %v4335_v13, %s3250_s24  ;;  %995 = vrot.lane.b32.xlu2 %v4332_v21, %s3250_s24 }
 0x233   :  { %999 = vrot.lane.b32.xlu1 %v4338_v59, %s3250_s24 }
 0x236   :  { %v809_v34 = vpop.permute.xlu0 %808 }
 0x237   :  { %v811_v43 = vsel %vm810_vm6, %v807_v36, %v809_v34 }
 0x238   :  { %v4349_v51 = vadd.f32 %v811_v43, %v4124_v37 }
 0x23a   :  { %1001 = vrot.lane.b32.xlu2 %v4349_v51, %s3250_s24 }
 0x23e   :  { %v751_v5 = vpop.permute.xlu1 %750  ;;  %v749_v28 = vpop.permute.xlu0 %748 }
 0x23f   :  { %v839_v4 = vsel %vm810_vm6, %v751_v5, %v4153_v31  ;;  %v840_v6 = vsel %vm810_vm6, %v749_v28, %v751_v5  ;;  %v841_v10 = vsel %vm810_vm6, %v747_v27, %v749_v28  ;;  %v842_v31 = vsel %vm810_vm6, %v809_v34, %v747_v27 }
 0x240   :  { %v4361_v32 = vadd.f32 %v839_v4, %v3934_v16  ;;  %v4364_v37 = vadd.f32 %v841_v10, %v4142_v39  ;;  %v4367_v44 = vadd.f32 %v840_v6, %v4139_v15  ;;  %v875_v16 = vsel %vm843_vm7, %v842_v31, 0.0 }
 0x241   :  { %v4379_v39 = vadd.f32 %v875_v16, %v4145_v40 }
 0x242   :  { %945 = vrot.lane.b32.xlu1 %v4361_v32, %s3250_s24  ;;  %943 = vrot.lane.b32.xlu0 %v4367_v44, %s3250_s24 }
 0x243   :  { %941 = vrot.lane.b32.xlu2 %v4364_v37, %s3250_s24 }
 0x24a   :  { %939 = vrot.lane.b32.xlu1 %v4379_v39, %s3250_s24 }
 0x24c   :  { %v4383_v15 = vpop.permute.xlu2 %947 }
 0x254   :  { %v954_v30 = vpop.permute.xlu2 %953 }
 0x25c   :  { %v960_v53 = vpop.permute.xlu2 %959 }
 0x264   :  { %v950_v49 = vpop.permute.xlu0 %949  ;;  %v966_v46 = vpop.permute.xlu2 %965 }
 0x265   :  { %v1030_v12 = vsel %vm1003_vm8, %v4383_v15, %v950_v49  ;;  %v952_v38 = vpop.permute.xlu1 %951 }
 0x266   :  { %v4390_v55 = vadd.f32 %v1030_v12, %v4164_v48  ;;  %v1028_v40 = vsel %vm1003_vm8, %v952_v38, %v954_v30  ;;  %v1029_v17 = vsel %vm1003_vm8, %v950_v49, %v952_v38 }
 0x267   :  { %v4397_v58 = vadd.f32 %v1029_v17, %v4170_v20  ;;  %v4400_v11 = vadd.f32 %v1028_v40, %v4188_v25 }
 0x268   :  { %1142 = vrot.lane.b32.xlu2 %v4390_v55, %s3251_s25 }
 0x269   :  { %1144 = vrot.lane.b32.xlu0 %v4397_v58, %s3251_s25  ;;  %1146 = vrot.lane.b32.xlu1 %v4400_v11, %s3251_s25 }
 0x26c   :  { %v956_v48 = vpop.permute.xlu0 %955 }
 0x26d   :  { %v1027_v63 = vsel %vm1003_vm8, %v954_v30, %v956_v48  ;;  %v958_v20 = vpop.permute.xlu1 %957 }
 0x26e   :  { %v4411_v26 = vadd.f32 %v1027_v63, %v4185_v52  ;;  %v1025_v25 = vsel %vm1003_vm8, %v958_v20, %v960_v53  ;;  %v1026_v35 = vsel %vm1003_vm8, %v956_v48, %v958_v20  ;;  %v972_v52 = vpop.permute.xlu2 %971 }
 0x26f   :  { %v4418_v36 = vadd.f32 %v1026_v35, %v4191_v24  ;;  %v4421_v8 = vadd.f32 %v1025_v25, %v4209_v14 }
 0x270   :  { %1148 = vrot.lane.b32.xlu2 %v4411_v26, %s3251_s25 }
 0x271   :  { %1150 = vrot.lane.b32.xlu0 %v4418_v36, %s3251_s25  ;;  %1152 = vrot.lane.b32.xlu1 %v4421_v8, %s3251_s25 }
 0x274   :  { %v962_v33 = vpop.permute.xlu0 %961 }
 0x275   :  { %v1024_v7 = vsel %vm1003_vm8, %v960_v53, %v962_v33  ;;  %v964_v50 = vpop.permute.xlu1 %963 }
 0x276   :  { %v4432_v24 = vadd.f32 %v1024_v7, %v4206_v54  ;;  %v1022_v14 = vsel %vm1003_vm8, %v964_v50, %v966_v46  ;;  %v1023_v29 = vsel %vm1003_vm8, %v962_v33, %v964_v50  ;;  %v978_v27 = vpop.permute.xlu2 %977 }
 0x277   :  { %v4439_v34 = vadd.f32 %v1023_v29, %v4212_v41  ;;  %v4442_v43 = vadd.f32 %v1022_v14, %v4230_v18 }
 0x278   :  { %1154 = vrot.lane.b32.xlu2 %v4432_v24, %s3251_s25 }
 0x279   :  { %1156 = vrot.lane.b32.xlu0 %v4439_v34, %s3251_s25  ;;  %1158 = vrot.lane.b32.xlu1 %v4442_v43, %s3251_s25 }
 0x27c   :  { %v968_v54 = vpop.permute.xlu0 %967 }
 0x27d   :  { %v1021_v5 = vsel %vm1003_vm8, %v966_v46, %v968_v54  ;;  %v970_v28 = vpop.permute.xlu1 %969 }
 0x27e   :  { %v4453_v41 = vadd.f32 %v1021_v5, %v4227_v61  ;;  %v1019_v18 = vsel %vm1003_vm8, %v970_v28, %v972_v52  ;;  %v1020_v4 = vsel %vm1003_vm8, %v968_v54, %v970_v28  ;;  %v984_v30 = vpop.permute.xlu2 %983 }
 0x27f   :  { %v4460_v6 = vadd.f32 %v1020_v4, %v4233_v2  ;;  %v4463_v10 = vadd.f32 %v1019_v18, %v4251_v0 }
 0x280   :  { %1160 = vrot.lane.b32.xlu2 %v4453_v41, %s3251_s25 }
 0x281   :  { %1162 = vrot.lane.b32.xlu0 %v4460_v6, %s3251_s25  ;;  %1164 = vrot.lane.b32.xlu1 %v4463_v10, %s3251_s25 }
 0x284   :  { %v974_v61 = vpop.permute.xlu0 %973 }
 0x285   :  { %v1018_v31 = vsel %vm1003_vm8, %v972_v52, %v974_v61  ;;  %v976_v16 = vpop.permute.xlu1 %975 }
 0x286   :  { %v4474_v2 = vadd.f32 %v1018_v31, %v4248_v47  ;;  %v1017_v0 = vsel %vm1003_vm8, %v974_v61, %v976_v16  ;;  %v1016_v49 = vsel %vm1003_vm8, %v976_v16, %v978_v27  ;;  %v990_v40 = vpop.permute.xlu2 %989 }
 0x287   :  { %v4479_v53 = vadd.f32 %v1017_v0, %v4254_v1  ;;  %v4488_v47 = vadd.f32 %v1016_v49, %v4272_v23 }
 0x288   :  { %1166 = vrot.lane.b32.xlu2 %v4474_v2, %s3251_s25 }
 0x289   :  { %1168 = vrot.lane.b32.xlu0 %v4479_v53, %s3251_s25 }
 0x28c   :  { %v980_v12 = vpop.permute.xlu0 %979 }
 0x28d   :  { %v982_v38 = vpop.permute.xlu1 %981 }
 0x28e   :  { %v1013_v1 = vsel %vm1003_vm8, %v982_v38, %v984_v30  ;;  %v996_v63 = vpop.permute.xlu2 %995  ;;  %v1014_v5 = vsel %vm1003_vm8, %v980_v12, %v982_v38 }
 0x28f   :  { %v4495_v48 = vadd.f32 %v1013_v1, %v4290_v45 }
 0x291   :  { %1170 = vrot.lane.b32.xlu0 %v4488_v47, %s3251_s25 }
 0x294   :  { %v986_v17 = vpop.permute.xlu0 %985 }
 0x295   :  { %v988_v46 = vpop.permute.xlu1 %987 }
 0x296   :  { %v1010_v23 = vsel %vm1003_vm8, %v988_v46, %v990_v40  ;;  %v1002_v33 = vpop.permute.xlu2 %1001  ;;  %v1011_v28 = vsel %vm1003_vm8, %v986_v17, %v988_v46 }
 0x297   :  { %v4502_v35 = vadd.f32 %v1010_v23, %v4311_v56  ;;  %v4551_v61 = vadd.f32 %v1011_v28, %v4296_v3 }
 0x299   :  { %1176 = vrot.lane.b32.xlu0 %v4495_v48, %s3251_s25 }
 0x29c   :  { %v992_v20 = vpop.permute.xlu0 %991 }
 0x29d   :  { %v994_v25 = vpop.permute.xlu1 %993  ;;  %v1009_v3 = vsel %vm1003_vm8, %v990_v40, %v992_v20 }
 0x29e   :  { %v1007_v52 = vsel %vm1003_vm8, %v994_v25, %v996_v63  ;;  %v942_v38 = vpop.permute.xlu2 %941 }
 0x29f   :  { %v4513_v29 = vadd.f32 %v1007_v52, %v4332_v21  ;;  %v1015_v21 = vsel %vm1003_vm8, %v978_v27, %v980_v12  ;;  %v1012_v27 = vsel %vm1003_vm8, %v984_v30, %v986_v17  ;;  %v4576_v12 = vadd.f32 %v1009_v3, %v4314_v60 }
 0x2a0   :  { %v4554_v31 = vadd.f32 %v1012_v27, %v4293_v19 }
 0x2a1   :  { %1182 = vrot.lane.b32.xlu0 %v4502_v35, %s3251_s25 }
 0x2a4   :  { %v998_v45 = vpop.permute.xlu0 %997 }
 0x2a5   :  { %v1000_v7 = vpop.permute.xlu1 %999 }
 0x2a6   :  { %v1004_v50 = vsel %vm1003_vm8, %v1000_v7, %v1002_v33  ;;  %v1005_v14 = vsel %vm1003_vm8, %v998_v45, %v1000_v7 }
 0x2a7   :  { %v4516_v56 = vadd.f32 %v1005_v14, %v4338_v59  ;;  %v4519_v54 = vadd.f32 %v1004_v50, %v4349_v51  ;;  %v4532_v59 = vadd.f32 %v1014_v5, %v4275_v42  ;;  %v4535_v51 = vadd.f32 %v1015_v21, %v4269_v22 }
 0x2a9   :  { %1192 = vrot.lane.b32.xlu2 %v4516_v56, %s3251_s25  ;;  %1188 = vrot.lane.b32.xlu0 %v4513_v29, %s3251_s25 }
 0x2aa   :  { %1194 = vrot.lane.b32.xlu1 %v4519_v54, %s3251_s25 }
 0x2b1   :  { %1174 = vrot.lane.b32.xlu2 %v4532_v59, %s3251_s25 }
 0x2b2   :  { %1172 = vrot.lane.b32.xlu1 %v4535_v51, %s3251_s25 }
 0x2b4   :  { %v946_v18 = vpop.permute.xlu1 %945  ;;  %v944_v4 = vpop.permute.xlu0 %943 }
 0x2b5   :  { %v1032_v42 = vsel %vm1003_vm8, %v944_v4, %v946_v18  ;;  %v1031_v17 = vsel %vm1003_vm8, %v946_v18, %v4383_v15 }
 0x2b6   :  { %v4548_v22 = vadd.f32 %v1032_v42, %v4361_v32  ;;  %v1008_v32 = vsel %vm1003_vm8, %v992_v20, %v994_v25  ;;  %v4604_v46 = vadd.f32 %v1031_v17, %v4167_v62 }
 0x2b7   :  { %v4570_v30 = vadd.f32 %v1008_v32, %v4317_v57  ;;  %v1033_v57 = vsel %vm1003_vm8, %v942_v38, %v944_v4 }
 0x2b8   :  { %1138 = vrot.lane.b32.xlu0 %v4548_v22, %s3251_s25  ;;  %v4589_v40 = vadd.f32 %v1033_v57, %v4367_v44 }
 0x2b9   :  { %1180 = vrot.lane.b32.xlu2 %v4551_v61, %s3251_s25 }
 0x2ba   :  { %1178 = vrot.lane.b32.xlu1 %v4554_v31, %s3251_s25 }
 0x2bc   :  { %v940_v16 = vpop.permute.xlu1 %939 }
 0x2bd   :  { %v1035_v19 = vsel %vm1003_vm8, %v1002_v33, %v940_v16  ;;  %v1034_v44 = vsel %vm1003_vm8, %v940_v16, %v942_v38 }
 0x2be   :  { %v1068_v0 = vsel %vm1036_vm9, %v1035_v19, 0.0 }
 0x2bf   :  { %v4573_v49 = vadd.f32 %v1068_v0, %v4379_v39  ;;  %v1006_v39 = vsel %vm1003_vm8, %v996_v63, %v998_v45  ;;  %v4611_v63 = vadd.f32 %v1034_v44, %v4364_v37 }
 0x2c0   :  { %v4592_v60 = vadd.f32 %v1006_v39, %v4335_v13 }
 0x2c1   :  { %1186 = vrot.lane.b32.xlu2 %v4570_v30, %s3251_s25  ;;  %1132 = vrot.lane.b32.xlu0 %v4573_v49, %s3251_s25 }
 0x2c2   :  { %1184 = vrot.lane.b32.xlu1 %v4576_v12, %s3251_s25  ;;  %v4596_v1 = vpop.permute.xlu2 %1142 }
 0x2c9   :  { %1136 = vrot.lane.b32.xlu2 %v4589_v40, %s3251_s25 }
 0x2ca   :  { %1190 = vrot.lane.b32.xlu1 %v4592_v60, %s3251_s25  ;;  %v1149_v13 = vpop.permute.xlu2 %1148 }
 0x2d2   :  { %1140 = vrot.lane.b32.xlu1 %v4604_v46, %s3251_s25  ;;  %v1155_v52 = vpop.permute.xlu2 %1154 }
 0x2da   :  { %1134 = vrot.lane.b32.xlu1 %v4611_v63, %s3251_s25 }
 0x2db   :  { %v1145_v23 = vpop.permute.xlu0 %1144  ;;  %v1147_v15 = vpop.permute.xlu1 %1146 }
 0x2dc   :  { %v1220_v62 = vsel %vm1196_vm10, %v1147_v15, %v1149_v13  ;;  %v1221_v20 = vsel %vm1196_vm10, %v1145_v23, %v1147_v15 }
 0x2dd   :  { %v4621_v25 = vadd.f32 %v1220_v62, %v4411_v26  ;;  %v4626_v37 = vadd.f32 %v1221_v20, %v4400_v11  ;;  %v1161_v11 = vpop.permute.xlu2 %1160 }
 0x2df   :  { %1341 = vrot.lane.b32.xlu2 %v4621_v25, %s3252_s26 }
 0x2e2   :  { %1339 = vrot.lane.b32.xlu1 %v4626_v37, %s3252_s26 }
 0x2e3   :  { %v1151_v45 = vpop.permute.xlu0 %1150  ;;  %v1153_v33 = vpop.permute.xlu1 %1152 }
 0x2e4   :  { %v1219_v7 = vsel %vm1196_vm10, %v1149_v13, %v1151_v45  ;;  %v1217_v26 = vsel %vm1196_vm10, %v1153_v33, %v1155_v52  ;;  %v1218_v50 = vsel %vm1196_vm10, %v1151_v45, %v1153_v33 }
 0x2e5   :  { %v4637_v14 = vadd.f32 %v1217_v26, %v4432_v24  ;;  %v4642_v5 = vadd.f32 %v1218_v50, %v4421_v8  ;;  %v1167_v42 = vpop.permute.xlu2 %1166  ;;  %v1222_v50 = vsel %vm1196_vm10, %v4596_v1, %v1145_v23 }
 0x2e7   :  { %1347 = vrot.lane.b32.xlu2 %v4637_v14, %s3252_s26 }
 0x2ea   :  { %1345 = vrot.lane.b32.xlu1 %v4642_v5, %s3252_s26 }
 0x2eb   :  { %v1157_v21 = vpop.permute.xlu0 %1156  ;;  %v1159_v28 = vpop.permute.xlu1 %1158 }
 0x2ec   :  { %v1216_v18 = vsel %vm1196_vm10, %v1155_v52, %v1157_v21  ;;  %v1214_v4 = vsel %vm1196_vm10, %v1159_v28, %v1161_v11  ;;  %v1215_v24 = vsel %vm1196_vm10, %v1157_v21, %v1159_v28  ;;  %v4720_v21 = vadd.f32 %v1222_v50, %v4397_v58 }
 0x2ed   :  { %v4653_v27 = vadd.f32 %v1214_v4, %v4453_v41  ;;  %v4658_v8 = vadd.f32 %v1215_v24, %v4442_v43  ;;  %v4732_v4 = vadd.f32 %v1219_v7, %v4418_v36  ;;  %v3253_v36 = vmov 0.0  }
 0x2ee   :  { %47 = vst.msk [vmem:[#allocation2] sm:$0xff] %vm46_vm11, %v3253_v36  ;;  %v3254_v7 = vmov 0  }
 0x2ef   :  { %1353 = vrot.lane.b32.xlu2 %v4653_v27, %s3252_s26  ;;  %48 = vst.msk [vmem:[#allocation3] sm:$0xff] %vm46_vm11, %v3253_v36  ;;  %3125 = vset.pattern.permute.xlu1 %v3254_v7 }
 0x2f0   :  { %50 = vst.msk [vmem:[%s6341_s3] sm:$0xff] %vm46_vm11, %v3253_v36  ;;  %3126 = vset.pattern.permute.xlu2 %v3254_v7  ;;  %3127 = vset.pattern.permute.xlu0 %v3254_v7 }
 0x2f2   :  { %1351 = vrot.lane.b32.xlu1 %v4658_v8, %s3252_s26 }
 0x2f3   :  { %v1163_v32 = vpop.permute.xlu0 %1162  ;;  %v1165_v16 = vpop.permute.xlu1 %1164 }
 0x2f4   :  { %v1213_v3 = vsel %vm1196_vm10, %v1161_v11, %v1163_v32  ;;  %v1211_v19 = vsel %vm1196_vm10, %v1165_v16, %v1167_v42  ;;  %v1212_v41 = vsel %vm1196_vm10, %v1163_v32, %v1165_v16 }
 0x2f5   :  { %v4669_v0 = vadd.f32 %v1211_v19, %v4474_v2  ;;  %v4674_v43 = vadd.f32 %v1212_v41, %v4463_v10 }
 0x2f7   :  { %1359 = vrot.lane.b32.xlu2 %v4669_v0, %s3252_s26 }
 0x2fa   :  { %1357 = vrot.lane.b32.xlu1 %v4674_v43, %s3252_s26 }
 0x2fb   :  { %v1169_v38 = vpop.permute.xlu0 %1168 }
 0x2fc   :  { %v1210_v57 = vsel %vm1196_vm10, %v1167_v42, %v1169_v38  ;;  %v4744_v42 = vadd.f32 %v1216_v18, %v4439_v34 }
 0x303   :  { %v1171_v39 = vpop.permute.xlu0 %1170  ;;  %v4680_v17 = vpop.permute.xlu2 %1192 }
 0x304   :  { %v1209_v2 = vsel %vm1196_vm10, %v1169_v38, %v1171_v39 }
 0x305   :  { %v4685_v13 = vadd.f32 %v1209_v2, %v4488_v47 }
 0x307   :  { %1363 = vrot.lane.b32.xlu1 %v4685_v13, %s3252_s26 }
 0x30b   :  { %v1177_v10 = vpop.permute.xlu0 %1176  ;;  %v1175_v44 = vpop.permute.xlu2 %1174 }
 0x30c   :  { %v1206_v15 = vsel %vm1196_vm10, %v1175_v44, %v1177_v10 }
 0x30d   :  { %v4692_v62 = vadd.f32 %v1206_v15, %v4495_v48 }
 0x30f   :  { %1369 = vrot.lane.b32.xlu1 %v4692_v62, %s3252_s26 }
 0x313   :  { %v1183_v20 = vpop.permute.xlu0 %1182  ;;  %v4696_v52 = vpop.permute.xlu2 %1180 }
 0x314   :  { %v1203_v47 = vsel %vm1196_vm10, %v4696_v52, %v1183_v20 }
 0x315   :  { %v4702_v45 = vadd.f32 %v1203_v47, %v4502_v35 }
 0x317   :  { %1375 = vrot.lane.b32.xlu1 %v4702_v45, %s3252_s26 }
 0x31b   :  { %v1187_v18 = vpop.permute.xlu2 %1186 }
 0x31c   :  { %v1195_v33 = vpop.permute.xlu1 %1194 }
 0x31d   :  { %v1197_v48 = vsel %vm1196_vm10, %v4680_v17, %v1195_v33 }
 0x31e   :  { %v4710_v26 = vadd.f32 %v1197_v48, %v4519_v54 }
 0x320   :  { %6379 = vst [vmem:[#allocation11_spill] sm:$0xff] %v4710_v26  ;;  %1387 = vrot.lane.b32.xlu0 %v4710_v26, %s3252_s26 }
 0x324   :  { %v1173_v35 = vpop.permute.xlu1 %1172 }
 0x325   :  { %v1208_v11 = vsel %vm1196_vm10, %v1171_v39, %v1173_v35 }
 0x326   :  { %v4723_v28 = vadd.f32 %v1208_v11, %v4535_v51  ;;  %v132_v11 = vld [vmem:[#allocation2] sm:$0xff] }
 0x328   :  { %1365 = vrot.lane.b32.xlu2 %v4723_v28, %s3252_s26  ;;  %1337 = vrot.lane.b32.xlu0 %v4720_v21, %s3252_s26 }
 0x32c   :  { %v1179_v54 = vpop.permute.xlu1 %1178 }
 0x32d   :  { %v1205_v23 = vsel %vm1196_vm10, %v1177_v10, %v1179_v54 }
 0x32e   :  { %v4735_v24 = vadd.f32 %v1205_v23, %v4554_v31  ;;  %v1189_v31 = vpop.permute.xlu0 %1188 }
 0x330   :  { %1371 = vrot.lane.b32.xlu2 %v4735_v24, %s3252_s26  ;;  %1343 = vrot.lane.b32.xlu0 %v4732_v4, %s3252_s26 }
 0x334   :  { %v1185_v58 = vpop.permute.xlu1 %1184 }
 0x335   :  { %v1202_v51 = vsel %vm1196_vm10, %v1183_v20, %v1185_v58 }
 0x336   :  { %v4747_v32 = vadd.f32 %v1202_v51, %v4576_v12  ;;  %v4760_v12 = vadd.f32 %v1213_v3, %v4460_v6  ;;  %v1139_v16 = vpop.permute.xlu0 %1138  ;;  %v4770_v6 = vadd.f32 %v1210_v57, %v4479_v53  ;;  %v1137_v53 = vpop.permute.xlu2 %1136 }
 0x337   :  { %v1225_v23 = vsel %vm1196_vm10, %v1137_v53, %v1139_v16 }
 0x338   :  { %1377 = vrot.lane.b32.xlu2 %v4747_v32, %s3252_s26  ;;  %1349 = vrot.lane.b32.xlu0 %v4744_v42, %s3252_s26 }
 0x33c   :  { %v1191_v34 = vpop.permute.xlu1 %1190 }
 0x33d   :  { %v1198_v51 = vsel %vm1196_vm10, %v1191_v34, %v4680_v17 }
 0x33e   :  { %v1133_v57 = vpop.permute.xlu0 %1132 }
 0x340   :  { %1355 = vrot.lane.b32.xlu0 %v4760_v12, %s3252_s26 }
 0x344   :  { %v1141_v19 = vpop.permute.xlu1 %1140 }
 0x345   :  { %v1223_v41 = vsel %vm1196_vm10, %v1141_v19, %v4596_v1  ;;  %v1224_v38 = vsel %vm1196_vm10, %v1139_v16, %v1141_v19  ;;  %v1207_v1 = vsel %vm1196_vm10, %v1173_v35, %v1175_v44  ;;  %v1228_v44 = vsel %vm1196_vm10, %v1195_v33, %v1133_v57 }
 0x346   :  { %v4773_v3 = vadd.f32 %v1224_v38, %v4604_v46  ;;  %v4776_v39 = vadd.f32 %v1223_v41, %v4390_v55  ;;  %v4791_v10 = vadd.f32 %v1207_v1, %v4532_v59  ;;  %v1204_v59 = vsel %vm1196_vm10, %v1179_v54, %v4696_v52  ;;  %v1342_v52 = vpop.permute.xlu2 %1341 }
 0x347   :  { %v4814_v47 = vadd.f32 %v1204_v59, %v4551_v61  ;;  %v1201_v61 = vsel %vm1196_vm10, %v1185_v58, %v1187_v18  ;;  %v4848_v58 = vadd.f32 %v1225_v23, %v4548_v22 }
 0x348   :  { %6380 = vst [vmem:[#allocation12_spill] sm:$0xff] %v4773_v3  ;;  %1335 = vrot.lane.b32.xlu2 %v4776_v39, %s3252_s26  ;;  %1361 = vrot.lane.b32.xlu0 %v4770_v6, %s3252_s26 }
 0x349   :  { %1333 = vrot.lane.b32.xlu1 %v4773_v3, %s3252_s26 }
 0x34c   :  { %v1135_v2 = vpop.permute.xlu1 %1134 }
 0x34d   :  { %v1226_v46 = vsel %vm1196_vm10, %v1135_v2, %v1137_v53  ;;  %v1227_v55 = vsel %vm1196_vm10, %v1133_v57, %v1135_v2 }
 0x34e   :  { %v4794_v15 = vadd.f32 %v1227_v55, %v4611_v63  ;;  %v4797_v20 = vadd.f32 %v1226_v46, %v4589_v40  ;;  %v1261_v40 = vsel %vm1229_vm12, %v1228_v44, 0.0  ;;  %v1200_v63 = vsel %vm1196_vm10, %v1187_v18, %v1189_v31 }
 0x34f   :  { %v4817_v33 = vadd.f32 %v1261_v40, %v4573_v49  ;;  %v4820_v48 = vadd.f32 %v1200_v63, %v4513_v29  ;;  %v1199_v49 = vsel %vm1196_vm10, %v1189_v31, %v1191_v34  ;;  %v4833_v29 = vadd.f32 %v1201_v61, %v4570_v30  ;;  %v131_v30 = vld [vmem:[%s6338_s0] sm:$0xff] }
 0x350   :  { %1367 = vrot.lane.b32.xlu0 %v4791_v10, %s3252_s26  ;;  %1329 = vrot.lane.b32.xlu2 %v4797_v20, %s3252_s26  ;;  %v4836_v35 = vadd.f32 %v1199_v49, %v4592_v60  ;;  %v1348_v60 = vpop.permute.xlu2 %1347  ;;  %v4856_v31 = vadd.f32 %v1198_v51, %v4516_v56 }
 0x351   :  { %1327 = vrot.lane.b32.xlu1 %v4794_v15, %s3252_s26 }
 0x352   :  { %6381 = vst [vmem:[#allocation13_spill] sm:$0xff] %v4856_v31 }
 0x354   :  { %v1340_v50 = vpop.permute.xlu1 %1339 }
 0x355   :  { %v1413_v55 = vsel %vm1389_vm13, %v1340_v50, %v1342_v52 }
 0x358   :  { %1373 = vrot.lane.b32.xlu0 %v4814_v47, %s3252_s26  ;;  %1325 = vrot.lane.b32.xlu2 %v4817_v33, %s3252_s26  ;;  %v1354_v7 = vpop.permute.xlu2 %1353 }
 0x359   :  { %1381 = vrot.lane.b32.xlu1 %v4820_v48, %s3252_s26 }
 0x35c   :  { %v1346_v54 = vpop.permute.xlu1 %1345 }
 0x360   :  { %1379 = vrot.lane.b32.xlu0 %v4833_v29, %s3252_s26  ;;  %1383 = vrot.lane.b32.xlu2 %v4836_v35, %s3252_s26  ;;  %v4860_v22 = vpop.permute.xlu2 %1359 }
 0x361   :  { %2000 = vperm.xlu1 %3125, %v132_v11   ;;  %v1494_v11 = vadd.f32 %v1413_v55, %v4621_v25 }
 0x364   :  { %v1352_v36 = vpop.permute.xlu1 %1351 }
 0x365   :  { %v1407_v25 = vsel %vm1389_vm13, %v1352_v36, %v1354_v7 }
 0x368   :  { %1331 = vrot.lane.b32.xlu0 %v4848_v58, %s3252_s26  ;;  %2104 = vperm.xlu2 %3126, %v131_v30  }
 0x36c   :  { %v1358_v18 = vpop.permute.xlu1 %1357 }
 0x370   :  { %1385 = vrot.lane.b32.xlu0 %v4856_v31, %s3252_s26 }
 0x379   :  { %v4862_v16 = vpop.permute.xlu1 %1363 }
 0x381   :  { %v4873_v56 = vpop.permute.xlu1 %1369 }
 0x382   :  { %v4865_v19 = vpop.permute.xlu2 %1365 }
 0x383   :  { %v4871_v17 = vsel %vm1389_vm13, %v4862_v16, %v4865_v19 }
 0x389   :  { %v4883_v38 = vpop.permute.xlu1 %1375 }
 0x38a   :  { %v4875_v34 = vpop.permute.xlu2 %1371 }
 0x38b   :  { %v4881_v41 = vsel %vm1389_vm13, %v4873_v56, %v4875_v34 }
 0x392   :  { %v4885_v1 = vpop.permute.xlu0 %1387  ;;  %v4887_v53 = vpop.permute.xlu2 %1377 }
 0x393   :  { %v4893_v57 = vsel %vm1389_vm13, %v4883_v38, %v4887_v53 }
 0x39a   :  { %v1338_v2 = vpop.permute.xlu0 %1337 }
 0x39b   :  { %v1414_v46 = vsel %vm1389_vm13, %v1338_v2, %v1340_v50 }
 0x39c   :  { %v1493_v44 = vadd.f32 %v1414_v46, %v4626_v37 }
 0x39e   :  { %v1590_v37 = vadd.f32 %v1494_v11, %v1493_v44 }
 0x3a2   :  { %v1344_v59 = vpop.permute.xlu0 %1343  ;;  %v1336_v40 = vpop.permute.xlu2 %1335 }
 0x3a3   :  { %v1411_v63 = vsel %vm1389_vm13, %v1344_v59, %v1346_v54  ;;  %v1412_v61 = vsel %vm1389_vm13, %v1342_v52, %v1344_v59  ;;  %v1415_v49 = vsel %vm1389_vm13, %v1336_v40, %v1338_v2  ;;  %v1410_v2 = vsel %vm1389_vm13, %v1346_v54, %v1348_v60 }
 0x3a4   :  { %v1495_v23 = vadd.f32 %v1412_v61, %v4732_v4  ;;  %v1496_v30 = vadd.f32 %v1411_v63, %v4642_v5  ;;  %v1492_v50 = vadd.f32 %v1415_v49, %v4720_v21  ;;  %v1497_v55 = vadd.f32 %v1410_v2, %v4637_v14 }
 0x3a6   :  { %v1591_v51 = vadd.f32 %v1495_v23, %v1494_v11  ;;  %v1592_v46 = vadd.f32 %v1496_v30, %v1495_v23  ;;  %v4910_v26 = vadd.f32 %v1493_v44, %v1492_v50  ;;  %v1500_v44 = vadd.f32 %v1407_v25, %v4653_v27 }
 0x3a7   :  { %v1593_v61 = vadd.f32 %v1497_v55, %v1496_v30 }
 0x3a8   :  { %6382 = vst [vmem:[#allocation14_spill] sm:$0xff] %v4910_v26  ;;  %v4912_v31 = vadd.f32 %v1592_v46, %v1590_v37  ;;  %v4915_v52 = vadd.f32 %v1591_v51, %v4910_v26 }
 0x3aa   :  { %v1350_v4 = vpop.permute.xlu0 %1349 }
 0x3ab   :  { %v1408_v5 = vsel %vm1389_vm13, %v1350_v4, %v1352_v36  ;;  %v1409_v21 = vsel %vm1389_vm13, %v1348_v60, %v1350_v4  ;;  %v1404_v36 = vsel %vm1389_vm13, %v1358_v18, %v4860_v22 }
 0x3ac   :  { %v1498_v59 = vadd.f32 %v1409_v21, %v4744_v42  ;;  %v1499_v63 = vadd.f32 %v1408_v5, %v4658_v8  ;;  %v1503_v30 = vadd.f32 %v1404_v36, %v4669_v0  ;;  %v4945_v21 = vadd.f32 %v1593_v61, %v1591_v51 }
 0x3ae   :  { %v1594_v54 = vadd.f32 %v1498_v59, %v1497_v55  ;;  %v1595_v49 = vadd.f32 %v1499_v63, %v1498_v59  ;;  %v1596_v11 = vadd.f32 %v1500_v44, %v1499_v63 }
 0x3b0   :  { %v1690_v23 = vadd.f32 %v1594_v54, %v1592_v46  ;;  %v1691_v26 = vadd.f32 %v1595_v49, %v1593_v61  ;;  %v1692_v3 = vadd.f32 %v1596_v11, %v1594_v54  ;;  %v4947_v54 = vpop.permute.xlu2 %1329  ;;  %v1506_v61 = vadd.f32 %v4871_v17, %v4723_v28 }
 0x3b2   :  { %v4933_v60 = vadd.f32 %v1691_v26, %v4915_v52  ;;  %v4936_v14 = vadd.f32 %v1692_v3, %v4912_v31  ;;  %v1356_v27 = vpop.permute.xlu0 %1355 }
 0x3b3   :  { %v1405_v8 = vsel %vm1389_vm13, %v1356_v27, %v1358_v18  ;;  %v1406_v42 = vsel %vm1389_vm13, %v1354_v7, %v1356_v27 }
 0x3b4   :  { %6383 = vst [vmem:[#allocation15_spill] sm:$0xff] %v4933_v60  ;;  %v1501_v46 = vadd.f32 %v1406_v42, %v4760_v12  ;;  %v1502_v2 = vadd.f32 %v1405_v8, %v4674_v43 }
 0x3b6   :  { %v1597_v25 = vadd.f32 %v1501_v46, %v1500_v44  ;;  %v1598_v4 = vadd.f32 %v1502_v2, %v1501_v46  ;;  %v1599_v5 = vadd.f32 %v1503_v30, %v1502_v2 }
 0x3b8   :  { %v1693_v55 = vadd.f32 %v1597_v25, %v1595_v49  ;;  %v1694_v59 = vadd.f32 %v1598_v4, %v1596_v11  ;;  %v1695_v63 = vadd.f32 %v1599_v5, %v1597_v25  ;;  %v1326_v25 = vpop.permute.xlu2 %1325 }
 0x3ba   :  { %v4950_v18 = vadd.f32 %v1693_v55, %v4945_v21  ;;  %v4952_v7 = vadd.f32 %v1694_v59, %v1690_v23  ;;  %v4954_v0 = vadd.f32 %v1695_v63, %v1691_v26  ;;  %v1362_v12 = vpop.permute.xlu0 %1361 }
 0x3bb   :  { %v1402_v43 = vsel %vm1389_vm13, %v1362_v12, %v4862_v16  ;;  %v1403_v51 = vsel %vm1389_vm13, %v4860_v22, %v1362_v12  ;;  %v4962_v44 = vpop.permute.xlu1 %1333 }
 0x3bc   :  { %v1504_v49 = vadd.f32 %v1403_v51, %v4770_v6  ;;  %v1505_v11 = vadd.f32 %v1402_v43, %v4685_v13  ;;  %v1416_v26 = vsel %vm1389_vm13, %v4962_v44, %v1336_v40 }
 0x3bd   :  { %v4972_v36 = vadd.f32 %v1416_v26, %v4776_v39 }
 0x3be   :  { %v1600_v16 = vadd.f32 %v1504_v49, %v1503_v30  ;;  %v1601_v27 = vadd.f32 %v1505_v11, %v1504_v49  ;;  %v1602_v8 = vadd.f32 %v1506_v61, %v1505_v11 }
 0x3bf   :  { %v4975_v22 = vadd.f32 %v1492_v50, %v4972_v36 }
 0x3c0   :  { %v1696_v42 = vadd.f32 %v1600_v16, %v1598_v4  ;;  %v1697_v46 = vadd.f32 %v1601_v27, %v1599_v5  ;;  %v4977_v28 = vadd.f32 %v1602_v8, %v1600_v16 }
 0x3c1   :  { %v4980_v6 = vadd.f32 %v1590_v37, %v4975_v22 }
 0x3c2   :  { %v4982_v13 = vadd.f32 %v1696_v42, %v1692_v3  ;;  %v4984_v17 = vadd.f32 %v1697_v46, %v1693_v55  ;;  %v4987_v39 = vadd.f32 %v4977_v28, %v1694_v59  ;;  %v1368_v40 = vpop.permute.xlu0 %1367  ;;  %v1509_v3 = vadd.f32 %v4881_v41, %v4735_v24 }
 0x3c3   :  { %v4990_v30 = vadd.f32 %v1690_v23, %v4980_v6  ;;  %v1399_v50 = vsel %vm1389_vm13, %v1368_v40, %v4873_v56  ;;  %v1400_v37 = vsel %vm1389_vm13, %v4865_v19, %v1368_v40  ;;  %v1328_v2 = vpop.permute.xlu1 %1327  ;;  %v137_v24 = vadd.s32 256, %v3425_v9 }
 0x3c4   :  { %v1507_v4 = vadd.f32 %v1400_v37, %v4791_v10  ;;  %v1508_v5 = vadd.f32 %v1399_v50, %v4692_v62  ;;  %v1420_v12 = vsel %vm1389_vm13, %v1326_v25, %v1328_v2  ;;  %v1419_v19 = vsel %vm1389_vm13, %v1328_v2, %v4947_v54  ;;  %v133_v50 = vld [vmem:[#allocation3] sm:$0xff] }
 0x3c5   :  { %6384 = vst [vmem:[#allocation16_spill] sm:$0xff] %v4990_v30  ;;  %v5004_v23 = vadd.f32 %v4987_v39, %v4990_v30  ;;  %v1421_v62 = vsel %vm1389_vm13, %v4885_v1, %v1326_v25  ;;  %v1487_v51 = vadd.f32 %v1420_v12, %v4794_v15  ;;  %v5028_v16 = vadd.f32 %v1419_v19, %v4797_v20  ;;  %v5055_v25 = vpop.permute.xlu2 %1383 }
 0x3c6   :  { %v1603_v55 = vadd.f32 %v1507_v4, %v1506_v61  ;;  %v1604_v59 = vadd.f32 %v1508_v5, %v1507_v4  ;;  %v1605_v56 = vadd.f32 %v1509_v3, %v1508_v5  ;;  %v136_v61 = vadd.s32 128, %v3425_v9  ;;  %2845 = vperm.xlu0 %3127, %v133_v50  }
 0x3c7   :  { %v2040_v40 = vadd.s32 1, %v137_v24  ;;  %v2038_v2 = vadd.s32 1, %v3425_v9  ;;  %v5058_v4 = vadd.f32 %v5028_v16, %v1487_v51 }
 0x3c8   :  { %v1699_v41 = vadd.f32 %v1603_v55, %v1601_v27  ;;  %v1700_v10 = vadd.f32 %v1604_v59, %v1602_v8  ;;  %v5012_v43 = vadd.f32 %v1605_v56, %v1603_v55  ;;  %v1512_v8 = vadd.f32 %v4893_v57, %v4747_v32 }
 0x3c9   :  { %v1454_v57 = vsel %vm1422_vm14, %v1421_v62, 0.0  ;;  %v2039_v37 = vadd.s32 1, %v136_v61  ;;  %v2072_v24 = vcvt.s32.f32 %v2040_v40 }
 0x3ca   :  { %v5020_v49 = vadd.f32 %v1699_v41, %v1695_v63  ;;  %v5022_v11 = vadd.f32 %v1700_v10, %v1696_v42  ;;  %v5025_v26 = vadd.f32 %v5012_v43, %v1697_v46  ;;  %v1374_v27 = vpop.permute.xlu0 %1373  ;;  %v5064_v19 = vadd.f32 %v1454_v57, %v4817_v33 }
 0x3cb   :  { %v1396_v15 = vsel %vm1389_vm13, %v1374_v27, %v4883_v38  ;;  %v1397_v63 = vsel %vm1389_vm13, %v4875_v34, %v1374_v27  ;;  %v1382_v42 = vpop.permute.xlu1 %1381  ;;  %v2071_v27 = vcvt.s32.f32 %v2039_v37 }
 0x3cc   :  { %v5040_v46 = vadd.f32 %v5020_v49, %v4933_v60  ;;  %v5044_v20 = vadd.f32 %v5022_v11, %v4936_v14  ;;  %v5048_v32 = vadd.f32 %v5025_v26, %v4950_v18  ;;  %v1510_v38 = vadd.f32 %v1397_v63, %v4814_v47 }
 0x3cd   :  { %v1511_v34 = vadd.f32 %v1396_v15, %v4702_v45  ;;  %v1392_v47 = vsel %vm1389_vm13, %v1382_v42, %v5055_v25  ;;  %v2070_v15 = vcvt.s32.f32 %v2038_v2  ;;  %v5069_v63 = vadd.f32 %v1487_v51, %v5064_v19 }
 0x3ce   :  { %v1606_v5 = vadd.f32 %v1510_v38, %v1509_v3  ;;  %v5073_v3 = vadd.f32 %v5058_v4, %v5064_v19 }
 0x3cf   :  { %v1607_v55 = vadd.f32 %v1511_v34, %v1510_v38  ;;  %v1608_v12 = vadd.f32 %v1512_v8, %v1511_v34  ;;  %v5077_v34 = vadd.f32 %v1392_v47, %v4836_v35 }
 0x3d0   :  { %v1702_v45 = vadd.f32 %v1606_v5, %v1604_v59 }
 0x3d1   :  { %v1703_v62 = vadd.f32 %v1607_v55, %v1605_v56  ;;  %v5066_v61 = vadd.f32 %v1608_v12, %v1606_v5 }
 0x3d2   :  { %v1798_v38 = vadd.f32 %v1702_v45, %v4977_v28  ;;  %v1380_v33 = vpop.permute.xlu0 %1379 }
 0x3d3   :  { %v1799_v59 = vadd.f32 %v1703_v62, %v1699_v41  ;;  %v1800_v56 = vadd.f32 %v5066_v61, %v1700_v10  ;;  %v1393_v40 = vsel %vm1389_vm13, %v1380_v33, %v1382_v42  ;;  %v1394_v51 = vsel %vm1389_vm13, %v4887_v53, %v1380_v33  ;;  %v5085_v57 = vpop.permute.xlu1 %2000 }
 0x3d4   :  { %v5088_v50 = vadd.f32 %v1798_v38, %v4952_v7  ;;  %v1513_v28 = vadd.f32 %v1394_v51, %v4833_v29  ;;  %v1514_v35 = vadd.f32 %v1393_v40, %v4820_v48  ;;  %v5094_v41 = vadd.f32 %v5085_v57, %v5073_v3 }
 0x3d5   :  { %v5097_v10 = vadd.f32 %v1799_v59, %v4954_v0  ;;  %v5100_v42 = vadd.f32 %v1800_v56, %v4982_v13  ;;  %v5104_v53 = vadd.f32 %v5085_v57, %v5069_v63  ;;  %v5108_v37 = vadd.f32 %v5085_v57, %v5064_v19  ;;  %v5121_v56 = vpop.permute.xlu2 %2104 }
 0x3d6   :  { %v1609_v29 = vadd.f32 %v1513_v28, %v1512_v8  ;;  %v5110_v48 = vadd.f32 %v1514_v35, %v1513_v28  ;;  %v5113_v2 = vadd.f32 %v5077_v34, %v1514_v35  ;;  %v2141_v5 = vsub.f32 %v2072_v24, %v5094_v41 }
 0x3d7   :  { %v2140_v47 = vsub.f32 %v2071_v27, %v5104_v53  ;;  %v2139_v8 = vsub.f32 %v2070_v15, %v5108_v37 }
 0x3d8   :  { %v5117_v38 = vadd.f32 %v1609_v29, %v1607_v55  ;;  %v1706_v33 = vadd.f32 %v5110_v48, %v1608_v12  ;;  %v1707_v59 = vadd.f32 %v5113_v2, %v1609_v29  ;;  %v5124_v40 = vadd.f32 %v2141_v5, %v5121_v56  ;;  %v6387_v29 = vld [vmem:[#allocation12_spill] sm:$0xff] }
 0x3d9   :  { %v5130_v55 = vadd.f32 %v2140_v47, %v5121_v56 }
 0x3da   :  { %v1801_v51 = vadd.f32 %v5117_v38, %v5012_v43  ;;  %v1802_v28 = vadd.f32 %v1706_v33, %v1702_v45  ;;  %v1803_v24 = vadd.f32 %v1707_v59, %v1703_v62  ;;  %v1332_v35 = vpop.permute.xlu0 %1331  ;;  %3128 = vrcp.f32 %v5124_v40 }
 0x3db   :  { %v1417_v12 = vsel %vm1389_vm13, %v1332_v35, %v4962_v44  ;;  %v1418_v27 = vsel %vm1389_vm13, %v4947_v54, %v1332_v35  ;;  %v2242_v33 = vand.u32 2147483648, %v5124_v40  ;;  %v5158_v59 = vadd.f32 %v2139_v8, %v5121_v56 }
 0x3dc   :  { %v5140_v15 = vadd.f32 %v1801_v51, %v4984_v17  ;;  %v5143_v43 = vadd.f32 %v1802_v28, %v4987_v39  ;;  %v5146_v45 = vadd.f32 %v1803_v24, %v5020_v49  ;;  %v1489_v62 = vadd.f32 %v1418_v27, %v4848_v58 }
 0x3dd   :  { %v1490_v5 = vadd.f32 %v1417_v12, %v6387_v29  ;;  %v2228_v39 = vand.u32 2147483648, %v5130_v55  ;;  %v5164_v28 = vadd.s32 384, %v3425_v9  ;;  %3130 = vrcp.f32 %v5130_v55 }
 0x3de   :  { %6385 = vst [vmem:[#allocation17_spill] sm:$0xff] %v5143_v43  ;;  %v1585_v47 = vadd.f32 %v1489_v62, %v5028_v16  ;;  %v2240_v16 = vand.u32 2147483647, %v5124_v40  ;;  %v5172_v35 = vadd.s32 512, %v3425_v9  ;;  %v2226_v51 = vand.u32 2147483647, %v5130_v55 }
 0x3df   :  { %6386 = vst [vmem:[#allocation18_spill] sm:$0xff] %v5146_v45  ;;  %v1586_v49 = vadd.f32 %v1490_v5, %v1489_v62  ;;  %v1587_v58 = vadd.f32 %v4972_v36, %v1490_v5  ;;  %v6388_v62 = vld [vmem:[#allocation14_spill] sm:$0xff]  ;;  %v5179_v5 = vor.u32 1.1754944e-38, %v2242_v33  ;;  %v5182_v54 = vor.u32 1.1754944e-38, %v2228_v39 }
 0x3e0   :  { %v5167_v24 = vadd.f32 %v1585_v47, %v5069_v63  ;;  %v5174_v8 = vpop.eup %3128  ;;  %3132 = vrcp.f32 %v5158_v59  ;;  %vm2236_vm1 = vweird.f32 %v5124_v40  ;;  %vm5261_vm2 = vcmp.eq.f32.partialorder %v2240_v16, 8.507059e+37 }
 0x3e1   :  { %v1682_v36 = vadd.f32 %v1586_v49, %v5058_v4  ;;  %v1683_v12 = vadd.f32 %v1587_v58, %v1585_v47  ;;  %v1684_v27 = vadd.f32 %v4975_v22, %v1586_v49  ;;  %v1685_v29 = vadd.f32 %v6388_v62, %v1587_v58 }
 0x3e2   :  { %v2232_v45 = vmul.f32 %v5174_v8, %v5124_v40  ;;  %vm2237_vm15 = vweird.f32 %v5174_v8  ;;  %vm2222_vm3 = vweird.f32 %v5130_v55  ;;  %vm2208_vm4 = vweird.f32 %v5158_v59 }
 0x3e3   :  { %v5186_v44 = vadd.f32 %v1682_v36, %v5064_v19  ;;  %v5189_v43 = vadd.f32 %v1683_v12, %v5069_v63  ;;  %v5192_v4 = vadd.f32 %v1684_v27, %v5073_v3  ;;  %v5195_v22 = vadd.f32 %v1685_v29, %v5167_v24  ;;  %vm2238_vm8 = vmor %vm2236_vm1, %vm2237_vm15 }
 0x3e4   :  { %v1782_v47 = vadd.f32 %v4980_v6, %v1682_v36  ;;  %v1783_v33 = vadd.f32 %v4915_v52, %v1683_v12  ;;  %v1784_v39 = vadd.f32 %v4912_v31, %v1684_v27  ;;  %v1785_v49 = vadd.f32 %v4945_v21, %v1685_v29  ;;  %v5212_v6 = vpop.eup %3130 }
 0x3e5   :  { %v5203_v58 = vadd.f32 %v4936_v14, %v5192_v4  ;;  %v5207_v62 = vadd.f32 %v4950_v18, %v5195_v22  ;;  %v5235_v60 = vadd.f32 %v5004_v23, %v5186_v44  ;;  %v5239_v30 = vadd.f32 %v5040_v46, %v5189_v43 }
 0x3e6   :  { %v5215_v52 = vadd.f32 %v1782_v47, %v5064_v19  ;;  %v5218_v31 = vadd.f32 %v1783_v33, %v5069_v63  ;;  %v5221_v14 = vadd.f32 %v1784_v39, %v5073_v3  ;;  %v5224_v21 = vadd.f32 %v1785_v49, %v5167_v24  ;;  %v5231_v29 = vpop.eup %3132 }
 0x3e7   :  { %v1886_v18 = vadd.f32 %v4952_v7, %v1782_v47  ;;  %v1887_v36 = vadd.f32 %v4954_v0, %v1783_v33  ;;  %v1888_v12 = vadd.f32 %v4982_v13, %v1784_v39  ;;  %v1889_v27 = vadd.f32 %v4984_v17, %v1785_v49  ;;  %v1386_v13 = vpop.permute.xlu0 %1385  ;;  %v6394_v49 = vld [vmem:[#allocation11_spill] sm:$0xff] }
 0x3e8   :  { %v5243_v7 = vadd.f32 %v5044_v20, %v5192_v4  ;;  %v5247_v0 = vadd.f32 %v5048_v32, %v5195_v22  ;;  %v5268_v32 = vadd.f32 %v5088_v50, %v5215_v52  ;;  %v1390_v16 = vsel %vm1389_vm13, %v1386_v13, %v4885_v1 }
 0x3e9   :  { %v5250_v17 = vadd.f32 %v1886_v18, %v5064_v19  ;;  %v5253_v47 = vadd.f32 %v1887_v36, %v5069_v63  ;;  %v5256_v23 = vadd.f32 %v1888_v12, %v5073_v3  ;;  %v5259_v46 = vadd.f32 %v1889_v27, %v5167_v24 }
 0x3ea   :  { %v5272_v19 = vadd.f32 %v5097_v10, %v5218_v31  ;;  %v5276_v63 = vadd.f32 %v5100_v42, %v5221_v14  ;;  %v5280_v3 = vadd.f32 %v5140_v15, %v5224_v21  ;;  %v1391_v50 = vsel %vm1389_vm13, %v5055_v25, %v1386_v13  ;;  %v6393_v15 = vld [vmem:[#allocation13_spill] sm:$0xff] }
 0x3eb   :  { %v2233_v10 = vsub.f32 1.0, %v2232_v45  ;;  %v2218_v33 = vmul.f32 %v5212_v6, %v5130_v55  ;;  %vm5291_vm5 = vcmp.eq.f32.partialorder %v2226_v51, 8.507059e+37  ;;  %v1516_v39 = vadd.f32 %v1391_v50, %v6393_v15 }
 0x3ec   :  { %v1517_v18 = vadd.f32 %v1390_v16, %v6394_v49  ;;  %v2204_v36 = vmul.f32 %v5231_v29, %v5158_v59  ;;  %v2212_v1 = vand.u32 2147483647, %v5158_v59  ;;  %vm2223_vm6 = vweird.f32 %v5212_v6 }
 0x3ed   :  { %v2234_v12 = vmul.f32 %v5174_v8, %v2233_v10  ;;  %v2219_v25 = vsub.f32 1.0, %v2218_v33  ;;  %vm2209_vm7 = vweird.f32 %v5231_v29  ;;  %v1612_v45 = vadd.f32 %v1516_v39, %v5077_v34  ;;  %vm2224_vm10 = vmor %vm2222_vm3, %vm2223_vm6 }
 0x3ee   :  { %v1613_v51 = vadd.f32 %v1517_v18, %v1516_v39  ;;  %v2205_v27 = vsub.f32 1.0, %v2204_v36  ;;  %v2214_v13 = vand.u32 2147483648, %v5158_v59  ;;  %v5309_v15 = vadd.f32 %v5085_v57, %v5167_v24  ;;  %vm2210_vm12 = vmor %vm2208_vm4, %vm2209_vm7 }
 0x3ef   :  { %v2235_v16 = vadd.f32 %v5174_v8, %v2234_v12  ;;  %v2220_v50 = vmul.f32 %v5212_v6, %v2219_v25  ;;  %v2041_v10 = vadd.s32 1, %v5164_v28  ;;  %v1708_v33 = vadd.f32 %v1612_v45, %v5110_v48 }
 0x3f0   :  { %v1709_v49 = vadd.f32 %v1613_v51, %v5113_v2  ;;  %v2206_v34 = vmul.f32 %v5231_v29, %v2205_v27  ;;  %vm5319_vm9 = vcmp.eq.f32.partialorder %v2212_v1, 8.507059e+37  ;;  %v2215_v28 = vor.u32 1.1754944e-38, %v2214_v13 }
 0x3f1   :  { %v2239_v24 = vsel %vm2238_vm8, %v5174_v8, %v2235_v16  ;;  %v2221_v18 = vadd.f32 %v5212_v6, %v2220_v50  ;;  %v2073_v36 = vcvt.s32.f32 %v2041_v10  ;;  %v1804_v48 = vadd.f32 %v1708_v33, %v5066_v61 }
 0x3f2   :  { %v1805_v2 = vadd.f32 %v1709_v49, %v5117_v38  ;;  %v2244_v40 = vsel %vm5261_vm2, %v5179_v5, %v2239_v24  ;;  %v2207_v1 = vadd.f32 %v5231_v29, %v2206_v34  ;;  %v6397_v8 = vsub.f32 %v5121_v56, %v5094_v41 }
 0x3f3   :  { %v2225_v61 = vsel %vm2224_vm10, %v5212_v6, %v2221_v18  ;;  %v2142_v38 = vsub.f32 %v2073_v36, %v5309_v15  ;;  %v5348_v55 = vadd.f32 %v5085_v57, %v5186_v44  ;;  %v1900_v5 = vadd.f32 %v1804_v48, %v5022_v11 }
 0x3f4   :  { %v5338_v12 = vmul.f32 %v2244_v40, %v6397_v8  ;;  %v1901_v20 = vadd.f32 %v1805_v2, %v5025_v26  ;;  %v2230_v41 = vsel %vm5291_vm5, %v5182_v54, %v2225_v61  ;;  %v2211_v6 = vsel %vm2210_vm12, %v5231_v29, %v2207_v1  ;;  %v6400_v2 = vld [vmem:[#allocation16_spill] sm:$0xff] }
 0x3f5   :  { %v6398_v59 = vsub.f32 %v5121_v56, %v5104_v53  ;;  %v2216_v51 = vsel %vm5319_vm9, %v2215_v28, %v2211_v6  ;;  %v2174_v11 = vadd.f32 %v2142_v38, %v5121_v56  ;;  %v5366_v26 = vadd.f32 %v1900_v5, %v5203_v58 }
 0x3f6   :  { %v6351_v25 = vsub.f32 1.0, %v5338_v12  ;;  %v5369_v42 = vadd.f32 %v1901_v20, %v5207_v62  ;;  %v6399_v54 = vsub.f32 %v5121_v56, %v5108_v37  ;;  %v2042_v53 = vadd.s32 1, %v5172_v35 }
 0x3f7   :  { %v5360_v45 = vmul.f32 %v2230_v41, %v6398_v59  ;;  %3134 = vrcp.f32 %v2174_v11  ;;  %v141_v37 = vadd.s32 768, %v3425_v9  ;;  %v140_v50 = vadd.s32 640, %v3425_v9 }
 0x3f8   :  { %v5374_v29 = vmul.f32 %v2216_v51, %v6399_v54  ;;  %2719 = vrot.lane.b32.xlu1 %v6351_v25, %s3246_s1  ;;  %v2074_v16 = vcvt.s32.f32 %v2042_v53  ;;  %v142_v10 = vadd.s32 896, %v3425_v9  ;;  %v5394_v33 = vadd.f32 %v5085_v57, %v5192_v4 }
 0x3f9   :  { %v6352_v27 = vsub.f32 1.0, %v5360_v45  ;;  %v2044_v49 = vadd.s32 1, %v141_v37  ;;  %v5398_v34 = vadd.f32 %v5085_v57, %v5189_v43  ;;  %v2043_v39 = vadd.s32 1, %v140_v50 }
 0x3fa   :  { %v6353_v13 = vsub.f32 1.0, %v5374_v29  ;;  %v2143_v35 = vsub.f32 %v2074_v16, %v5348_v55  ;;  %v2254_v24 = vand.u32 2147483647, %v2174_v11  ;;  %v2045_v28 = vadd.s32 1, %v142_v10 }
 0x3fb   :  { %2717 = vrot.lane.b32.xlu2 %v6352_v27, %s3246_s1  ;;  %v144_v36 = vadd.s32 1152, %v3425_v9  ;;  %v5406_v40 = vadd.f32 %v6400_v2, %v5186_v44  ;;  %v2256_v4 = vand.u32 2147483648, %v2174_v11  ;;  %v2076_v1 = vcvt.s32.f32 %v2044_v49 }
 0x3fc   :  { %2715 = vrot.lane.b32.xlu0 %v6353_v13, %s3246_s1  ;;  %v5401_v18 = vadd.f32 %v2143_v35, %v5121_v56  ;;  %v2075_v8 = vcvt.s32.f32 %v2043_v39  ;;  %v2110_v61 = vsub.f32 %v5121_v56, %v5309_v15  ;;  %v5413_v5 = vadd.f32 %v5085_v57, %v5195_v22 }
 0x3fd   :  { %v3135_v48 = vpop.eup %3134  ;;  %vm2250_vm13 = vweird.f32 %v2174_v11  ;;  %v2111_v20 = vsub.f32 %v5121_v56, %v5348_v55  ;;  %v2145_v44 = vsub.f32 %v2076_v1, %v5394_v33  ;;  %vm5419_vm14 = vcmp.eq.f32.partialorder %v2254_v24, 8.507059e+37 }
 0x3fe   :  { %v2246_v38 = vmul.f32 %v3135_v48, %v2174_v11  ;;  %3136 = vrcp.f32 %v5401_v18  ;;  %v2144_v41 = vsub.f32 %v2075_v8, %v5398_v34  ;;  %v2077_v15 = vcvt.s32.f32 %v2045_v28 }
 0x3ff   :  { %v2047_v51 = vadd.s32 1, %v144_v36  ;;  %v2257_v54 = vor.u32 1.1754944e-38, %v2256_v4  ;;  %v2268_v53 = vand.u32 2147483647, %v5401_v18  ;;  %v5425_v22 = vadd.f32 %v2145_v44, %v5121_v56 }
 0x400   :  { %v2247_v6 = vsub.f32 1.0, %v2246_v38  ;;  %v5428_v16 = vadd.f32 %v2144_v41, %v5121_v56  ;;  %vm2251_vm15 = vweird.f32 %v3135_v48  ;;  %v2113_v50 = vsub.f32 %v5121_v56, %v5394_v33 }
 0x401   :  { %v2146_v35 = vsub.f32 %v2077_v15, %v5413_v5  ;;  %3138 = vrcp.f32 %v5425_v22  ;;  %v5438_v49 = vadd.f32 %v5085_v57, %v5218_v31  ;;  %v2079_v39 = vcvt.s32.f32 %v2047_v51  ;;  %vm2252_vm1 = vmor %vm2250_vm13, %vm2251_vm15 }
 0x402   :  { %v2248_v37 = vmul.f32 %v3135_v48, %v2247_v6  ;;  %v2270_v36 = vand.u32 2147483648, %v5401_v18  ;;  %3140 = vrcp.f32 %v5428_v16  ;;  %vm2264_vm2 = vweird.f32 %v5401_v18 }
 0x403   :  { %vm5447_vm3 = vcmp.eq.f32.partialorder %v2268_v53, 8.507059e+37  ;;  %v143_v31 = vadd.s32 1024, %v3425_v9  ;;  %v2296_v38 = vand.u32 2147483647, %v5425_v22  ;;  %v2298_v44 = vand.u32 2147483648, %v5425_v22 }
 0x404   :  { %v3137_v24 = vpop.eup %3136  ;;  %v2249_v28 = vadd.f32 %v3135_v48, %v2248_v37  ;;  %v5455_v41 = vadd.f32 %v2146_v35, %v5121_v56  ;;  %v2282_v15 = vand.u32 2147483647, %v5428_v16  ;;  %v2148_v51 = vsub.f32 %v2079_v39, %v5438_v49 }
 0x405   :  { %v2260_v4 = vmul.f32 %v3137_v24, %v5401_v18  ;;  %v2271_v37 = vor.u32 1.1754944e-38, %v2270_v36  ;;  %vm2292_vm4 = vweird.f32 %v5425_v22  ;;  %vm2265_vm5 = vweird.f32 %v3137_v24 }
 0x406   :  { %v2253_v8 = vsel %vm2252_vm1, %v3135_v48, %v2249_v28  ;;  %3142 = vrcp.f32 %v5455_v41  ;;  %vm2278_vm6 = vweird.f32 %v5428_v16  ;;  %v2284_v59 = vand.u32 2147483648, %v5428_v16  ;;  %vm2266_vm9 = vmor %vm2264_vm2, %vm2265_vm5 }
 0x407   :  { %v2258_v11 = vsel %vm5419_vm14, %v2257_v54, %v2253_v8  ;;  %v2261_v6 = vsub.f32 1.0, %v2260_v4  ;;  %v3139_v48 = vpop.eup %3138  ;;  %v5468_v54 = vadd.f32 %v2148_v51, %v5121_v56  ;;  %vm5472_vm7 = vcmp.eq.f32.partialorder %v2296_v38, 8.507059e+37 }
 0x408   :  { %v5461_v53 = vmul.f32 %v2258_v11, %v2110_v61  ;;  %v3141_v35 = vpop.eup %3140  ;;  %v2288_v61 = vmul.f32 %v3139_v48, %v5425_v22  ;;  %v2046_v4 = vadd.s32 1, %v143_v31  ;;  %v2299_v11 = vor.u32 1.1754944e-38, %v2298_v44 }
 0x409   :  { %v2262_v28 = vmul.f32 %v3137_v24, %v2261_v6  ;;  %v2274_v6 = vmul.f32 %v3141_v35, %v5428_v16  ;;  %vm5477_vm8 = vcmp.eq.f32.partialorder %v2282_v15, 8.507059e+37  ;;  %v2310_v51 = vand.u32 2147483647, %v5455_v41 }
 0x40a   :  { %v6354_v39 = vsub.f32 1.0, %v5461_v53  ;;  %v2289_v38 = vsub.f32 1.0, %v2288_v61  ;;  %3144 = vrcp.f32 %v5468_v54  ;;  %v5490_v31 = vadd.f32 %v5085_v57, %v5215_v52 }
 0x40b   :  { %v2263_v8 = vadd.f32 %v3137_v24, %v2262_v28  ;;  %v2275_v15 = vsub.f32 1.0, %v2274_v6  ;;  %v2285_v28 = vor.u32 1.1754944e-38, %v2284_v59  ;;  %v2312_v27 = vand.u32 2147483648, %v5455_v41 }
 0x40c   :  { %2721 = vrot.lane.b32.xlu2 %v6354_v39, %s3246_s1  ;;  %v3143_v13 = vpop.eup %3142  ;;  %v2290_v18 = vmul.f32 %v3139_v48, %v2289_v38  ;;  %vm2293_vm10 = vweird.f32 %v3139_v48  ;;  %v2078_v61 = vcvt.s32.f32 %v2046_v4  ;;  %vm2279_vm12 = vweird.f32 %v3141_v35 }
 0x40d   :  { %v2267_v44 = vsel %vm2266_vm9, %v3137_v24, %v2263_v8  ;;  %v2276_v10 = vmul.f32 %v3141_v35, %v2275_v15  ;;  %v2302_v52 = vmul.f32 %v3143_v13, %v5455_v41  ;;  %vm2306_vm13 = vweird.f32 %v5455_v41  ;;  %vm2294_vm15 = vmor %vm2292_vm4, %vm2293_vm10 }
 0x40e   :  { %v2272_v39 = vsel %vm5447_vm3, %v2271_v37, %v2267_v44  ;;  %v2291_v24 = vadd.f32 %v3139_v48, %v2290_v18  ;;  %vm5502_vm14 = vcmp.eq.f32.partialorder %v2310_v51, 8.507059e+37  ;;  %v2147_v1 = vsub.f32 %v2078_v61, %v5490_v31  ;;  %vm2280_vm1 = vmor %vm2278_vm6, %vm2279_vm12 }
 0x40f   :  { %v5498_v2 = vmul.f32 %v2272_v39, %v2111_v20  ;;  %v2277_v55 = vadd.f32 %v3141_v35, %v2276_v10  ;;  %v2303_v20 = vsub.f32 1.0, %v2302_v52  ;;  %v2313_v39 = vor.u32 1.1754944e-38, %v2312_v27 }
 0x410   :  { %v3145_v4 = vpop.eup %3144  ;;  %v2295_v8 = vsel %vm2294_vm15, %v3139_v48, %v2291_v24  ;;  %vm2307_vm2 = vweird.f32 %v3143_v13  ;;  %v5513_v6 = vadd.f32 %v2147_v1, %v5121_v56  ;;  %v166_v38 = vadd.s32 3968, %v3425_v9  ;;  %v6412_v24 = vld [vmem:[#allocation15_spill] sm:$0xff] }
 0x411   :  { %v6360_v37 = vsub.f32 1.0, %v5498_v2  ;;  %v2300_v22 = vsel %vm5472_vm7, %v2299_v11, %v2295_v8  ;;  %v2281_v10 = vsel %vm2280_vm1, %v3141_v35, %v2277_v55  ;;  %v2304_v27 = vmul.f32 %v3143_v13, %v2303_v20  ;;  %vm2308_vm3 = vmor %vm2306_vm13, %vm2307_vm2 }
 0x412   :  { %v2330_v48 = vmul.f32 %v3145_v4, %v5468_v54  ;;  %v5525_v16 = vmul.f32 %v2300_v22, %v2113_v50  ;;  %v2286_v51 = vsel %vm5477_vm8, %v2285_v28, %v2281_v10  ;;  %v2338_v44 = vand.u32 2147483647, %v5468_v54 }
 0x413   :  { %2723 = vrot.lane.b32.xlu1 %v6360_v37, %s3246_s1  ;;  %3146 = vrcp.f32 %v5513_v6  ;;  %v6411_v36 = vsub.f32 %v5121_v56, %v5398_v34  ;;  %v2305_v35 = vadd.f32 %v3143_v13, %v2304_v27  ;;  %v147_v18 = vadd.s32 1536, %v3425_v9 }
 0x414   :  { %v2331_v15 = vsub.f32 1.0, %v2330_v48  ;;  %v6358_v33 = vsub.f32 1.0, %v5525_v16  ;;  %v2340_v25 = vand.u32 2147483648, %v5468_v54  ;;  %v5544_v50 = vadd.f32 %v5085_v57, %v5369_v42 }
 0x415   :  { %v5534_v11 = vmul.f32 %v2286_v51, %v6411_v36  ;;  %v2069_v28 = vadd.s32 1, %v166_v38  ;;  %v2309_v61 = vsel %vm2308_vm3, %v3143_v13, %v2305_v35  ;;  %vm2335_vm4 = vweird.f32 %v3145_v4 }
 0x416   :  { %v2332_v52 = vmul.f32 %v3145_v4, %v2331_v15  ;;  %v5549_v1 = vadd.f32 %v6412_v24, %v5189_v43  ;;  %2727 = vrot.lane.b32.xlu0 %v6358_v33, %s3246_s1  ;;  %v2314_v41 = vsel %vm5502_vm14, %v2313_v39, %v2309_v61  ;;  %v2116_v42 = vsub.f32 %v5121_v56, %v5438_v49 }
 0x417   :  { %v6359_v34 = vsub.f32 1.0, %v5534_v11  ;;  %v2101_v55 = vcvt.s32.f32 %v2069_v28  ;;  %v6413_v13 = vsub.f32 %v5121_v56, %v5413_v5  ;;  %vm2334_vm5 = vweird.f32 %v5468_v54 }
 0x418   :  { %v2333_v20 = vadd.f32 %v3145_v4, %v2332_v52  ;;  %v2050_v8 = vadd.s32 1, %v147_v18  ;;  %vm2336_vm6 = vmor %vm2334_vm5, %vm2335_vm4  ;;  %vm2339_vm7 = vcmp.eq.f32.partialorder %v2338_v44, 8.507059e+37  ;;  %v2341_v59 = vor.u32 1.1754944e-38, %v2340_v25 }
 0x419   :  { %2725 = vrot.lane.b32.xlu2 %v6359_v34, %s3246_s1  ;;  %v5564_v43 = vmul.f32 %v2314_v41, %v6413_v13  ;;  %v3147_v38 = vpop.eup %3146  ;;  %v2170_v49 = vsub.f32 %v2101_v55, %v5544_v50  ;;  %v146_v39 = vadd.s32 1408, %v3425_v9  ;;  %v5573_v5 = vadd.f32 %v5085_v57, %v5406_v40 }
 0x41a   :  { %v2337_v10 = vsel %vm2336_vm6, %v3145_v4, %v2333_v20  ;;  %v2316_v27 = vmul.f32 %v3147_v38, %v5513_v6  ;;  %v2082_v51 = vcvt.s32.f32 %v2050_v8  ;;  %v145_v44 = vadd.s32 1280, %v3425_v9 }
 0x41b   :  { %v6357_v22 = vsub.f32 1.0, %v5564_v43  ;;  %v2342_v48 = vsel %vm2339_vm7, %v2341_v59, %v2337_v10  ;;  %v5576_v54 = vadd.f32 %v2170_v49, %v5121_v56  ;;  %v5586_v35 = vadd.f32 %v5085_v57, %v5224_v21 }
 0x41c   :  { %v5582_v36 = vmul.f32 %v2342_v48, %v2116_v42  ;;  %v2317_v4 = vsub.f32 1.0, %v2316_v27  ;;  %v2049_v15 = vadd.s32 1, %v146_v39  ;;  %vm2321_vm8 = vweird.f32 %v3147_v38 }
 0x41d   :  { %2729 = vrot.lane.b32.xlu1 %v6357_v22, %s3246_s1  ;;  %v2324_v18 = vand.u32 2147483647, %v5513_v6  ;;  %v2326_v25 = vand.u32 2147483648, %v5513_v6  ;;  %3148 = vrcp.f32 %v5576_v54  ;;  %v2151_v52 = vsub.f32 %v2082_v51, %v5573_v5 }
 0x41e   :  { %6414 = vst [vmem:[#allocation12_spill] sm:$0xff] %v5582_v36  ;;  %v6355_v28 = vsub.f32 1.0, %v5582_v36  ;;  %v2318_v61 = vmul.f32 %v3147_v38, %v2317_v4  ;;  %v2081_v24 = vcvt.s32.f32 %v2049_v15  ;;  %v2115_v41 = vsub.f32 %v5121_v56, %v5490_v31 }
 0x41f   :  { %vm2320_vm9 = vweird.f32 %v5513_v6  ;;  %v5598_v21 = vadd.f32 %v5085_v57, %v5221_v14  ;;  %v2048_v42 = vadd.s32 1, %v145_v44  ;;  %v2138_v13 = vsub.f32 %v5121_v56, %v5544_v50 }
 0x420   :  { %2733 = vrot.lane.b32.xlu0 %v6355_v28, %s3246_s1  ;;  %v2319_v55 = vadd.f32 %v3147_v38, %v2318_v61  ;;  %v5606_v20 = vadd.f32 %v2151_v52, %v5121_v56  ;;  %v2150_v31 = vsub.f32 %v2081_v24, %v5586_v35  ;;  %vm2322_vm10 = vmor %vm2320_vm9, %vm2321_vm8  ;;  %vm2325_vm12 = vcmp.eq.f32.partialorder %v2324_v18, 8.507059e+37 }
 0x421   :  { %v2327_v6 = vor.u32 1.1754944e-38, %v2326_v25  ;;  %v2646_v14 = vand.u32 2147483647, %v5576_v54  ;;  %v2080_v8 = vcvt.s32.f32 %v2048_v42  ;;  %v2648_v49 = vand.u32 2147483648, %v5576_v54 }
 0x422   :  { %v2323_v59 = vsel %vm2322_vm10, %v3147_v38, %v2319_v55  ;;  %3150 = vrcp.f32 %v5606_v20  ;;  %v5616_v48 = vadd.f32 %v2150_v31, %v5121_v56  ;;  %v150_v44 = vadd.s32 1920, %v3425_v9 }
 0x423   :  { %v3149_v10 = vpop.eup %3148  ;;  %v2328_v27 = vsel %vm2325_vm12, %v2327_v6, %v2323_v59  ;;  %v2149_v51 = vsub.f32 %v2080_v8, %v5598_v21  ;;  %vm2642_vm13 = vweird.f32 %v5576_v54  ;;  %vm5626_vm14 = vcmp.eq.f32.partialorder %v2646_v14, 8.507059e+37 }
 0x424   :  { %v5620_v4 = vmul.f32 %v2328_v27, %v2115_v41  ;;  %v2638_v38 = vmul.f32 %v3149_v10, %v5576_v54  ;;  %v2380_v25 = vand.u32 2147483647, %v5606_v20  ;;  %v2382_v61 = vand.u32 2147483648, %v5606_v20 }
 0x425   :  { %3152 = vrcp.f32 %v5616_v48  ;;  %v5635_v41 = vadd.f32 %v2149_v51, %v5121_v56  ;;  %v149_v42 = vadd.s32 1792, %v3425_v9  ;;  %v2649_v55 = vor.u32 1.1754944e-38, %v2648_v49 }
 0x426   :  { %v6356_v52 = vsub.f32 1.0, %v5620_v4  ;;  %v2639_v24 = vsub.f32 1.0, %v2638_v38  ;;  %v5642_v6 = vadd.f32 %v5085_v57, %v5207_v62  ;;  %v2053_v14 = vadd.s32 1, %v150_v44 }
 0x427   :  { %vm2643_vm15 = vweird.f32 %v3149_v10  ;;  %v2366_v27 = vand.u32 2147483647, %v5616_v48  ;;  %3154 = vrcp.f32 %v5635_v41  ;;  %vm2376_vm1 = vweird.f32 %v5606_v20 }
 0x428   :  { %v3151_v8 = vpop.eup %3150  ;;  %2731 = vrot.lane.b32.xlu2 %v6356_v52, %s3246_s1  ;;  %v2640_v59 = vmul.f32 %v3149_v10, %v2639_v24  ;;  %vm5651_vm2 = vcmp.eq.f32.partialorder %v2380_v25, 8.507059e+37  ;;  %v2383_v62 = vor.u32 1.1754944e-38, %v2382_v61  ;;  %vm2362_vm3 = vweird.f32 %v5616_v48  ;;  %vm2644_vm4 = vmor %vm2642_vm13, %vm2643_vm15 }
 0x429   :  { %v2372_v49 = vmul.f32 %v3151_v8, %v5606_v20  ;;  %v2085_v38 = vcvt.s32.f32 %v2053_v14  ;;  %v2052_v28 = vadd.s32 1, %v149_v42  ;;  %v2368_v22 = vand.u32 2147483648, %v5616_v48 }
 0x42a   :  { %v2641_v44 = vadd.f32 %v3149_v10, %v2640_v59  ;;  %v5661_v33 = vadd.f32 %v5085_v57, %v5203_v58  ;;  %v148_v25 = vadd.s32 1664, %v3425_v9  ;;  %vm5665_vm5 = vcmp.eq.f32.partialorder %v2366_v27, 8.507059e+37 }
 0x42b   :  { %v3153_v24 = vpop.eup %3152  ;;  %v2373_v52 = vsub.f32 1.0, %v2372_v49  ;;  %v2154_v42 = vsub.f32 %v2085_v38, %v5642_v6  ;;  %vm2377_vm6 = vweird.f32 %v3151_v8  ;;  %v2084_v49 = vcvt.s32.f32 %v2052_v28 }
 0x42c   :  { %v2645_v34 = vsel %vm2644_vm4, %v3149_v10, %v2641_v44  ;;  %v2358_v61 = vmul.f32 %v3153_v24, %v5616_v48  ;;  %v2051_v10 = vadd.s32 1, %v148_v25  ;;  %v2369_v27 = vor.u32 1.1754944e-38, %v2368_v22  ;;  %vm2378_vm7 = vmor %vm2376_vm1, %vm2377_vm6 }
 0x42d   :  { %v2650_v54 = vsel %vm5626_vm14, %v2649_v55, %v2645_v34  ;;  %v2374_v14 = vmul.f32 %v3151_v8, %v2373_v52  ;;  %v3155_v37 = vpop.eup %3154  ;;  %v5673_v15 = vadd.f32 %v2154_v42, %v5121_v56  ;;  %v2153_v36 = vsub.f32 %v2084_v49, %v5661_v33 }
 0x42e   :  { %v2682_v58 = vmul.f32 %v2650_v54, %v2138_v13  ;;  %v2359_v31 = vsub.f32 1.0, %v2358_v61  ;;  %v2344_v39 = vmul.f32 %v3155_v37, %v5635_v41  ;;  %vm2363_vm8 = vweird.f32 %v3153_v24 }
 0x42f   :  { %v2375_v44 = vadd.f32 %v3151_v8, %v2374_v14  ;;  %3156 = vrcp.f32 %v5673_v15  ;;  %v2354_v18 = vand.u32 2147483648, %v5635_v41  ;;  %v5685_v22 = vadd.f32 %v5085_v57, %v5549_v1  ;;  %vm2364_vm9 = vmor %vm2362_vm3, %vm2363_vm8 }
 0x430   :  { %v5677_v38 = vsub.f32 1.0, %v2682_v58  ;;  %v2360_v34 = vmul.f32 %v3153_v24, %v2359_v31  ;;  %v2345_v13 = vsub.f32 1.0, %v2344_v39  ;;  %v5692_v55 = vadd.f32 %v2153_v36, %v5121_v56 }
 0x431   :  { %v2379_v28 = vsel %vm2378_vm7, %v3151_v8, %v2375_v44  ;;  %v2083_v31 = vcvt.s32.f32 %v2051_v10  ;;  %v6421_v39 = vsub.f32 %v5121_v56, %v5573_v5  ;;  %vm2349_vm10 = vweird.f32 %v3155_v37 }
 0x432   :  { %2777 = vrot.lane.b32.xlu1 %v5677_v38, %s3246_s1  ;;  %v2384_v52 = vsel %vm5651_vm2, %v2383_v62, %v2379_v28  ;;  %v2361_v20 = vadd.f32 %v3153_v24, %v2360_v34  ;;  %v2346_v25 = vmul.f32 %v3155_v37, %v2345_v13  ;;  %v2352_v61 = vand.u32 2147483647, %v5635_v41 }
 0x433   :  { %v5697_v8 = vmul.f32 %v2384_v52, %v6421_v39  ;;  %vm2348_vm12 = vweird.f32 %v5635_v41  ;;  %v2122_v36 = vsub.f32 %v5121_v56, %v5642_v6  ;;  %3158 = vrcp.f32 %v5692_v55 }
 0x434   :  { %v2365_v42 = vsel %vm2364_vm9, %v3153_v24, %v2361_v20  ;;  %v2347_v62 = vadd.f32 %v3155_v37, %v2346_v25  ;;  %v2355_v48 = vor.u32 1.1754944e-38, %v2354_v18  ;;  %v6422_v14 = vsub.f32 %v5121_v56, %v5586_v35  ;;  %vm2350_vm13 = vmor %vm2348_vm12, %vm2349_vm10 }
 0x435   :  { %v6365_v51 = vsub.f32 1.0, %v5697_v8  ;;  %v2370_v5 = vsel %vm5665_vm5, %v2369_v27, %v2365_v42  ;;  %v3157_v54 = vpop.eup %3156  ;;  %v2422_v41 = vand.u32 2147483647, %v5673_v15  ;;  %v2424_v6 = vand.u32 2147483648, %v5673_v15 }
 0x436   :  { %v5712_v49 = vmul.f32 %v2370_v5, %v6422_v14  ;;  %v2152_v24 = vsub.f32 %v2083_v31, %v5685_v22  ;;  %v2351_v59 = vsel %vm2350_vm13, %v3155_v37, %v2347_v62  ;;  %vm2353_vm14 = vcmp.eq.f32.partialorder %v2352_v61, 8.507059e+37 }
 0x437   :  { %2739 = vrot.lane.b32.xlu0 %v6365_v51, %s3246_s1  ;;  %v2414_v58 = vmul.f32 %v3157_v54, %v5673_v15  ;;  %v2121_v35 = vsub.f32 %v5121_v56, %v5661_v33  ;;  %v2356_v44 = vsel %vm2353_vm14, %v2355_v48, %v2351_v59  ;;  %v153_v34 = vadd.s32 2304, %v3425_v9 }
 0x438   :  { %v6366_v10 = vsub.f32 1.0, %v5712_v49  ;;  %v5725_v27 = vadd.f32 %v2152_v24, %v5121_v56  ;;  %v6423_v28 = vsub.f32 %v5121_v56, %v5598_v21  ;;  %v2408_v18 = vand.u32 2147483647, %v5692_v55 }
 0x439   :  { %v2415_v37 = vsub.f32 1.0, %v2414_v58  ;;  %v152_v52 = vadd.s32 2176, %v3425_v9  ;;  %v3159_v20 = vpop.eup %3158  ;;  %vm2418_vm15 = vweird.f32 %v5673_v15  ;;  %vm5739_vm1 = vcmp.eq.f32.partialorder %v2422_v41, 8.507059e+37 }
 0x43a   :  { %v5731_v13 = vmul.f32 %v2356_v44, %v6423_v28  ;;  %2737 = vrot.lane.b32.xlu2 %v6366_v10, %s3246_s1  ;;  %v2425_v31 = vor.u32 1.1754944e-38, %v2424_v6  ;;  %3160 = vrcp.f32 %v5725_v27  ;;  %vm2419_vm2 = vweird.f32 %v3157_v54 }
 0x43b   :  { %v2416_v39 = vmul.f32 %v3157_v54, %v2415_v37  ;;  %v2400_v25 = vmul.f32 %v3159_v20, %v5692_v55  ;;  %vm2404_vm3 = vweird.f32 %v5692_v55  ;;  %v2410_v61 = vand.u32 2147483648, %v5692_v55  ;;  %vm2420_vm5 = vmor %vm2418_vm15, %vm2419_vm2 }
 0x43c   :  { %v6367_v21 = vsub.f32 1.0, %v5731_v13  ;;  %v5750_v42 = vadd.f32 %v5085_v57, %v5256_v23  ;;  %v2056_v5 = vadd.s32 1, %v153_v34  ;;  %vm5755_vm4 = vcmp.eq.f32.partialorder %v2408_v18, 8.507059e+37 }
 0x43d   :  { %v2417_v62 = vadd.f32 %v3157_v54, %v2416_v39  ;;  %v2401_v48 = vsub.f32 1.0, %v2400_v25  ;;  %v2055_v41 = vadd.s32 1, %v152_v52  ;;  %vm2405_vm6 = vweird.f32 %v3159_v20 }
 0x43e   :  { %2735 = vrot.lane.b32.xlu1 %v6367_v21, %s3246_s1  ;;  %v2088_v6 = vcvt.s32.f32 %v2056_v5  ;;  %v5763_v23 = vadd.f32 %v5085_v57, %v5253_v47  ;;  %v151_v24 = vadd.s32 2048, %v3425_v9  ;;  %v156_v34 = vadd.s32 2688, %v3425_v9  ;;  %vm2406_vm7 = vmor %vm2404_vm3, %vm2405_vm6 }
 0x43f   :  { %v2421_v59 = vsel %vm2420_vm5, %v3157_v54, %v2417_v62  ;;  %v2402_v58 = vmul.f32 %v3159_v20, %v2401_v48  ;;  %v2087_v44 = vcvt.s32.f32 %v2055_v41  ;;  %v2411_v18 = vor.u32 1.1754944e-38, %v2410_v61 }
 0x440   :  { %v3161_v28 = vpop.eup %3160  ;;  %v2426_v37 = vsel %vm5739_vm1, %v2425_v31, %v2421_v59  ;;  %v2157_v15 = vsub.f32 %v2088_v6, %v5750_v42  ;;  %v2054_v52 = vadd.s32 1, %v151_v24  ;;  %v2394_v5 = vand.u32 2147483647, %v5725_v27 }
 0x441   :  { %v5770_v39 = vmul.f32 %v2426_v37, %v2122_v36  ;;  %v2403_v25 = vadd.f32 %v3159_v20, %v2402_v58  ;;  %v2386_v47 = vmul.f32 %v3161_v28, %v5725_v27  ;;  %v2156_v33 = vsub.f32 %v2087_v44, %v5763_v23 }
 0x442   :  { %v5778_v54 = vadd.f32 %v2157_v15, %v5121_v56  ;;  %v5783_v31 = vadd.f32 %v5085_v57, %v5250_v17  ;;  %v2086_v36 = vcvt.s32.f32 %v2054_v52  ;;  %v2059_v41 = vadd.s32 1, %v156_v34 }
 0x443   :  { %v6362_v61 = vsub.f32 1.0, %v5770_v39  ;;  %v2407_v62 = vsel %vm2406_vm7, %v3159_v20, %v2403_v25  ;;  %v2387_v48 = vsub.f32 1.0, %v2386_v47  ;;  %vm2391_vm8 = vweird.f32 %v3161_v28 }
 0x444   :  { %v2412_v6 = vsel %vm5755_vm4, %v2411_v18, %v2407_v62  ;;  %v2396_v55 = vand.u32 2147483648, %v5725_v27  ;;  %3162 = vrcp.f32 %v5778_v54  ;;  %v5796_v59 = vadd.f32 %v2156_v33, %v5121_v56 }
 0x445   :  { %2745 = vrot.lane.b32.xlu0 %v6362_v61, %s3246_s1  ;;  %v5793_v17 = vmul.f32 %v2412_v6, %v2121_v35  ;;  %v2388_v24 = vmul.f32 %v3161_v28, %v2387_v48  ;;  %v5800_v20 = vadd.f32 %v5085_v57, %v5239_v30  ;;  %v2120_v14 = vsub.f32 %v5121_v56, %v5685_v22 }
 0x446   :  { %v2155_v58 = vsub.f32 %v2086_v36, %v5783_v31  ;;  %v2091_v44 = vcvt.s32.f32 %v2059_v41  ;;  %vm2390_vm9 = vweird.f32 %v5725_v27  ;;  %3164 = vrcp.f32 %v5796_v59 }
 0x447   :  { %v6363_v34 = vsub.f32 1.0, %v5793_v17  ;;  %v2389_v37 = vadd.f32 %v3161_v28, %v2388_v24  ;;  %vm2392_vm10 = vmor %vm2390_vm9, %vm2391_vm8  ;;  %vm2395_vm12 = vcmp.eq.f32.partialorder %v2394_v5, 8.507059e+37  ;;  %v2397_v35 = vor.u32 1.1754944e-38, %v2396_v55 }
 0x448   :  { %v2464_v30 = vand.u32 2147483647, %v5778_v54  ;;  %v5811_v18 = vadd.f32 %v2155_v58, %v5121_v56  ;;  %v2466_v15 = vand.u32 2147483648, %v5778_v54  ;;  %v2160_v27 = vsub.f32 %v2091_v44, %v5800_v20 }
 0x449   :  { %2743 = vrot.lane.b32.xlu2 %v6363_v34, %s3246_s1  ;;  %v2393_v22 = vsel %vm2392_vm10, %v3161_v28, %v2389_v37  ;;  %v155_v52 = vadd.s32 2560, %v3425_v9  ;;  %v2125_v5 = vsub.f32 %v5121_v56, %v5750_v42  ;;  %v2124_v33 = vsub.f32 %v5121_v56, %v5763_v23 }
 0x44a   :  { %v3163_v25 = vpop.eup %3162  ;;  %v2398_v47 = vsel %vm2395_vm12, %v2397_v35, %v2393_v22  ;;  %3166 = vrcp.f32 %v5811_v18  ;;  %v2450_v62 = vand.u32 2147483647, %v5796_v59  ;;  %v2123_v48 = vsub.f32 %v5121_v56, %v5783_v31 }
 0x44b   :  { %v5824_v36 = vmul.f32 %v2398_v47, %v2120_v14  ;;  %v2456_v28 = vmul.f32 %v3163_v25, %v5778_v54  ;;  %vm2460_vm13 = vweird.f32 %v5778_v54  ;;  %v2452_v41 = vand.u32 2147483648, %v5796_v59 }
 0x44c   :  { %v5833_v42 = vadd.f32 %v2160_v27, %v5121_v56  ;;  %v2058_v6 = vadd.s32 1, %v155_v52  ;;  %v3165_v23 = vpop.eup %3164  ;;  %vm5836_vm14 = vcmp.eq.f32.partialorder %v2464_v30, 8.507059e+37  ;;  %v2467_v58 = vor.u32 1.1754944e-38, %v2466_v15 }
 0x44d   :  { %v6364_v55 = vsub.f32 1.0, %v5824_v36  ;;  %v2457_v24 = vsub.f32 1.0, %v2456_v28  ;;  %v2442_v44 = vmul.f32 %v3165_v23, %v5796_v59  ;;  %vm2446_vm15 = vweird.f32 %v5796_v59 }
 0x44e   :  { %v5844_v37 = vadd.f32 %v5085_v57, %v5235_v60  ;;  %v154_v35 = vadd.s32 2432, %v3425_v9  ;;  %vm2461_vm1 = vweird.f32 %v3163_v25  ;;  %vm5850_vm2 = vcmp.eq.f32.partialorder %v2450_v62, 8.507059e+37 }
 0x44f   :  { %2741 = vrot.lane.b32.xlu1 %v6364_v55, %s3246_s1  ;;  %v2458_v22 = vmul.f32 %v3163_v25, %v2457_v24  ;;  %3168 = vrcp.f32 %v5833_v42  ;;  %v2443_v27 = vsub.f32 1.0, %v2442_v44  ;;  %v2453_v52 = vor.u32 1.1754944e-38, %v2452_v41  ;;  %vm2462_vm4 = vmor %vm2460_vm13, %vm2461_vm1 }
 0x450   :  { %v3167_v15 = vpop.eup %3166  ;;  %vm2432_vm3 = vweird.f32 %v5811_v18  ;;  %v2090_v60 = vcvt.s32.f32 %v2058_v6  ;;  %v2436_v61 = vand.u32 2147483647, %v5811_v18  ;;  %v2438_v24 = vand.u32 2147483648, %v5811_v18 }
 0x451   :  { %v2459_v47 = vadd.f32 %v3163_v25, %v2458_v22  ;;  %v2428_v28 = vmul.f32 %v3167_v15, %v5811_v18  ;;  %v2444_v62 = vmul.f32 %v3165_v23, %v2443_v27  ;;  %vm2447_vm5 = vweird.f32 %v3165_v23 }
 0x452   :  { %v2159_v34 = vsub.f32 %v2090_v60, %v5844_v37  ;;  %v2057_v55 = vadd.s32 1, %v154_v35  ;;  %v5864_v6 = vadd.f32 %v5085_v57, %v5259_v46  ;;  %v159_v22 = vadd.s32 3072, %v3425_v9  ;;  %vm2448_vm7 = vmor %vm2446_vm15, %vm2447_vm5 }
 0x453   :  { %v2463_v44 = vsel %vm2462_vm4, %v3163_v25, %v2459_v47  ;;  %v2429_v41 = vsub.f32 1.0, %v2428_v28  ;;  %v2445_v10 = vadd.f32 %v3165_v23, %v2444_v62  ;;  %vm2433_vm6 = vweird.f32 %v3167_v15 }
 0x454   :  { %v2468_v51 = vsel %vm5836_vm14, %v2467_v58, %v2463_v44  ;;  %v5870_v54 = vadd.f32 %v2159_v34, %v5121_v56  ;;  %v2089_v35 = vcvt.s32.f32 %v2057_v55  ;;  %v2062_v46 = vadd.s32 1, %v159_v22  ;;  %vm2434_vm9 = vmor %vm2432_vm3, %vm2433_vm6 }
 0x455   :  { %v3169_v27 = vpop.eup %3168  ;;  %v5872_v21 = vmul.f32 %v2468_v51, %v2125_v5  ;;  %v2430_v25 = vmul.f32 %v3167_v15, %v2429_v41  ;;  %v2449_v60 = vsel %vm2448_vm7, %v3165_v23, %v2445_v10  ;;  %vm5876_vm8 = vcmp.eq.f32.partialorder %v2436_v61, 8.507059e+37 }
 0x456   :  { %v2498_v14 = vmul.f32 %v3169_v27, %v5833_v42  ;;  %3170 = vrcp.f32 %v5870_v54  ;;  %v2454_v51 = vsel %vm5850_vm2, %v2453_v52, %v2449_v60  ;;  %v5887_v59 = vadd.f32 %v5085_v57, %v5268_v32 }
 0x457   :  { %v2701_v34 = vsub.f32 1.0, %v5872_v21  ;;  %v2431_v5 = vadd.f32 %v3167_v15, %v2430_v25  ;;  %v5889_v55 = vmul.f32 %v2454_v51, %v2124_v33  ;;  %v2439_v10 = vor.u32 1.1754944e-38, %v2438_v24 }
 0x458   :  { %v2499_v61 = vsub.f32 1.0, %v2498_v14  ;;  %v2506_v23 = vand.u32 2147483647, %v5833_v42  ;;  %v2508_v30 = vand.u32 2147483648, %v5833_v42  ;;  %v2158_v32 = vsub.f32 %v2089_v35, %v5864_v6 }
 0x459   :  { %2751 = vrot.lane.b32.xlu0 %v2701_v34, %s3246_s1  ;;  %v2435_v58 = vsel %vm2434_vm9, %v3167_v15, %v2431_v5  ;;  %v2094_v52 = vcvt.s32.f32 %v2062_v46  ;;  %v2700_v33 = vsub.f32 1.0, %v5889_v55  ;;  %vm2503_vm10 = vweird.f32 %v3169_v27 }
 0x45a   :  { %v2440_v18 = vsel %vm5876_vm8, %v2439_v10, %v2435_v58  ;;  %v2500_v28 = vmul.f32 %v3169_v27, %v2499_v61  ;;  %v5909_v62 = vadd.f32 %v2158_v32, %v5121_v56  ;;  %v2128_v41 = vsub.f32 %v5121_v56, %v5800_v20 }
 0x45b   :  { %v5906_v24 = vmul.f32 %v2440_v18, %v2123_v48  ;;  %v2163_v15 = vsub.f32 %v2094_v52, %v5887_v59  ;;  %2749 = vrot.lane.b32.xlu2 %v2700_v33, %s3246_s1  ;;  %vm2502_vm12 = vweird.f32 %v5833_v42  ;;  %v158_v31 = vadd.s32 2944, %v3425_v9 }
 0x45c   :  { %v3171_v44 = vpop.eup %3170  ;;  %v2501_v22 = vadd.f32 %v3169_v27, %v2500_v28  ;;  %vm2504_vm13 = vmor %vm2502_vm12, %vm2503_vm10  ;;  %v2509_v25 = vor.u32 1.1754944e-38, %v2508_v30  ;;  %3172 = vrcp.f32 %v5909_v62  ;;  %vm2507_vm14 = vcmp.eq.f32.partialorder %v2506_v23, 8.507059e+37 }
 0x45d   :  { %v2699_v48 = vsub.f32 1.0, %v5906_v24  ;;  %v2484_v35 = vmul.f32 %v3171_v44, %v5870_v54  ;;  %v2127_v60 = vsub.f32 %v5121_v56, %v5844_v37  ;;  %v157_v20 = vadd.s32 2816, %v3425_v9 }
 0x45e   :  { %v2505_v46 = vsel %vm2504_vm13, %v3169_v27, %v2501_v22  ;;  %v5929_v14 = vadd.f32 %v2163_v15, %v5121_v56  ;;  %v2061_v51 = vadd.s32 1, %v158_v31  ;;  %v2492_v27 = vand.u32 2147483647, %v5870_v54 }
 0x45f   :  { %2747 = vrot.lane.b32.xlu1 %v2699_v48, %s3246_s1  ;;  %v2510_v42 = vsel %vm2507_vm14, %v2509_v25, %v2505_v46  ;;  %v2485_v47 = vsub.f32 1.0, %v2484_v35  ;;  %v2494_v10 = vand.u32 2147483648, %v5870_v54  ;;  %v5937_v37 = vadd.f32 %v5085_v57, %v5247_v0 }
 0x460   :  { %v5931_v5 = vmul.f32 %v2510_v42, %v2128_v41  ;;  %vm2489_vm15 = vweird.f32 %v3171_v44  ;;  %v2126_v23 = vsub.f32 %v5121_v56, %v5864_v6  ;;  %3174 = vrcp.f32 %v5929_v14 }
 0x461   :  { %v2486_v61 = vmul.f32 %v3171_v44, %v2485_v47  ;;  %vm2488_vm1 = vweird.f32 %v5870_v54  ;;  %v2131_v30 = vsub.f32 %v5121_v56, %v5887_v59  ;;  %v2093_v32 = vcvt.s32.f32 %v2061_v51 }
 0x462   :  { %v6369_v58 = vsub.f32 1.0, %v5931_v5  ;;  %v3173_v52 = vpop.eup %3172  ;;  %v5948_v0 = vadd.f32 %v5085_v57, %v5243_v7  ;;  %v2060_v28 = vadd.s32 1, %v157_v20  ;;  %v162_v15 = vadd.s32 3456, %v3425_v9  ;;  %vm2490_vm2 = vmor %vm2488_vm1, %vm2489_vm15 }
 0x463   :  { %v2487_v18 = vadd.f32 %v3171_v44, %v2486_v61  ;;  %vm2493_vm3 = vcmp.eq.f32.partialorder %v2492_v27, 8.507059e+37  ;;  %v2495_v6 = vor.u32 1.1754944e-38, %v2494_v10  ;;  %v2470_v54 = vmul.f32 %v3173_v52, %v5909_v62 }
 0x464   :  { %2757 = vrot.lane.b32.xlu0 %v6369_v58, %s3246_s1  ;;  %v2162_v41 = vsub.f32 %v2093_v32, %v5937_v37  ;;  %vm2474_vm4 = vweird.f32 %v5909_v62  ;;  %v2478_v7 = vand.u32 2147483647, %v5909_v62  ;;  %v2092_v31 = vcvt.s32.f32 %v2060_v28 }
 0x465   :  { %v2491_v22 = vsel %vm2490_vm2, %v3171_v44, %v2487_v18  ;;  %v2471_v35 = vsub.f32 1.0, %v2470_v54  ;;  %v2065_v20 = vadd.s32 1, %v162_v15  ;;  %v2480_v51 = vand.u32 2147483648, %v5909_v62 }
 0x466   :  { %v2496_v25 = vsel %vm2493_vm3, %v2495_v6, %v2491_v22  ;;  %v5959_v46 = vadd.f32 %v2162_v41, %v5121_v56  ;;  %v3175_v42 = vpop.eup %3174  ;;  %v2161_v27 = vsub.f32 %v2092_v31, %v5948_v0  ;;  %v161_v44 = vadd.s32 3328, %v3425_v9 }
 0x467   :  { %v5961_v47 = vmul.f32 %v2496_v25, %v2127_v60  ;;  %v2472_v10 = vmul.f32 %v3173_v52, %v2471_v35  ;;  %vm2475_vm5 = vweird.f32 %v3173_v52  ;;  %v2540_v61 = vmul.f32 %v3175_v42, %v5929_v14 }
 0x468   :  { %3176 = vrcp.f32 %v5959_v46  ;;  %vm5969_vm6 = vcmp.eq.f32.partialorder %v2478_v7, 8.507059e+37  ;;  %v2548_v60 = vand.u32 2147483647, %v5929_v14  ;;  %v5976_v28 = vadd.f32 %v5085_v57, %v5280_v3  ;;  %vm2476_vm7 = vmor %vm2474_vm4, %vm2475_vm5 }
 0x469   :  { %v6370_v32 = vsub.f32 1.0, %v5961_v47  ;;  %v2473_v15 = vadd.f32 %v3173_v52, %v2472_v10  ;;  %v2541_v6 = vsub.f32 1.0, %v2540_v61  ;;  %v5979_v54 = vadd.f32 %v2161_v27, %v5121_v56 }
 0x46a   :  { %v2097_v41 = vcvt.s32.f32 %v2065_v20  ;;  %v2481_v22 = vor.u32 1.1754944e-38, %v2480_v51  ;;  %vm2545_vm8 = vweird.f32 %v3175_v42  ;;  %v2550_v7 = vand.u32 2147483648, %v5929_v14 }
 0x46b   :  { %2755 = vrot.lane.b32.xlu2 %v6370_v32, %s3246_s1  ;;  %v2064_v31 = vadd.s32 1, %v161_v44  ;;  %v2477_v3 = vsel %vm2476_vm7, %v3173_v52, %v2473_v15  ;;  %v2542_v25 = vmul.f32 %v3175_v42, %v2541_v6  ;;  %3178 = vrcp.f32 %v5979_v54 }
 0x46c   :  { %v5990_v35 = vadd.f32 %v5085_v57, %v5276_v63  ;;  %v2482_v20 = vsel %vm5969_vm6, %v2481_v22, %v2477_v3  ;;  %vm2544_vm9 = vweird.f32 %v5929_v14  ;;  %v2130_v62 = vsub.f32 %v5121_v56, %v5937_v37 }
 0x46d   :  { %v2166_v51 = vsub.f32 %v2097_v41, %v5976_v28  ;;  %v5998_v44 = vmul.f32 %v2482_v20, %v2126_v23  ;;  %v2543_v52 = vadd.f32 %v3175_v42, %v2542_v25  ;;  %vm2549_vm10 = vcmp.eq.f32.partialorder %v2548_v60, 8.507059e+37  ;;  %vm2546_vm12 = vmor %vm2544_vm9, %vm2545_vm8 }
 0x46e   :  { %v3177_v27 = vpop.eup %3176  ;;  %v2096_v10 = vcvt.s32.f32 %v2064_v31  ;;  %v2551_v63 = vor.u32 1.1754944e-38, %v2550_v7  ;;  %v2534_v18 = vand.u32 2147483647, %v5959_v46  ;;  %v2129_v14 = vsub.f32 %v5121_v56, %v5948_v0 }
 0x46f   :  { %v2526_v61 = vmul.f32 %v3177_v27, %v5959_v46  ;;  %v2702_v37 = vsub.f32 1.0, %v5998_v44  ;;  %v2547_v15 = vsel %vm2546_vm12, %v3175_v42, %v2543_v52  ;;  %v6007_v6 = vadd.f32 %v2166_v51, %v5121_v56 }
 0x470   :  { %v2165_v23 = vsub.f32 %v2096_v10, %v5990_v35  ;;  %v2552_v60 = vsel %vm2549_vm10, %v2551_v63, %v2547_v15  ;;  %v2536_v22 = vand.u32 2147483648, %v5959_v46  ;;  %v160_v7 = vadd.s32 3200, %v3425_v9 }
 0x471   :  { %v2527_v41 = vsub.f32 1.0, %v2526_v61  ;;  %v3179_v31 = vpop.eup %3178  ;;  %2753 = vrot.lane.b32.xlu1 %v2702_v37, %s3246_s1  ;;  %v6018_v0 = vmul.f32 %v2552_v60, %v2131_v30  ;;  %vm2530_vm13 = vweird.f32 %v5959_v46  ;;  %v2134_v42 = vsub.f32 %v5121_v56, %v5976_v28 }
 0x472   :  { %3180 = vrcp.f32 %v6007_v6  ;;  %vm2531_vm14 = vweird.f32 %v3177_v27  ;;  %v2512_v25 = vmul.f32 %v3179_v31, %v5979_v54  ;;  %v2520_v20 = vand.u32 2147483647, %v5979_v54 }
 0x473   :  { %v2528_v3 = vmul.f32 %v3177_v27, %v2527_v41  ;;  %v6368_v51 = vsub.f32 1.0, %v6018_v0  ;;  %v2522_v52 = vand.u32 2147483648, %v5979_v54  ;;  %v6029_v59 = vadd.f32 %v2165_v23, %v5121_v56  ;;  %vm2532_vm1 = vmor %vm2530_vm13, %vm2531_vm14 }
 0x474   :  { %v2063_v30 = vadd.s32 1, %v160_v7  ;;  %vm2535_vm15 = vcmp.eq.f32.partialorder %v2534_v18, 8.507059e+37  ;;  %v2537_v63 = vor.u32 1.1754944e-38, %v2536_v22  ;;  %v2513_v61 = vsub.f32 1.0, %v2512_v25 }
 0x475   :  { %v2529_v10 = vadd.f32 %v3177_v27, %v2528_v3  ;;  %2763 = vrot.lane.b32.xlu0 %v6368_v51, %s3246_s1  ;;  %vm2516_vm2 = vweird.f32 %v5979_v54  ;;  %vm2517_vm3 = vweird.f32 %v3179_v31  ;;  %3182 = vrcp.f32 %v6029_v59 }
 0x476   :  { %v6040_v15 = vadd.f32 %v5085_v57, %v5272_v19  ;;  %v2514_v18 = vmul.f32 %v3179_v31, %v2513_v61  ;;  %v2095_v60 = vcvt.s32.f32 %v2063_v30  ;;  %v165_v41 = vadd.s32 3840, %v3425_v9  ;;  %vm2518_vm5 = vmor %vm2516_vm2, %vm2517_vm3 }
 0x477   :  { %v2533_v23 = vsel %vm2532_vm1, %v3177_v27, %v2529_v10  ;;  %vm6043_vm4 = vcmp.eq.f32.partialorder %v2520_v20, 8.507059e+37  ;;  %v2523_v46 = vor.u32 1.1754944e-38, %v2522_v52  ;;  %v2590_v25 = vand.u32 2147483647, %v6007_v6 }
 0x478   :  { %v3181_v22 = vpop.eup %3180  ;;  %v2538_v7 = vsel %vm2535_vm15, %v2537_v63, %v2533_v23  ;;  %v2515_v58 = vadd.f32 %v3179_v31, %v2514_v18  ;;  %v2592_v27 = vand.u32 2147483648, %v6007_v6  ;;  %v2164_v30 = vsub.f32 %v2095_v60, %v6040_v15  ;;  %v6438_v23 = vld [vmem:[#allocation18_spill] sm:$0xff] }
 0x479   :  { %v6048_v51 = vmul.f32 %v2538_v7, %v2130_v62  ;;  %v2582_v19 = vmul.f32 %v3181_v22, %v6007_v6  ;;  %v6058_v20 = vadd.f32 %v5085_v57, %v5366_v26  ;;  %v2068_v52 = vadd.s32 1, %v165_v41 }
 0x47a   :  { %v164_v10 = vadd.s32 3712, %v3425_v9  ;;  %v2519_v63 = vsel %vm2518_vm5, %v3179_v31, %v2515_v58  ;;  %v1995_v18 = vadd.f32 %v6438_v23, %v5549_v1  ;;  %v6067_v60 = vadd.f32 %v2164_v30, %v5121_v56  ;;  %v6441_v1 = vld [vmem:[#allocation17_spill] sm:$0xff] }
 0x47b   :  { %v2706_v62 = vsub.f32 1.0, %v6048_v51  ;;  %v2583_v61 = vsub.f32 1.0, %v2582_v19  ;;  %v3183_v7 = vpop.eup %3182  ;;  %v2524_v54 = vsel %vm6043_vm4, %v2523_v46, %v2519_v63  ;;  %v2100_v32 = vcvt.s32.f32 %v2068_v52 }
 0x47c   :  { %v2067_v26 = vadd.s32 1, %v164_v10  ;;  %v6072_v41 = vmul.f32 %v2524_v54, %v2129_v14  ;;  %vm2587_vm6 = vweird.f32 %v3181_v22  ;;  %v2568_v31 = vmul.f32 %v3183_v7, %v6029_v59 }
 0x47d   :  { %2761 = vrot.lane.b32.xlu2 %v2706_v62, %s3246_s1  ;;  %v2584_v58 = vmul.f32 %v3181_v22, %v2583_v61  ;;  %vm2586_vm7 = vweird.f32 %v6007_v6  ;;  %vm6076_vm8 = vcmp.eq.f32.partialorder %v2590_v25, 8.507059e+37  ;;  %v2593_v3 = vor.u32 1.1754944e-38, %v2592_v27 }
 0x47e   :  { %3184 = vrcp.f32 %v6067_v60  ;;  %v2705_v46 = vsub.f32 1.0, %v6072_v41  ;;  %v2569_v30 = vsub.f32 1.0, %v2568_v31  ;;  %v2169_v14 = vsub.f32 %v2100_v32, %v6058_v20  ;;  %vm2588_vm9 = vmor %vm2586_vm7, %vm2587_vm6 }
 0x47f   :  { %v2585_v19 = vadd.f32 %v3181_v22, %v2584_v58  ;;  %v2576_v52 = vand.u32 2147483647, %v6029_v59  ;;  %v2578_v10 = vand.u32 2147483648, %v6029_v59  ;;  %v6086_v6 = vadd.f32 %v5085_v57, %v1995_v18 }
 0x480   :  { %v2099_v25 = vcvt.s32.f32 %v2067_v26  ;;  %2759 = vrot.lane.b32.xlu1 %v2705_v46, %s3246_s1  ;;  %v2570_v63 = vmul.f32 %v3183_v7, %v2569_v30  ;;  %vm2573_vm10 = vweird.f32 %v3183_v7  ;;  %v6092_v61 = vadd.f32 %v2169_v14, %v5121_v56 }
 0x481   :  { %v2589_v27 = vsel %vm2588_vm9, %v3181_v22, %v2585_v19  ;;  %v2133_v23 = vsub.f32 %v5121_v56, %v5990_v35  ;;  %vm2572_vm12 = vweird.f32 %v6029_v59  ;;  %v2579_v58 = vor.u32 1.1754944e-38, %v2578_v10 }
 0x482   :  { %v2594_v32 = vsel %vm6076_vm8, %v2593_v3, %v2589_v27  ;;  %v2168_v18 = vsub.f32 %v2099_v25, %v6086_v6  ;;  %v2571_v26 = vadd.f32 %v3183_v7, %v2570_v63  ;;  %3186 = vrcp.f32 %v6092_v61  ;;  %vm2574_vm13 = vmor %vm2572_vm12, %vm2573_vm10 }
 0x483   :  { %v6102_v54 = vmul.f32 %v2594_v32, %v2134_v42  ;;  %v163_v35 = vadd.s32 3584, %v3425_v9  ;;  %v1994_v3 = vadd.f32 %v6441_v1, %v5406_v40  ;;  %vm2577_vm14 = vcmp.eq.f32.partialorder %v2576_v52, 8.507059e+37 }
 0x484   :  { %v3185_v22 = vpop.eup %3184  ;;  %v6107_v31 = vadd.f32 %v2168_v18, %v5121_v56  ;;  %v2575_v42 = vsel %vm2574_vm13, %v3183_v7, %v2571_v26  ;;  %v2564_v10 = vand.u32 2147483648, %v6067_v60  ;;  %v6124_v7 = vpop.permute.xlu1 %2719  ;;  %v2562_v32 = vand.u32 2147483647, %v6067_v60 }
 0x485   :  { %v6371_v28 = vsub.f32 1.0, %v6102_v54  ;;  %v2554_v19 = vmul.f32 %v3185_v22, %v6067_v60  ;;  %v2580_v59 = vsel %vm2577_vm14, %v2579_v58, %v2575_v42  ;;  %v6122_v40 = vadd.f32 %v5085_v57, %v1994_v3 }
 0x486   :  { %3188 = vrcp.f32 %v6107_v31  ;;  %v6118_v30 = vmul.f32 %v2580_v59, %v2133_v23  ;;  %v2066_v25 = vadd.s32 1, %v163_v35  ;;  %vm2559_vm15 = vweird.f32 %v3185_v22 }
 0x487   :  { %2769 = vrot.lane.b32.xlu0 %v6371_v28, %s3246_s1  ;;  %v2555_v14 = vsub.f32 1.0, %v2554_v19  ;;  %v2132_v57 = vsub.f32 %v5121_v56, %v6040_v15  ;;  %vm2558_vm1 = vweird.f32 %v6067_v60  ;;  %v2565_v35 = vor.u32 1.1754944e-38, %v2564_v10 }
 0x488   :  { %v3187_v52 = vpop.eup %3186  ;;  %v6375_v27 = vsub.f32 1.0, %v6118_v30  ;;  %v2098_v23 = vcvt.s32.f32 %v2066_v25  ;;  %vm2560_vm2 = vmor %vm2558_vm1, %vm2559_vm15  ;;  %v2634_v3 = vand.u32 2147483648, %v6092_v61  ;;  %vm2563_vm3 = vcmp.eq.f32.partialorder %v2562_v32, 8.507059e+37 }
 0x489   :  { %v2556_v63 = vmul.f32 %v3185_v22, %v2555_v14  ;;  %v2624_v18 = vmul.f32 %v3187_v52, %v6092_v61  ;;  %v2632_v59 = vand.u32 2147483647, %v6092_v61  ;;  %vm2629_vm4 = vweird.f32 %v3187_v52 }
 0x48a   :  { %2767 = vrot.lane.b32.xlu2 %v6375_v27, %s3246_s1  ;;  %v2167_v42 = vsub.f32 %v2098_v23, %v6122_v40  ;;  %vm2628_vm5 = vweird.f32 %v6092_v61  ;;  %v2620_v23 = vand.u32 2147483648, %v6107_v31  ;;  %vm2614_vm9 = vweird.f32 %v6107_v31 }
 0x48b   :  { %v2557_v26 = vadd.f32 %v3185_v22, %v2556_v63  ;;  %v2625_v1 = vsub.f32 1.0, %v2624_v18  ;;  %v2635_v18 = vor.u32 1.1754944e-38, %v2634_v3  ;;  %vm2630_vm6 = vmor %vm2628_vm5, %vm2629_vm4  ;;  %vm2633_vm8 = vcmp.eq.f32.partialorder %v2632_v59, 8.507059e+37  ;;  %v2718_v3 = vpop.permute.xlu2 %2717 }
 0x48c   :  { %v3189_v58 = vpop.eup %3188  ;;  %v2199_v15 = vadd.f32 %v2167_v42, %v5121_v56 }
 0x48d   :  { %v2561_v19 = vsel %vm2560_vm2, %v3185_v22, %v2557_v26  ;;  %v2610_v14 = vmul.f32 %v3189_v58, %v6107_v31  ;;  %v2626_v28 = vmul.f32 %v3187_v52, %v2625_v1  ;;  %v6144_v22 = vpop.permute.xlu1 %2723  ;;  %vm2615_vm7 = vweird.f32 %v3189_v58 }
 0x48e   :  { %v2566_v25 = vsel %vm2563_vm3, %v2565_v35, %v2561_v19  ;;  %3190 = vrcp.f32 %v2199_v15  ;;  %v2618_v35 = vand.u32 2147483647, %v6107_v31  ;;  %vm2616_vm10 = vmor %vm2614_vm9, %vm2615_vm7  ;;  %v2621_v19 = vor.u32 1.1754944e-38, %v2620_v23 }
 0x48f   :  { %v6140_v60 = vmul.f32 %v2566_v25, %v2132_v57  ;;  %v2611_v10 = vsub.f32 1.0, %v2610_v14  ;;  %v2627_v63 = vadd.f32 %v3187_v52, %v2626_v28  ;;  %v2137_v57 = vsub.f32 %v5121_v56, %v6058_v20 }
 0x490   :  { %v2136_v14 = vsub.f32 %v5121_v56, %v6086_v6  ;;  %vm2619_vm12 = vcmp.eq.f32.partialorder %v2618_v35, 8.507059e+37  ;;  %v2606_v23 = vand.u32 2147483648, %v2199_v15  ;;  %vm2600_vm14 = vweird.f32 %v2199_v15 }
 0x491   :  { %v2708_v32 = vsub.f32 1.0, %v6140_v60  ;;  %v2612_v26 = vmul.f32 %v3189_v58, %v2611_v10  ;;  %v2631_v1 = vsel %vm2630_vm6, %v3187_v52, %v2627_v63  ;;  %vm2811_vm2 = vcmp.eq.s32.totalorder %v3425_v9, 0 }
 0x492   :  { %v2636_v61 = vsel %vm2633_vm8, %v2635_v18, %v2631_v1 }
 0x493   :  { %2765 = vrot.lane.b32.xlu1 %v2708_v32, %s3246_s1  ;;  %v2613_v28 = vadd.f32 %v3189_v58, %v2612_v26  ;;  %v6154_v42 = vmul.f32 %v2636_v61, %v2137_v57  ;;  %v2846_v26 = vpop.permute.xlu0 %2845  ;;  %v2722_v35 = vpop.permute.xlu2 %2721  ;;  %v2607_v61 = vor.u32 1.1754944e-38, %v2606_v23  ;;  %v52_v23 = vld [vmem:[#allocation5 + $0x8] sm:$0xff] }
 0x494   :  { %v3191_v20 = vpop.eup %3190 }
 0x495   :  { %v2617_v25 = vsel %vm2616_vm10, %v3189_v58, %v2613_v28  ;;  %v6372_v52 = vsub.f32 1.0, %v6154_v42  ;;  %v2596_v63 = vmul.f32 %v3191_v20, %v2199_v15  ;;  %v6165_v57 = vpop.permute.xlu1 %2729  ;;  %vm2601_vm13 = vweird.f32 %v3191_v20 }
 0x496   :  { %v2622_v59 = vsel %vm2619_vm12, %v2621_v19, %v2617_v25  ;;  %v2604_v58 = vand.u32 2147483647, %v2199_v15  ;;  %vm2602_vm15 = vmor %vm2600_vm14, %vm2601_vm13  ;;  %v2135_v28 = vsub.f32 %v5121_v56, %v6122_v40 }
 0x497   :  { %v6159_v10 = vmul.f32 %v2622_v59, %v2136_v14  ;;  %2775 = vrot.lane.b32.xlu0 %v6372_v52, %s3246_s1  ;;  %v2597_v18 = vsub.f32 1.0, %v2596_v63  ;;  %v2808_v52 = vsel %vm231_vm0, %v2718_v3, %v6124_v7 }
 0x498   :  { %vm2605_vm1 = vcmp.eq.f32.partialorder %v2604_v58, 8.507059e+37  ;;  %v6442_v58 = vsub.f32 1.0, %v5374_v29  ;;  %v2807_v29 = vsel %vm231_vm0, %v6124_v7, %v2722_v35 }
 0x499   :  { %v6373_v31 = vsub.f32 1.0, %v6159_v10  ;;  %v2598_v6 = vmul.f32 %v3191_v20, %v2597_v18 }
 0x49b   :  { %2773 = vrot.lane.b32.xlu2 %v6373_v31, %s3246_s1  ;;  %v2599_v1 = vadd.f32 %v3191_v20, %v2598_v6  ;;  %v2716_v15 = vpop.permute.xlu0 %2715  ;;  %v2726_v56 = vpop.permute.xlu2 %2725 }
 0x49c   :  { %v2805_v7 = vsel %vm231_vm0, %v6144_v22, %v2726_v56 }
 0x49d   :  { %v2603_v19 = vsel %vm2602_vm15, %v3191_v20, %v2599_v1  ;;  %v51_v20 = vld [vmem:[#allocation5] sm:$0xff] }
 0x49e   :  { %v2608_v14 = vsel %vm2605_vm1, %v2607_v61, %v2603_v19  ;;  %v2912_v6 = vmax.f32 %v51_v20, 0.0  ;;  %v2913_v61 = vmax.f32 %v52_v23, 0.0  ;;  %v54_v20 = vld [vmem:[#allocation5 + $0x18] sm:$0xff]  ;;  %v6445_v23 = vsub.f32 1.0, %v5461_v53 }
 0x49f   :  { %3017 = vrot.lane.b32.xlu0 %v5677_v38, %s3246_s1  ;;  %v6174_v25 = vmul.f32 %v2608_v14, %v2135_v28  ;;  %v6443_v28 = vsub.f32 1.0, %v5360_v45  ;;  %v53_v14 = vld [vmem:[#allocation5 + $0x10] sm:$0xff]  ;;  %v2915_v45 = vmax.f32 %v54_v20, 0.0 }
 0x4a1   :  { %v6374_v59 = vsub.f32 1.0, %v6174_v25 }
 0x4a3   :  { %3011 = vrot.lane.b32.xlu2 %v5544_v50, %s3246_s1  ;;  %2771 = vrot.lane.b32.xlu1 %v6374_v59, %s3246_s1  ;;  %v2809_v50 = vsel %vm231_vm0, %v2716_v15, %v2718_v3  ;;  %v2914_v59 = vmax.f32 %v53_v14, 0.0  ;;  %v2806_v3 = vsel %vm231_vm0, %v2722_v35, %v6144_v22  ;;  %v2728_v53 = vpop.permute.xlu0 %2727  ;;  %v6447_v14 = vsub.f32 1.0, %v5534_v11  ;;  %v57_v35 = vld [vmem:[#allocation5 + $0x30] sm:$0xff] }
 0x4a4   :  { %v6180_v63 = vpop.permute.xlu1 %2777  ;;  %v2881_v19 = vsub.f32 %v6443_v28, %v2809_v50  ;;  %v2883_v50 = vsub.f32 %v6445_v23, %v2807_v29  ;;  %v55_v28 = vld [vmem:[#allocation5 + $0x20] sm:$0xff]  ;;  %v2804_v20 = vsel %vm231_vm0, %v2726_v56, %v2728_v53  ;;  %v2803_v22 = vsel %vm231_vm0, %v2728_v53, %v6165_v57  ;;  %v60_v53 = vld [vmem:[#allocation5 + $0x48] sm:$0xff] }
 0x4a5   :  { %v2810_v40 = vsel %vm231_vm0, %v6180_v63, %v2716_v15  ;;  %v2732_v15 = vpop.permute.xlu2 %2731 }
 0x4a6   :  { %v2848_v18 = vsel %vm2811_vm2, %v2846_v26, %v2810_v40  ;;  %v6444_v26 = vsub.f32 1.0, %v5338_v12  ;;  %v2945_v27 = vmul.f32 %v2913_v61, %v2881_v19  ;;  %v56_v19 = vld [vmem:[#allocation5 + $0x28] sm:$0xff]  ;;  %v2802_v56 = vsel %vm231_vm0, %v6165_v57, %v2732_v15 }
 0x4a7   :  { %v2880_v1 = vsub.f32 %v6442_v58, %v2848_v18 }
 0x4a8   :  { %v2882_v40 = vsub.f32 %v6444_v26, %v2808_v52  ;;  %v2947_v52 = vmul.f32 %v2915_v45, %v2883_v50  ;;  %v2885_v26 = vsub.f32 %v6447_v14, %v2805_v7  ;;  %v6448_v45 = vsub.f32 1.0, %v5525_v16  ;;  %v58_v50 = vld [vmem:[#allocation5 + $0x38] sm:$0xff] }
 0x4a9   :  { %v2944_v31 = vmul.f32 %v2912_v6, %v2880_v1  ;;  %v2916_v6 = vmax.f32 %v55_v28, 0.0  ;;  %v6446_v1 = vsub.f32 1.0, %v5498_v2 }
 0x4aa   :  { %v2946_v58 = vmul.f32 %v2914_v59, %v2882_v40  ;;  %v2917_v59 = vmax.f32 %v56_v19, 0.0  ;;  %v2886_v23 = vsub.f32 %v6448_v45, %v2804_v20  ;;  %v6450_v19 = vsub.f32 1.0, %v5620_v4 }
 0x4ab   :  { %v2978_v18 = vadd.f32 %v2945_v27, %v2944_v31  ;;  %v2884_v61 = vsub.f32 %v6446_v1, %v2806_v3  ;;  %v2919_v3 = vmax.f32 %v58_v50, 0.0  ;;  %v2734_v1 = vpop.permute.xlu0 %2733 }
 0x4ac   :  { %v2949_v2 = vmul.f32 %v2917_v59, %v2885_v26  ;;  %v2888_v7 = vsub.f32 %v6450_v19, %v2802_v56  ;;  %v2801_v59 = vsel %vm231_vm0, %v2732_v15, %v2734_v1  ;;  %v62_v15 = vld [vmem:[#allocation5 + $0x58] sm:$0xff] }
 0x4ad   :  { %v2979_v12 = vadd.f32 %v2978_v18, %v2946_v58  ;;  %v2738_v27 = vpop.permute.xlu2 %2737  ;;  %v2948_v40 = vmul.f32 %v2916_v6, %v2884_v61  ;;  %v2918_v18 = vmax.f32 %v57_v35, 0.0  ;;  %v59_v6 = vld [vmem:[#allocation5 + $0x40] sm:$0xff]  ;;  %v6451_v35 = vld [vmem:[#allocation12_spill] sm:$0xff] }
 0x4ae   :  { %v2920_v61 = vmax.f32 %v59_v6, 0.0  ;;  %v6452_v20 = vsub.f32 1.0, %v6451_v35 }
 0x4af   :  { %v2980_v31 = vadd.f32 %v2979_v12, %v2947_v52  ;;  %v2950_v28 = vmul.f32 %v2918_v18, %v2886_v23  ;;  %v6449_v12 = vsub.f32 1.0, %v5564_v43 }
 0x4b0   :  { %v2736_v14 = vpop.permute.xlu1 %2735  ;;  %v2952_v43 = vmul.f32 %v2920_v61, %v2888_v7 }
 0x4b1   :  { %v2981_v29 = vadd.f32 %v2980_v31, %v2948_v40  ;;  %v2887_v52 = vsub.f32 %v6449_v12, %v2803_v22  ;;  %v2921_v40 = vmax.f32 %v60_v53, 0.0  ;;  %v2800_v57 = vsel %vm231_vm0, %v2734_v1, %v2736_v14 }
 0x4b2   :  { %v6453_v22 = vsub.f32 1.0, %v5731_v13  ;;  %v2923_v12 = vmax.f32 %v62_v15, 0.0  ;;  %v6455_v13 = vsub.f32 1.0, %v5697_v8 }
 0x4b3   :  { %v2982_v58 = vadd.f32 %v2981_v29, %v2949_v2  ;;  %v2951_v31 = vmul.f32 %v2919_v3, %v2887_v52  ;;  %v2889_v29 = vsub.f32 %v6452_v20, %v2801_v59  ;;  %v61_v2 = vld [vmem:[#allocation5 + $0x50] sm:$0xff]  ;;  %v2740_v4 = vpop.permute.xlu0 %2739  ;;  %v6454_v52 = vsub.f32 1.0, %v5712_v49 }
 0x4b4   :  { %v2922_v50 = vmax.f32 %v61_v2, 0.0  ;;  %v2798_v1 = vsel %vm231_vm0, %v2738_v27, %v2740_v4  ;;  %v6456_v20 = vsub.f32 1.0, %v5824_v36 }
 0x4b5   :  { %v2744_v11 = vpop.permute.xlu2 %2743  ;;  %v2983_v16 = vadd.f32 %v2982_v58, %v2950_v28  ;;  %v2953_v23 = vmul.f32 %v2921_v40, %v2889_v29  ;;  %v2890_v58 = vsub.f32 %v6453_v22, %v2800_v57  ;;  %v2799_v28 = vsel %vm231_vm0, %v2736_v14, %v2738_v27  ;;  %v64_v14 = vld [vmem:[#allocation5 + $0x68] sm:$0xff]  ;;  %v65_v27 = vld [vmem:[#allocation5 + $0x70] sm:$0xff]  ;;  %v66_v22 = vld [vmem:[#allocation5 + $0x78] sm:$0xff] }
 0x4b6   :  { %v2891_v6 = vsub.f32 %v6454_v52, %v2799_v28  ;;  %v2925_v35 = vmax.f32 %v64_v14, 0.0  ;;  %v2926_v8 = vmax.f32 %v65_v27, 0.0 }
 0x4b7   :  { %v2984_v26 = vadd.f32 %v2983_v16, %v2951_v31  ;;  %v2954_v56 = vmul.f32 %v2922_v50, %v2890_v58  ;;  %v63_v16 = vld [vmem:[#allocation5 + $0x60] sm:$0xff]  ;;  %v2892_v31 = vsub.f32 %v6455_v13, %v2798_v1 }
 0x4b8   :  { %v2924_v7 = vmax.f32 %v63_v16, 0.0  ;;  %v2955_v59 = vmul.f32 %v2923_v12, %v2891_v6  ;;  %v6458_v12 = vsub.f32 1.0, %v5770_v39 }
 0x4b9   :  { %v2985_v45 = vadd.f32 %v2984_v26, %v2952_v43 }
 0x4ba   :  { %v2956_v40 = vmul.f32 %v2924_v7, %v2892_v31 }
 0x4bb   :  { %v2986_v3 = vadd.f32 %v2985_v45, %v2953_v23  ;;  %v2746_v26 = vpop.permute.xlu0 %2745  ;;  %v6457_v45 = vsub.f32 1.0, %v5793_v17 }
 0x4bd   :  { %v2750_v18 = vpop.permute.xlu2 %2749  ;;  %v2987_v61 = vadd.f32 %v2986_v3, %v2954_v56  ;;  %v2927_v3 = vmax.f32 %v66_v22, 0.0  ;;  %v67_v56 = vld [vmem:[#allocation5 + $0x80] sm:$0xff] }
 0x4bf   :  { %v2988_v49 = vadd.f32 %v2987_v61, %v2955_v59  ;;  %v2928_v61 = vmax.f32 %v67_v56, 0.0 }
 0x4c1   :  { %v2742_v19 = vpop.permute.xlu1 %2741  ;;  %v2989_v57 = vadd.f32 %v2988_v49, %v2956_v40 }
 0x4c2   :  { %v2797_v43 = vsel %vm231_vm0, %v2740_v4, %v2742_v19  ;;  %v2796_v2 = vsel %vm231_vm0, %v2742_v19, %v2744_v11  ;;  %v2795_v4 = vsel %vm231_vm0, %v2744_v11, %v2746_v26  ;;  %v68_v19 = vld [vmem:[#allocation5 + $0x88] sm:$0xff] }
 0x4c3   :  { %v2893_v29 = vsub.f32 %v6456_v20, %v2797_v43  ;;  %v2894_v23 = vsub.f32 %v6457_v45, %v2796_v2  ;;  %v2895_v52 = vsub.f32 %v6458_v12, %v2795_v4  ;;  %v2929_v39 = vmax.f32 %v68_v19, 0.0  ;;  %v69_v43 = vld [vmem:[#allocation5 + $0x90] sm:$0xff] }
 0x4c5   :  { %v2756_v53 = vpop.permute.xlu2 %2755  ;;  %v2957_v50 = vmul.f32 %v2925_v35, %v2893_v29  ;;  %v2958_v6 = vmul.f32 %v2926_v8, %v2894_v23  ;;  %v2959_v1 = vmul.f32 %v2927_v3, %v2895_v52  ;;  %v70_v29 = vld [vmem:[#allocation5 + $0x98] sm:$0xff]  ;;  %v71_v8 = vld [vmem:[#allocation5 + $0xa0] sm:$0xff]  ;;  %v6460_v3 = vsub.f32 1.0, %v5931_v5 }
 0x4c7   :  { %v2990_v15 = vadd.f32 %v2989_v57, %v2957_v50  ;;  %v6459_v50 = vsub.f32 1.0, %v5961_v47 }
 0x4c9   :  { %v2991_v16 = vadd.f32 %v2990_v15, %v2958_v6  ;;  %v72_v15 = vld [vmem:[#allocation5 + $0xa8] sm:$0xff]  ;;  %v73_v6 = vld [vmem:[#allocation5 + $0xb0] sm:$0xff] }
 0x4cb   :  { %v2752_v36 = vpop.permute.xlu0 %2751  ;;  %v2992_v13 = vadd.f32 %v2991_v16, %v2959_v1  ;;  %v2934_v1 = vmax.f32 %v73_v6, 0.0  ;;  %v6465_v6 = vsub.f32 1.0, %v6159_v10 }
 0x4d1   :  { %v2748_v28 = vpop.permute.xlu1 %2747 }
 0x4d2   :  { %v2794_v17 = vsel %vm231_vm0, %v2746_v26, %v2748_v28  ;;  %v2793_v7 = vsel %vm231_vm0, %v2748_v28, %v2750_v18  ;;  %v2792_v26 = vsel %vm231_vm0, %v2750_v18, %v2752_v36 }
 0x4d3   :  { %v2896_v11 = vsub.f32 %v2699_v48, %v2794_v17  ;;  %v2897_v59 = vsub.f32 %v2700_v33, %v2793_v7  ;;  %v2930_v48 = vmax.f32 %v69_v43, 0.0  ;;  %v2898_v35 = vsub.f32 %v2701_v34, %v2792_v26 }
 0x4d4   :  { %v2931_v33 = vmax.f32 %v70_v29, 0.0  ;;  %v2932_v34 = vmax.f32 %v71_v8, 0.0  ;;  %v78_v8 = vld [vmem:[#allocation5 + $0xd8] sm:$0xff] }
 0x4d5   :  { %v2960_v14 = vmul.f32 %v2928_v61, %v2896_v11  ;;  %v2961_v20 = vmul.f32 %v2929_v39, %v2897_v59  ;;  %v2962_v55 = vmul.f32 %v2930_v48, %v2898_v35  ;;  %v74_v61 = vld [vmem:[#allocation5 + $0xb8] sm:$0xff]  ;;  %v75_v59 = vld [vmem:[#allocation5 + $0xc0] sm:$0xff] }
 0x4d6   :  { %v2758_v49 = vpop.permute.xlu0 %2757  ;;  %v2935_v7 = vmax.f32 %v74_v61, 0.0 }
 0x4d7   :  { %v6254_v58 = vpop.permute.xlu2 %2761  ;;  %v2993_v40 = vadd.f32 %v2992_v13, %v2960_v14  ;;  %v2789_v28 = vsel %vm231_vm0, %v2756_v53, %v2758_v49 }
 0x4d8   :  { %v2901_v12 = vsub.f32 %v6460_v3, %v2789_v28 }
 0x4d9   :  { %v2994_v2 = vadd.f32 %v2993_v40, %v2961_v20  ;;  %v6461_v40 = vsub.f32 1.0, %v6018_v0 }
 0x4db   :  { %v2995_v23 = vadd.f32 %v2994_v2, %v2962_v55 }
 0x4e3   :  { %v2754_v24 = vpop.permute.xlu1 %2753 }
 0x4e4   :  { %v6264_v31 = vpop.permute.xlu2 %2767  ;;  %v2791_v27 = vsel %vm231_vm0, %v2752_v36, %v2754_v24  ;;  %v2790_v18 = vsel %vm231_vm0, %v2754_v24, %v2756_v53 }
 0x4e5   :  { %v2899_v57 = vsub.f32 %v2702_v37, %v2791_v27  ;;  %v2900_v22 = vsub.f32 %v6459_v50, %v2790_v18  ;;  %v2933_v37 = vmax.f32 %v72_v15, 0.0  ;;  %v77_v27 = vld [vmem:[#allocation5 + $0xd0] sm:$0xff]  ;;  %v80_v15 = vld [vmem:[#allocation5 + $0xe8] sm:$0xff] }
 0x4e6   :  { %v2941_v3 = vmax.f32 %v80_v15, 0.0 }
 0x4e7   :  { %v2764_v21 = vpop.permute.xlu0 %2763  ;;  %v2963_v4 = vmul.f32 %v2931_v33, %v2899_v57  ;;  %v2964_v52 = vmul.f32 %v2932_v34, %v2900_v22  ;;  %v2965_v47 = vmul.f32 %v2933_v37, %v2901_v12  ;;  %v2938_v33 = vmax.f32 %v77_v27, 0.0  ;;  %v79_v22 = vld [vmem:[#allocation5 + $0xe0] sm:$0xff] }
 0x4e8   :  { %v2786_v14 = vsel %vm231_vm0, %v6254_v58, %v2764_v21  ;;  %v6462_v57 = vsub.f32 1.0, %v6118_v30  ;;  %v2940_v30 = vmax.f32 %v79_v22, 0.0  ;;  %v6464_v12 = vsub.f32 1.0, %v6174_v25 }
 0x4e9   :  { %v2996_v36 = vadd.f32 %v2995_v23, %v2963_v4  ;;  %v2904_v24 = vsub.f32 %v6461_v40, %v2786_v14  ;;  %v2939_v23 = vmax.f32 %v78_v8, 0.0 }
 0x4eb   :  { %v2997_v17 = vadd.f32 %v2996_v36, %v2964_v52 }
 0x4ed   :  { %v2998_v19 = vadd.f32 %v2997_v17, %v2965_v47 }
 0x4f2   :  { %v2760_v44 = vpop.permute.xlu1 %2759 }
 0x4f3   :  { %v2788_v56 = vsel %vm231_vm0, %v2758_v49, %v2760_v44  ;;  %v2787_v5 = vsel %vm231_vm0, %v2760_v44, %v6254_v58  ;;  %v2936_v49 = vmax.f32 %v75_v59, 0.0  ;;  %v81_v44 = vld [vmem:[#allocation5 + $0xf0] sm:$0xff] }
 0x4f4   :  { %v2902_v53 = vsub.f32 %v2705_v46, %v2788_v56  ;;  %v2903_v13 = vsub.f32 %v2706_v62, %v2787_v5  ;;  %v76_v46 = vld [vmem:[#allocation5 + $0xc8] sm:$0xff] }
 0x4f5   :  { %v6278_v45 = vpop.permute.xlu2 %2773  ;;  %v2937_v51 = vmax.f32 %v76_v46, 0.0  ;;  %v2968_v29 = vmul.f32 %v2936_v49, %v2904_v24 }
 0x4f6   :  { %v2966_v39 = vmul.f32 %v2934_v1, %v2902_v53  ;;  %v2967_v48 = vmul.f32 %v2935_v7, %v2903_v13  ;;  %v2942_v1 = vmax.f32 %v81_v44, 0.0  ;;  %v6466_v53 = vsub.f32 1.0, %v6154_v42 }
 0x4f8   :  { %v2999_v43 = vadd.f32 %v2998_v19, %v2966_v39 }
 0x4f9   :  { %v2770_v11 = vpop.permute.xlu0 %2769 }
 0x4fa   :  { %v3000_v35 = vadd.f32 %v2999_v43, %v2967_v48  ;;  %v2783_v18 = vsel %vm231_vm0, %v6264_v31, %v2770_v11 }
 0x4fc   :  { %v3001_v55 = vadd.f32 %v3000_v35, %v2968_v29 }
 0x4fd   :  { %v3012_v16 = vpop.permute.xlu2 %3011 }
 0x4fe   :  { %3015 = vst.msk [vmem:[#allocation2] sm:$0xff] %vm46_vm11, %v3012_v16  ;;  %v82_v16 = vld [vmem:[#allocation5 + $0xf8] sm:$0xff] }
 0x4ff   :  { %v2943_v5 = vmax.f32 %v82_v16, 0.0 }
 0x505   :  { %v2766_v41 = vpop.permute.xlu1 %2765 }
 0x506   :  { %v2785_v26 = vsel %vm231_vm0, %v2764_v21, %v2766_v41  ;;  %v2784_v58 = vsel %vm231_vm0, %v2766_v41, %v6264_v31  ;;  %v6463_v21 = vsub.f32 1.0, %v6102_v54 }
 0x507   :  { %v2905_v62 = vsub.f32 %v2708_v32, %v2785_v26  ;;  %v2906_v0 = vsub.f32 %v6462_v57, %v2784_v58 }
 0x508   :  { %v2907_v34 = vsub.f32 %v6463_v21, %v2783_v18 }
 0x509   :  { %v2776_v20 = vpop.permute.xlu0 %2775  ;;  %v2969_v2 = vmul.f32 %v2937_v51, %v2905_v62  ;;  %v2970_v50 = vmul.f32 %v2938_v33, %v2906_v0 }
 0x50a   :  { %v2971_v28 = vmul.f32 %v2939_v23, %v2907_v34  ;;  %v2780_v31 = vsel %vm231_vm0, %v6278_v45, %v2776_v20  ;;  %v2779_v47 = vsel %vm231_vm0, %v2776_v20, %v6180_v63 }
 0x50b   :  { %v3002_v60 = vadd.f32 %v3001_v55, %v2969_v2 }
 0x50d   :  { %v3003_v4 = vadd.f32 %v3002_v60, %v2970_v50 }
 0x50f   :  { %v3004_v17 = vadd.f32 %v3003_v4, %v2971_v28 }
 0x511   :  { %v3018_v32 = vpop.permute.xlu0 %3017 }
 0x512   :  { %3020 = vst.msk [vmem:[#allocation3] sm:$0xff] %vm46_vm11, %v3018_v32 }
 0x515   :  { %v2772_v36 = vpop.permute.xlu1 %2771 }
 0x516   :  { %v2781_v37 = vsel %vm231_vm0, %v2772_v36, %v6278_v45  ;;  %v2782_v54 = vsel %vm231_vm0, %v2770_v11, %v2772_v36  ;;  %v2910_v45 = vsub.f32 %v6466_v53, %v2780_v31  ;;  %v2911_v11 = vsub.f32 %v5677_v38, %v2779_v47 }
 0x517   :  { %v2908_v52 = vsub.f32 %v6464_v12, %v2782_v54  ;;  %v2909_v56 = vsub.f32 %v6465_v6, %v2781_v37 }
 0x518   :  { %v2974_v7 = vmul.f32 %v2942_v1, %v2910_v45  ;;  %v2975_v10 = vmul.f32 %v2943_v5, %v2911_v11 }
 0x519   :  { %v2972_v61 = vmul.f32 %v2940_v30, %v2908_v52  ;;  %v2973_v19 = vmul.f32 %v2941_v3, %v2909_v56 }
 0x51b   :  { %v3005_v25 = vadd.f32 %v3004_v17, %v2972_v61 }
 0x51d   :  { %v3006_v13 = vadd.f32 %v3005_v25, %v2973_v19 }
 0x51f   :  { %v3007_v39 = vadd.f32 %v3006_v13, %v2974_v7 }
 0x521   :  { %v3008_v59 = vadd.f32 %v3007_v39, %v2975_v10 }
 0x523   :  { %3025 = vadd.xlane.f32.xlu1 %v3008_v59 }
 0x596   :  { %v3026_v14 = vpop.xlane.xlu1 %3025 }
 0x597   :  { %3027 = vst.msk [vmem:[%s6341_s3] sm:$0xff] %vm46_vm11, %v3026_v14 }
 0x598   :  { %3032 = vsyncpa [#allocation6], 1 }
 0x599   :  { %3033 = vsyncpa [#allocation8], 1 }

</bundles_post_ra>
